<compile_context>
chip_gen: v5e
topology: v5e:2x2
jax: 0.10.0
libtpu: 0.0.40
codegen_flags: <defaults>
</compile_context>

<pallas_src>
import functools
import math

import jax
import jax.numpy as jnp
import numpy as np
from jax.experimental import pallas as pl
from jax.experimental.pallas import tpu as pltpu


# ---------------------------------------------------------------------------
# Per-generation VMEM budget (trace-time query, safe fallback).
# ---------------------------------------------------------------------------
def _vmem_budget_bytes():
    try:
        info = pltpu.get_tpu_info()
        cap = int(getattr(info, "vmem_capacity_bytes", 0)) or 64 * 1024 * 1024
    except Exception:
        cap = 64 * 1024 * 1024  # conservative (v7x physical VMEM per TC)
    # leave ~25% headroom for compiler scratch / semaphores / internal buffers
    return max(16 * 1024 * 1024, (cap * 3) // 4)


# ---------------------------------------------------------------------------
# Generic fused (x @ W + b) kernel, row-tiled.  Used for:
#   * the per-layer fused fwd+bwd LSTM input projection (hoisted out of the
#     recurrence, one wide MXU matmul), and
#   * the final linear head (label dim lane-padded to 128 for dense stores).
# Weights arrive pre-transposed as (F, L); MXU inputs are bf16, f32 accumulate.
# ---------------------------------------------------------------------------
def _matmul_bias_kernel(x_ref, w_ref, b_ref, o_ref):
    o_ref[...] = (
        jnp.dot(x_ref[...], w_ref[...], preferred_element_type=jnp.float32)
        + b_ref[...]
    ).astype(o_ref.dtype)


def matmul_bias(x2d, w, b, out_dtype=jnp.float32, vmem_budget=None,
                lane_multiple=128, row_tile_cap=512):
    """x2d: (N, F), w: (F, L) pre-transposed, b: (L,) -> (N, L)."""
    N, F = x2d.shape
    L = w.shape[1]

    # Lane-pad the output width so stores are unmasked / lane-dense.
    Lp = pl.cdiv(L, lane_multiple) * lane_multiple
    if Lp != L:
        w = jnp.pad(w, ((0, 0), (0, Lp - L)))
        b = jnp.pad(b, (0, Lp - L))
    w = w.astype(jnp.bfloat16)
    b2d = b.astype(jnp.float32).reshape(1, Lp)

    if vmem_budget is None:
        vmem_budget = _vmem_budget_bytes()
    out_bytes = np.dtype(out_dtype).itemsize

    # Full-F / full-Lp blocks; row tile derived from the VMEM budget.
    # TODO(synk): add K-tiling with an f32 VMEM accumulator (P3) once the
    # resident F*Lp weight no longer fits comfortably (very large hidden).
    fixed = 2 * F * Lp * 2 + Lp * 4 + (2 << 20)           # weight (dbl-buf) + bias + slack
    per_row = 2 * (F * 2 + Lp * out_bytes)                # dbl-buffered in/out rows
    tn = max(8, min(row_tile_cap, (vmem_budget - fixed) // max(per_row, 1)))
    tn = max(8, (tn // 8) * 8)

    if N <= tn:
        tn, Np = N, N                                      # full-dim row block
    else:
        Np = pl.cdiv(N, tn) * tn
        if Np != N:
            x2d = jnp.pad(x2d, ((0, Np - N), (0, 0)))      # pads only the thin input

    out = pl.pallas_call(
        _matmul_bias_kernel,
        out_shape=jax.ShapeDtypeStruct((Np, Lp), out_dtype),
        grid_spec=pltpu.PrefetchScalarGridSpec(
            num_scalar_prefetch=0,
            grid=(Np // tn,),
            in_specs=[
                pl.BlockSpec((tn, F), lambda i: (i, 0)),
                pl.BlockSpec((F, Lp), lambda i: (0, 0)),
                pl.BlockSpec((1, Lp), lambda i: (0, 0)),
            ],
            out_specs=pl.BlockSpec((tn, Lp), lambda i: (i, 0)),
        ),
        compiler_params=pltpu.CompilerParams(
            dimension_semantics=("parallel",),
            vmem_limit_bytes=vmem_budget,
        ),
    )(x2d, w, b2d)
    return out[:N, :L]


# ---------------------------------------------------------------------------
# Bidirectional LSTM recurrence kernel.
# Grid = (direction, time_chunk): direction is "parallel" (independent; on v7x
# the two directions land on the two TensorCores), time_chunk is "arbitrary"
# (sequential recurrence; h/c live in f32 VMEM scratch across chunks).
# Each grid point reads a (tc, Bp, 4Hp) pre-activation slab and writes its
# (tc, Bp, Hp) half of the interleaved (T, Bp, 2Hp) output; per-step work is
# only h_prev @ W_hh + P[t].  Gate packing is [i, f, o, g], each lane-padded
# to Hp, so activations are two contiguous lane-aligned slabs.
# ---------------------------------------------------------------------------
def _bilstm_chunk_kernel(p_ref, whh_ref, out_ref, h_sc, c_sc,
                         *, tc, t_total, num_chunks):
    d = pl.program_id(0)          # 0 = forward, 1 = backward
    c = pl.program_id(1)          # grid chunk index (chunks reversed for d=1)
    Hp = h_sc.shape[1]

    @pl.when(c == 0)
    def _():
        h_sc[...] = jnp.zeros_like(h_sc)
        c_sc[...] = jnp.zeros_like(c_sc)

    whh = whh_ref[...]            # (Hp, 4Hp) bf16, resident for the whole chunk
    # TODO(synk): pin W_hh in the MXU across the chunk with
    # pltpu.matmul_push_rhs / matmul_acc_lhs / matmul_pop once the staging
    # constraints for a (Hp, 4Hp) RHS are handled; jnp.dot re-streams it.

    chunk_start = (c + d * (num_chunks - 1 - 2 * c)) * tc   # true time offset
    need_tail_guard = (t_total % tc) != 0                    # trace-time constant

    def step(t):
        h_prev = h_sc[...]        # (Bp, Hp) f32
        c_prev = c_sc[...]

        gates = (
            jnp.dot(h_prev.astype(jnp.bfloat16), whh,
                    preferred_element_type=jnp.float32)
            + p_ref[t].astype(jnp.float32)        # precomputed x@W_ih^T + b
        )                                         # (Bp, 4Hp) f32, packing [i,f,o,g]

        sig = jax.nn.sigmoid(gates[:, : 3 * Hp])  # one pass over [i | f | o]
        g_g = jnp.tanh(gates[:, 3 * Hp:])         # one pass over g
        i_g = sig[:, :Hp]
        f_g = sig[:, Hp: 2 * Hp]
        o_g = sig[:, 2 * Hp:]

        c_new = f_g * c_prev + i_g * g_g
        h_new = o_g * jnp.tanh(c_new)

        h_sc[...] = h_new
        c_sc[...] = c_new
        out_ref[t] = h_new.astype(out_ref.dtype)  # lane-dense (Bp, Hp) store

    @pl.loop(0, tc)
    def _(i):
        # Forward walks the chunk 0..tc-1; backward walks tc-1..0.
        t = i + d * (tc - 1 - 2 * i)
        if need_tail_guard:
            @pl.when(chunk_start + t < t_total)   # skip padded tail timesteps
            def _():
                step(t)
        else:
            step(t)


def bilstm_layer(x_tbf, w_in, w_hh, b, time_chunk_cap=256):
    """One bidirectional LSTM layer (everything lane-padded to Hp).

    x_tbf: (T, Bp, IN)            time-major activations (batch already padded)
    w_in:  (IN, 8Hp) bf16         fused [fwd | bwd] input weights, pre-transposed
    w_hh:  (2, Hp, 4Hp) bf16      pre-transposed recurrent weights
    b:     (8Hp,) f32             fused biases (b_ih + b_hh, fwd then bwd)
    returns (T, Bp, 2Hp) bf16     interleaved [h_fwd | h_bwd] on features.
    """
    T, Bp, IN = x_tbf.shape
    Hp = w_hh.shape[1]
    H4 = 4 * Hp
    budget = _vmem_budget_bytes()

    # --- fused fwd+bwd input projection for all timesteps (one wide matmul) ---
    x2d = x_tbf.reshape(T * Bp, IN).astype(jnp.bfloat16)
    p = matmul_bias(x2d, w_in, b, out_dtype=jnp.bfloat16, vmem_budget=budget)
    p = p.reshape(T, Bp, 2 * H4)                  # (T, Bp, 8Hp), no stack/pad copies

    # --- time_chunk from the VMEM budget (double-buffered p/out + W_hh + state) ---
    fixed = Hp * H4 * 2 * 2 + 2 * Bp * Hp * 4 + (2 << 20)
    per_t = Bp * (H4 + Hp) * 2 * 2
    tc = int(max(1, min(T, time_chunk_cap, (budget - fixed) // max(per_t, 1))))
    C = pl.cdiv(T, tc)

    def _p_map(d, c):
        return (c + d * (C - 1 - 2 * c), 0, d)    # time chunk (reversed for bwd), dir half

    def _o_map(d, c):
        return (c + d * (C - 1 - 2 * c), 0, d)    # write own half of interleaved output

    kernel = functools.partial(_bilstm_chunk_kernel, tc=tc, t_total=T, num_chunks=C)

    out = pl.pallas_call(
        kernel,
        out_shape=jax.ShapeDtypeStruct((T, Bp, 2 * Hp), jnp.bfloat16),
        grid_spec=pltpu.PrefetchScalarGridSpec(
            num_scalar_prefetch=0,
            grid=(2, C),
            in_specs=[
                pl.BlockSpec((tc, Bp, H4), _p_map),               # pre-activations
                pl.BlockSpec((None, Hp, H4), lambda d, c: (d, 0, 0)),  # W_hh resident
            ],
            out_specs=pl.BlockSpec((tc, Bp, Hp), _o_map),
            scratch_shapes=[
                pltpu.VMEM((Bp, Hp), jnp.float32),   # h state (f32)
                pltpu.VMEM((Bp, Hp), jnp.float32),   # c state (f32)
            ],
        ),
        compiler_params=pltpu.CompilerParams(
            dimension_semantics=("parallel", "arbitrary"),
            vmem_limit_bytes=budget,
        ),
    )(p, w_hh)
    # TODO(synk): on single-TC chips (v5e/v6e) fuse both directions into one
    # grid step (two dots per timestep) to halve latency-bound iterations.
    return out


# ---------------------------------------------------------------------------
# Model: embedding lookup -> stacked bidirectional LSTM -> linear head.
# Weights are pre-packed at init: gate order [i, f, o, g], each gate padded to
# Hp = round_up(H, 128) lanes, forward/backward input weights fused to 8Hp.
# ---------------------------------------------------------------------------
def init_params(key, vocab, embed_dim, num_layers, hidden, num_labels, lane=128):
    H = hidden
    Hp = pl.cdiv(H, lane) * lane
    GATE_ORDER = (0, 1, 3, 2)   # torch packing [i, f, g, o] -> ours [i, f, o, g]

    def pack_gate_cols(m):      # (R, 4H) torch order -> (R, 4Hp) [i, f, o, g]
        R = m.shape[0]
        out = jnp.zeros((R, 4 * Hp), m.dtype)
        for k, g in enumerate(GATE_ORDER):
            out = out.at[:, k * Hp: k * Hp + H].set(m[:, g * H: (g + 1) * H])
        return out

    def pack_gate_vec(v):       # (4H,) -> (4Hp,)
        out = jnp.zeros((4 * Hp,), v.dtype)
        for k, g in enumerate(GATE_ORDER):
            out = out.at[k * Hp: k * Hp + H].set(v[g * H: (g + 1) * H])
        return out

    def expand_bilstm_rows(m):  # (2H, C) -> (2Hp, C): fwd rows at 0:H, bwd at Hp:Hp+H
        cols = m.shape[1]
        out = jnp.zeros((2 * Hp, cols), m.dtype)
        out = out.at[:H, :].set(m[:H, :])
        out = out.at[Hp:Hp + H, :].set(m[H:, :])
        return out

    params = {}
    k_emb, key = jax.random.split(key)
    params["embed"] = jax.random.normal(k_emb, (vocab, embed_dim), jnp.float32) * 0.02

    scale = 1.0 / math.sqrt(hidden)
    layers = []
    for layer in range(num_layers):
        in_size = embed_dim if layer == 0 else 2 * hidden
        w_in_dirs, w_hh_dirs, b_dirs = [], [], []
        for _ in range(2):  # forward, backward
            key, k1, k2, k3, k4 = jax.random.split(key, 5)
            w_ih = jax.random.uniform(k1, (4 * hidden, in_size), jnp.float32, -scale, scale)
            w_hh = jax.random.uniform(k2, (4 * hidden, hidden), jnp.float32, -scale, scale)
            b_ih = jax.random.uniform(k3, (4 * hidden,), jnp.float32, -scale, scale)
            b_hh = jax.random.uniform(k4, (4 * hidden,), jnp.float32, -scale, scale)

            w_ih_t = w_ih.T                       # (IN, 4H)
            if layer > 0:
                w_ih_t = expand_bilstm_rows(w_ih_t)           # (2Hp, 4H) zero-padded rows
            w_in_dirs.append(pack_gate_cols(w_ih_t))          # (INx, 4Hp)

            w_hh_t = jnp.pad(w_hh.T, ((0, Hp - H), (0, 0)))   # (Hp, 4H) zero-padded rows
            w_hh_dirs.append(pack_gate_cols(w_hh_t))          # (Hp, 4Hp)

            b_dirs.append(pack_gate_vec(b_ih + b_hh))         # (4Hp,)

        layers.append({
            "w_in": jnp.concatenate(w_in_dirs, axis=1).astype(jnp.bfloat16),  # (INx, 8Hp)
            "w_hh": jnp.stack(w_hh_dirs).astype(jnp.bfloat16),                # (2, Hp, 4Hp)
            "b": jnp.concatenate(b_dirs),                                      # (8Hp,) f32
        })
    params["lstm"] = layers

    key, k_w, k_b = jax.random.split(key, 3)
    lscale = 1.0 / math.sqrt(2 * hidden)
    lin_w = jax.random.uniform(k_w, (num_labels, 2 * hidden), jnp.float32, -lscale, lscale)
    params["lin_w_t"] = expand_bilstm_rows(lin_w.T).astype(jnp.bfloat16)       # (2Hp, L)
    params["lin_b"] = jax.random.uniform(k_b, (num_labels,), jnp.float32, -lscale, lscale)
    return params


def lstm_model_forward(params, sentence):
    """sentence: (B, T) int32 token ids -> (B, T, num_labels)."""
    B, T = sentence.shape
    # TODO(synk): pretrained AutoModel transformer encoder replaced by a
    # deterministic embedding-table lookup (no checkpoint loading allowed).
    # Gather time-major directly: transpose the tiny (B, T) id matrix, not acts.
    x = jnp.take(params["embed"], sentence.T, axis=0)             # (T, B, E)

    Bp = max(16, ((B + 15) // 16) * 16)    # bf16 packs 16 sublanes per vreg
    if Bp != B:
        x = jnp.pad(x, ((0, 0), (0, Bp - B), (0, 0)))

    for layer in params["lstm"]:
        x = bilstm_layer(x, layer["w_in"], layer["w_hh"], layer["b"])
        # nn.LSTM inter-layer dropout is identity at inference; omitted.

    Tn, Bpn, F = x.shape
    num_labels = params["lin_b"].shape[0]
    feats = matmul_bias(x.reshape(Tn * Bpn, F), params["lin_w_t"], params["lin_b"],
                        out_dtype=jnp.float32)                    # (T*Bp, L)
    feats = feats.reshape(Tn, Bpn, num_labels)[:, :B]             # drop batch padding
    return jnp.transpose(feats, (1, 0, 2))                        # (B, T, num_labels)


if __name__ == "__main__":
    B, T = 2, 8
    VOCAB, EMBED = 100, 32
    NUM_LAYERS, HIDDEN, NUM_LABELS = 2, 32, 5

    key = jax.random.PRNGKey(0)
    k_params, k_sent = jax.random.split(key)
    params = init_params(k_params, VOCAB, EMBED, NUM_LAYERS, HIDDEN, NUM_LABELS)
    sentence = jax.random.randint(k_sent, (B, T), 0, VOCAB, dtype=jnp.int32)

    out = jax.jit(functools.partial(lstm_model_forward, params))(sentence)
    out = jax.block_until_ready(out)
    assert out.shape == (B, T, NUM_LABELS), out.shape
    assert bool(jnp.isfinite(out).all())
    print("KERNEL_OK")
</pallas_src>

<mosaic_0001>
module attributes {stable_mosaic.version = 11 : i64} {
  func.func @_matmul_bias_kernel(%arg0: i32, %arg1: memref<128x256xbf16, #tpu.memory_space<vmem>>, %arg2: memref<256x128xbf16, #tpu.memory_space<vmem>>, %arg3: memref<1x128xf32, #tpu.memory_space<vmem>>, %arg4: memref<128x128xf32, #tpu.memory_space<vmem>>) attributes {dimension_semantics = [#tpu.dimension_semantics<parallel>], iteration_bounds = array<i64: 1>, scalar_prefetch = 0 : i64, scratch_operands = 0 : i64, tpu.core_type = #tpu.core_type<tc>, window_params = [{transform_indices = @transform_0, window_bounds = array<i64: 128, 256>}, {pipeline_mode = #tpu.pipeline_mode<synchronous>, transform_indices = @transform_1, window_bounds = array<i64: 256, 128>}, {pipeline_mode = #tpu.pipeline_mode<synchronous>, transform_indices = @transform_2, window_bounds = array<i64: 1, 128>}, {transform_indices = @transform_3, window_bounds = array<i64: 128, 128>}]} {
    %c0 = arith.constant 0 : index
    %c0_0 = arith.constant 0 : index
    %0 = vector.load %arg1[%c0, %c0_0] : memref<128x256xbf16, #tpu.memory_space<vmem>>, vector<128x256xbf16>
    %c0_1 = arith.constant 0 : index
    %c0_2 = arith.constant 0 : index
    %1 = vector.load %arg2[%c0_1, %c0_2] : memref<256x128xbf16, #tpu.memory_space<vmem>>, vector<256x128xbf16>
    %cst = arith.constant dense<0.000000e+00> : vector<128x128xf32>
    %2 = tpu.matmul %0, %1, %cst {dimension_numbers = #tpu.dot_dimension_numbers<[1], [0], [0], [1], [0, 0, 1, 1], [], []>} : vector<128x256xbf16>, vector<256x128xbf16>, vector<128x128xf32> -> vector<128x128xf32>
    %c0_3 = arith.constant 0 : index
    %c0_4 = arith.constant 0 : index
    %3 = vector.load %arg3[%c0_3, %c0_4] : memref<1x128xf32, #tpu.memory_space<vmem>>, vector<1x128xf32>
    %4 = vector.broadcast %3 : vector<1x128xf32> to vector<128x128xf32>
    %5 = arith.addf %2, %4 : vector<128x128xf32>
    %c0_5 = arith.constant 0 : index
    %c0_6 = arith.constant 0 : index
    %6 = vector.load %arg4[%c0_5, %c0_6] : memref<128x128xf32, #tpu.memory_space<vmem>>, vector<128x128xf32>
    tpu.vector_store %arg4[%c0_5, %c0_6], %5 {strides = array<i32>} : memref<128x128xf32, #tpu.memory_space<vmem>>, vector<128x128xf32>,
    return
  }
  func.func @transform_0(%arg0: i32) -> (i32, i32) {
    %c0_i32 = arith.constant 0 : i32
    %c0_i32_0 = arith.constant 0 : i32
    return %arg0, %c0_i32 : i32, i32
  }
  func.func @transform_1(%arg0: i32) -> (i32, i32) {
    %c0_i32 = arith.constant 0 : i32
    %c0_i32_0 = arith.constant 0 : i32
    %c0_i32_1 = arith.constant 0 : i32
    return %c0_i32, %c0_i32_0 : i32, i32
  }
  func.func @transform_2(%arg0: i32) -> (i32, i32) {
    %c0_i32 = arith.constant 0 : i32
    %c0_i32_0 = arith.constant 0 : i32
    %c0_i32_1 = arith.constant 0 : i32
    return %c0_i32, %c0_i32_0 : i32, i32
  }
  func.func @transform_3(%arg0: i32) -> (i32, i32) {
    %c0_i32 = arith.constant 0 : i32
    %c0_i32_0 = arith.constant 0 : i32
    return %arg0, %c0_i32 : i32, i32
  }
}

module attributes {stable_mosaic.version = 11 : i64} {
  func.func @_matmul_bias_kernel(%arg0: i32, %arg1: memref<128x256xbf16, #tpu.memory_space<vmem>>, %arg2: memref<256x1024xbf16, #tpu.memory_space<vmem>>, %arg3: memref<1x1024xf32, #tpu.memory_space<vmem>>, %arg4: memref<128x1024xbf16, #tpu.memory_space<vmem>>) attributes {dimension_semantics = [#tpu.dimension_semantics<parallel>], iteration_bounds = array<i64: 1>, scalar_prefetch = 0 : i64, scratch_operands = 0 : i64, tpu.core_type = #tpu.core_type<tc>, window_params = [{transform_indices = @transform_0, window_bounds = array<i64: 128, 256>}, {pipeline_mode = #tpu.pipeline_mode<synchronous>, transform_indices = @transform_1, window_bounds = array<i64: 256, 1024>}, {pipeline_mode = #tpu.pipeline_mode<synchronous>, transform_indices = @transform_2, window_bounds = array<i64: 1, 1024>}, {transform_indices = @transform_3, window_bounds = array<i64: 128, 1024>}]} {
    %c0 = arith.constant 0 : index
    %c0_0 = arith.constant 0 : index
    %0 = vector.load %arg1[%c0, %c0_0] : memref<128x256xbf16, #tpu.memory_space<vmem>>, vector<128x256xbf16>
    %c0_1 = arith.constant 0 : index
    %c0_2 = arith.constant 0 : index
    %1 = vector.load %arg2[%c0_1, %c0_2] : memref<256x1024xbf16, #tpu.memory_space<vmem>>, vector<256x1024xbf16>
    %cst = arith.constant dense<0.000000e+00> : vector<128x1024xf32>
    %2 = tpu.matmul %0, %1, %cst {dimension_numbers = #tpu.dot_dimension_numbers<[1], [0], [0], [1], [0, 0, 1, 1], [], []>} : vector<128x256xbf16>, vector<256x1024xbf16>, vector<128x1024xf32> -> vector<128x1024xf32>
    %c0_3 = arith.constant 0 : index
    %c0_4 = arith.constant 0 : index
    %3 = vector.load %arg3[%c0_3, %c0_4] : memref<1x1024xf32, #tpu.memory_space<vmem>>, vector<1x1024xf32>
    %4 = vector.broadcast %3 : vector<1x1024xf32> to vector<128x1024xf32>
    %5 = arith.addf %2, %4 : vector<128x1024xf32>
    %6 = arith.truncf %5 : vector<128x1024xf32> to vector<128x1024xbf16>
    %c0_5 = arith.constant 0 : index
    %c0_6 = arith.constant 0 : index
    %7 = vector.load %arg4[%c0_5, %c0_6] : memref<128x1024xbf16, #tpu.memory_space<vmem>>, vector<128x1024xbf16>
    tpu.vector_store %arg4[%c0_5, %c0_6], %6 {strides = array<i32>} : memref<128x1024xbf16, #tpu.memory_space<vmem>>, vector<128x1024xbf16>,
    return
  }
  func.func @transform_0(%arg0: i32) -> (i32, i32) {
    %c0_i32 = arith.constant 0 : i32
    %c0_i32_0 = arith.constant 0 : i32
    return %arg0, %c0_i32 : i32, i32
  }
  func.func @transform_1(%arg0: i32) -> (i32, i32) {
    %c0_i32 = arith.constant 0 : i32
    %c0_i32_0 = arith.constant 0 : i32
    %c0_i32_1 = arith.constant 0 : i32
    return %c0_i32, %c0_i32_0 : i32, i32
  }
  func.func @transform_2(%arg0: i32) -> (i32, i32) {
    %c0_i32 = arith.constant 0 : i32
    %c0_i32_0 = arith.constant 0 : i32
    %c0_i32_1 = arith.constant 0 : i32
    return %c0_i32, %c0_i32_0 : i32, i32
  }
  func.func @transform_3(%arg0: i32) -> (i32, i32) {
    %c0_i32 = arith.constant 0 : i32
    %c0_i32_0 = arith.constant 0 : i32
    return %arg0, %c0_i32 : i32, i32
  }
}

module attributes {stable_mosaic.version = 11 : i64} {
  func.func @_matmul_bias_kernel(%arg0: i32, %arg1: memref<128x32xbf16, #tpu.memory_space<vmem>>, %arg2: memref<32x1024xbf16, #tpu.memory_space<vmem>>, %arg3: memref<1x1024xf32, #tpu.memory_space<vmem>>, %arg4: memref<128x1024xbf16, #tpu.memory_space<vmem>>) attributes {dimension_semantics = [#tpu.dimension_semantics<parallel>], iteration_bounds = array<i64: 1>, scalar_prefetch = 0 : i64, scratch_operands = 0 : i64, tpu.core_type = #tpu.core_type<tc>, window_params = [{transform_indices = @transform_0, window_bounds = array<i64: 128, 32>}, {pipeline_mode = #tpu.pipeline_mode<synchronous>, transform_indices = @transform_1, window_bounds = array<i64: 32, 1024>}, {pipeline_mode = #tpu.pipeline_mode<synchronous>, transform_indices = @transform_2, window_bounds = array<i64: 1, 1024>}, {transform_indices = @transform_3, window_bounds = array<i64: 128, 1024>}]} {
    %c0 = arith.constant 0 : index
    %c0_0 = arith.constant 0 : index
    %0 = vector.load %arg1[%c0, %c0_0] : memref<128x32xbf16, #tpu.memory_space<vmem>>, vector<128x32xbf16>
    %c0_1 = arith.constant 0 : index
    %c0_2 = arith.constant 0 : index
    %1 = vector.load %arg2[%c0_1, %c0_2] : memref<32x1024xbf16, #tpu.memory_space<vmem>>, vector<32x1024xbf16>
    %cst = arith.constant dense<0.000000e+00> : vector<128x1024xf32>
    %2 = tpu.matmul %0, %1, %cst {dimension_numbers = #tpu.dot_dimension_numbers<[1], [0], [0], [1], [0, 0, 1, 1], [], []>} : vector<128x32xbf16>, vector<32x1024xbf16>, vector<128x1024xf32> -> vector<128x1024xf32>
    %c0_3 = arith.constant 0 : index
    %c0_4 = arith.constant 0 : index
    %3 = vector.load %arg3[%c0_3, %c0_4] : memref<1x1024xf32, #tpu.memory_space<vmem>>, vector<1x1024xf32>
    %4 = vector.broadcast %3 : vector<1x1024xf32> to vector<128x1024xf32>
    %5 = arith.addf %2, %4 : vector<128x1024xf32>
    %6 = arith.truncf %5 : vector<128x1024xf32> to vector<128x1024xbf16>
    %c0_5 = arith.constant 0 : index
    %c0_6 = arith.constant 0 : index
    %7 = vector.load %arg4[%c0_5, %c0_6] : memref<128x1024xbf16, #tpu.memory_space<vmem>>, vector<128x1024xbf16>
    tpu.vector_store %arg4[%c0_5, %c0_6], %6 {strides = array<i32>} : memref<128x1024xbf16, #tpu.memory_space<vmem>>, vector<128x1024xbf16>,
    return
  }
  func.func @transform_0(%arg0: i32) -> (i32, i32) {
    %c0_i32 = arith.constant 0 : i32
    %c0_i32_0 = arith.constant 0 : i32
    return %arg0, %c0_i32 : i32, i32
  }
  func.func @transform_1(%arg0: i32) -> (i32, i32) {
    %c0_i32 = arith.constant 0 : i32
    %c0_i32_0 = arith.constant 0 : i32
    %c0_i32_1 = arith.constant 0 : i32
    return %c0_i32, %c0_i32_0 : i32, i32
  }
  func.func @transform_2(%arg0: i32) -> (i32, i32) {
    %c0_i32 = arith.constant 0 : i32
    %c0_i32_0 = arith.constant 0 : i32
    %c0_i32_1 = arith.constant 0 : i32
    return %c0_i32, %c0_i32_0 : i32, i32
  }
  func.func @transform_3(%arg0: i32) -> (i32, i32) {
    %c0_i32 = arith.constant 0 : i32
    %c0_i32_0 = arith.constant 0 : i32
    return %arg0, %c0_i32 : i32, i32
  }
}

module attributes {stable_mosaic.version = 11 : i64} {
  func.func @_bilstm_chunk_kernel(%arg0: i32, %arg1: i32, %arg2: memref<8x16x512xbf16, #tpu.memory_space<vmem>>, %arg3: memref<1x128x512xbf16, #tpu.memory_space<vmem>>, %arg4: memref<8x16x128xbf16, #tpu.memory_space<vmem>>, %arg5: memref<16x128xf32, #tpu.memory_space<vmem>>, %arg6: memref<16x128xf32, #tpu.memory_space<vmem>>) attributes {dimension_semantics = [#tpu.dimension_semantics<parallel>, #tpu.dimension_semantics<arbitrary>], iteration_bounds = array<i64: 2, 1>, scalar_prefetch = 0 : i64, scratch_operands = 2 : i64, tpu.core_type = #tpu.core_type<tc>, window_params = [{transform_indices = @transform_0, window_bounds = array<i64: 8, 16, 512>}, {transform_indices = @transform_1, window_bounds = array<i64: 1, 128, 512>}, {transform_indices = @transform_2, window_bounds = array<i64: 8, 16, 128>}]} {
    %c0_i32 = arith.constant 0 : i32
    %0 = arith.cmpi eq, %arg1, %c0_i32 : i32
    %1 = arith.extui %0 : i1 to i32
    %c0_i32_0 = arith.constant 0 : i32
    %2 = arith.cmpi ne, %1, %c0_i32_0 : i32
    scf.if %2 {
      %cst = arith.constant 0.000000e+00 : f32
      %6 = vector.broadcast %cst : f32 to vector<16x128xf32>
      %c0_5 = arith.constant 0 : index
      %c0_6 = arith.constant 0 : index
      %7 = vector.load %arg5[%c0_5, %c0_6] : memref<16x128xf32, #tpu.memory_space<vmem>>, vector<16x128xf32>
      tpu.vector_store %arg5[%c0_5, %c0_6], %6 {strides = array<i32>} : memref<16x128xf32, #tpu.memory_space<vmem>>, vector<16x128xf32>,
      %cst_7 = arith.constant 0.000000e+00 : f32
      %8 = vector.broadcast %cst_7 : f32 to vector<16x128xf32>
      %c0_8 = arith.constant 0 : index
      %c0_9 = arith.constant 0 : index
      %9 = vector.load %arg6[%c0_8, %c0_9] : memref<16x128xf32, #tpu.memory_space<vmem>>, vector<16x128xf32>
      tpu.vector_store %arg6[%c0_8, %c0_9], %8 {strides = array<i32>} : memref<16x128xf32, #tpu.memory_space<vmem>>, vector<16x128xf32>,
    } else {
    }
    %c0 = arith.constant 0 : index
    %c0_1 = arith.constant 0 : index
    %c0_2 = arith.constant 0 : index
    %3 = vector.load %arg3[%c0, %c0_1, %c0_2] : memref<1x128x512xbf16, #tpu.memory_space<vmem>>, vector<1x128x512xbf16>
    %4 = vector.shape_cast %3 : vector<1x128x512xbf16> to vector<128x512xbf16>
    %c0_i32_3 = arith.constant 0 : i32
    %c8_i32 = arith.constant 8 : i32
    %5 = arith.addi %c0_i32_3, %c8_i32 : i32
    %c1_i32 = arith.constant 1 : i32
    scf.for %arg7 = %c0_i32_3 to %5 step %c1_i32  : i32 {
      %c1_i32_5 = arith.constant 1 : i32
      %6 = arith.muli %arg7, %c1_i32_5 : i32
      %c0_i32_6 = arith.constant 0 : i32
      %7 = arith.addi %c0_i32_6, %6 : i32
      %c2_i32 = arith.constant 2 : i32
      %8 = arith.muli %c2_i32, %7 : i32
      %c7_i32 = arith.constant 7 : i32
      %9 = arith.subi %c7_i32, %8 : i32
      %10 = arith.muli %arg0, %9 : i32
      %11 = arith.addi %7, %10 : i32
      %c0_7 = arith.constant 0 : index
      %c0_8 = arith.constant 0 : index
      %12 = vector.load %arg5[%c0_7, %c0_8] : memref<16x128xf32, #tpu.memory_space<vmem>>, vector<16x128xf32>
      %c0_9 = arith.constant 0 : index
      %c0_10 = arith.constant 0 : index
      %13 = vector.load %arg6[%c0_9, %c0_10] : memref<16x128xf32, #tpu.memory_space<vmem>>, vector<16x128xf32>
      %14 = arith.truncf %12 : vector<16x128xf32> to vector<16x128xbf16>
      %cst = arith.constant dense<0.000000e+00> : vector<16x512xf32>
      %15 = tpu.matmul %14, %4, %cst {dimension_numbers = #tpu.dot_dimension_numbers<[1], [0], [0], [1], [0, 0, 1, 1], [], []>} : vector<16x128xbf16>, vector<128x512xbf16>, vector<16x512xf32> -> vector<16x512xf32>
      %16 = arith.index_cast %11 : i32 to index
      %c0_11 = arith.constant 0 : index
      %c0_12 = arith.constant 0 : index
      %17 = vector.load %arg2[%16, %c0_11, %c0_12] : memref<8x16x512xbf16, #tpu.memory_space<vmem>>, vector<1x16x512xbf16>
      %18 = vector.shape_cast %17 : vector<1x16x512xbf16> to vector<16x512xbf16>
      %19 = arith.extf %18 : vector<16x512xbf16> to vector<16x512xf32>
      %20 = arith.addf %15, %19 : vector<16x512xf32>
      %21 = vector.extract_strided_slice %20 {offsets = [0, 0], sizes = [16, 384], strides = [1, 1]} : vector<16x512xf32> to vector<16x384xf32>
      %22 = arith.negf %21 : vector<16x384xf32>
      %23 = math.exp %22 : vector<16x384xf32>
      %cst_13 = arith.constant 1.000000e+00 : f32
      %24 = vector.broadcast %cst_13 : f32 to vector<16x384xf32>
      %25 = arith.addf %24, %23 : vector<16x384xf32>
      %26 = arith.divf %24, %25 : vector<16x384xf32>
      %27 = vector.extract_strided_slice %20 {offsets = [0, 384], sizes = [16, 128], strides = [1, 1]} : vector<16x512xf32> to vector<16x128xf32>
      %28 = math.tanh %27 : vector<16x128xf32>
      %29 = vector.extract_strided_slice %26 {offsets = [0, 0], sizes = [16, 128], strides = [1, 1]} : vector<16x384xf32> to vector<16x128xf32>
      %30 = vector.extract_strided_slice %26 {offsets = [0, 128], sizes = [16, 128], strides = [1, 1]} : vector<16x384xf32> to vector<16x128xf32>
      %31 = vector.extract_strided_slice %26 {offsets = [0, 256], sizes = [16, 128], strides = [1, 1]} : vector<16x384xf32> to vector<16x128xf32>
      %32 = arith.mulf %30, %13 : vector<16x128xf32>
      %33 = arith.mulf %29, %28 : vector<16x128xf32>
      %34 = arith.addf %32, %33 : vector<16x128xf32>
      %35 = math.tanh %34 : vector<16x128xf32>
      %36 = arith.mulf %31, %35 : vector<16x128xf32>
      %c0_14 = arith.constant 0 : index
      %c0_15 = arith.constant 0 : index
      %37 = vector.load %arg5[%c0_14, %c0_15] : memref<16x128xf32, #tpu.memory_space<vmem>>, vector<16x128xf32>
      tpu.vector_store %arg5[%c0_14, %c0_15], %36 {strides = array<i32>} : memref<16x128xf32, #tpu.memory_space<vmem>>, vector<16x128xf32>,
      %c0_16 = arith.constant 0 : index
      %c0_17 = arith.constant 0 : index
      %38 = vector.load %arg6[%c0_16, %c0_17] : memref<16x128xf32, #tpu.memory_space<vmem>>, vector<16x128xf32>
      tpu.vector_store %arg6[%c0_16, %c0_17], %34 {strides = array<i32>} : memref<16x128xf32, #tpu.memory_space<vmem>>, vector<16x128xf32>,
      %39 = arith.truncf %36 : vector<16x128xf32> to vector<16x128xbf16>
      %40 = arith.index_cast %11 : i32 to index
      %c0_18 = arith.constant 0 : index
      %c0_19 = arith.constant 0 : index
      %41 = vector.load %arg4[%40, %c0_18, %c0_19] : memref<8x16x128xbf16, #tpu.memory_space<vmem>>, vector<1x16x128xbf16>
      %42 = vector.shape_cast %41 : vector<1x16x128xbf16> to vector<16x128xbf16>
      %43 = vector.shape_cast %39 : vector<16x128xbf16> to vector<1x16x128xbf16>
      tpu.vector_store %arg4[%40, %c0_18, %c0_19], %43 {strides = array<i32>} : memref<8x16x128xbf16, #tpu.memory_space<vmem>>, vector<1x16x128xbf16>,
    }
    %c8_i32_4 = arith.constant 8 : i32
    return
  }
  func.func @transform_0(%arg0: i32, %arg1: i32) -> (i32, i32, i32) {
    %c2_i32 = arith.constant 2 : i32
    %0 = arith.muli %c2_i32, %arg1 : i32
    %c0_i32 = arith.constant 0 : i32
    %1 = arith.subi %c0_i32, %0 : i32
    %2 = arith.muli %arg0, %1 : i32
    %3 = arith.addi %arg1, %2 : i32
    %c0_i32_0 = arith.constant 0 : i32
    %c0_i32_1 = arith.constant 0 : i32
    return %3, %c0_i32_0, %arg0 : i32, i32, i32
  }
  func.func @transform_1(%arg0: i32, %arg1: i32) -> (i32, i32, i32) {
    %c0_i32 = arith.constant 0 : i32
    %c0_i32_0 = arith.constant 0 : i32
    %c0_i32_1 = arith.constant 0 : i32
    return %arg0, %c0_i32, %c0_i32_0 : i32, i32, i32
  }
  func.func @transform_2(%arg0: i32, %arg1: i32) -> (i32, i32, i32) {
    %c2_i32 = arith.constant 2 : i32
    %0 = arith.muli %c2_i32, %arg1 : i32
    %c0_i32 = arith.constant 0 : i32
    %1 = arith.subi %c0_i32, %0 : i32
    %2 = arith.muli %arg0, %1 : i32
    %3 = arith.addi %arg1, %2 : i32
    %c0_i32_0 = arith.constant 0 : i32
    %c0_i32_1 = arith.constant 0 : i32
    return %3, %c0_i32_0, %arg0 : i32, i32, i32
  }
}

</mosaic_0001>

<bundles_post_ra>
// kernel: lstm_model_forward.9
= control target key start
LH: loop header
LB: loop body
LE: loop exit
PB: predicated region body
PF: predicated region fallthrough
CT: control target
= control target key end

     0   :  { %s770_s1 = inlined_call_operand.vmem [shape: bf16[256,128], index: 1, kind: input, shape index: {}]   ;;  %s771_s2 = inlined_call_operand.vmem [shape: f32[1,128], index: 2, kind: input, shape index: {}]   ;;  %s772_s0 = inlined_call_operand.vmem [shape: bf16[128,256], index: 0, kind: input, shape index: {}]   ;;  %s773_s3 = inlined_call_operand.vmem [shape: f32[128,128], index: 3, kind: output, shape index: {}]  }
   0x1   :  { %v511_v0 = vld [vmem:[%s770_s1 + $0x38] sm:$0xff]  ;;  %v510_v2 = vld [vmem:[%s770_s1 + $0x30] sm:$0xff]  ;;  %v509_v4 = vld [vmem:[%s770_s1 + $0x28] sm:$0xff] }
   0x2   :  { %v519_v1 = vld [vmem:[%s770_s1 + $0x78] sm:$0xff]  ;;  %242 = vmatpush.bf16.msra.mxu0 %v511_v0  ;;  %520 = vmatpush.bf16.msra.mxu2 %v511_v0  ;;  %v518_v3 = vld [vmem:[%s770_s1 + $0x70] sm:$0xff]  ;;  %v517_v5 = vld [vmem:[%s770_s1 + $0x68] sm:$0xff] }
   0x3   :  { %291 = vmatpush.bf16.msra.mxu1 %v519_v1  ;;  %528 = vmatpush.bf16.msra.mxu3 %v519_v1  ;;  %v508_v6 = vld [vmem:[%s770_s1 + $0x20] sm:$0xff]  ;;  %v507_v8 = vld [vmem:[%s770_s1 + $0x18] sm:$0xff]  ;;  %v506_v10 = vld [vmem:[%s770_s1 + $0x10] sm:$0xff] }
   0x4   :  { %v516_v7 = vld [vmem:[%s770_s1 + $0x60] sm:$0xff]  ;;  %v515_v9 = vld [vmem:[%s770_s1 + $0x58] sm:$0xff]  ;;  %v514_v11 = vld [vmem:[%s770_s1 + $0x50] sm:$0xff] }
   0x5   :  { %v505_v12 = vld [vmem:[%s770_s1 + $0x8] sm:$0xff]  ;;  %v504_v14 = vld [vmem:[%s770_s1] sm:$0xff]  ;;  %v370_v28 = vld [vmem:[%s772_s0 + $0x10] sm:$0xf] }
   0x6   :  { %243 = vmatpush.bf16.msra.mxu0 %v510_v2  ;;  %521 = vmatpush.bf16.msra.mxu2 %v510_v2  ;;  %v513_v13 = vld [vmem:[%s770_s1 + $0x48] sm:$0xff]  ;;  %v512_v15 = vld [vmem:[%s770_s1 + $0x40] sm:$0xff]  ;;  %v491_v29 = vld [vmem:[%s772_s0 + $0x14] sm:$0xf0] }
   0x7   :  { %292 = vmatpush.bf16.msra.mxu1 %v518_v3  ;;  %529 = vmatpush.bf16.msra.mxu3 %v518_v3  ;;  %v362_v16 = vld [vmem:[%s772_s0] sm:$0xf]  ;;  %v489_v17 = vld [vmem:[%s772_s0 + $0x4] sm:$0xf0]  ;;  %v488_v20 = vld [vmem:[%s772_s0 + $0x4] sm:$0xf]  ;;  %v371_v36 = vor.u32 %v491_v29, %v370_v28 }
   0x8   :  { %v394_v18 = vld [vmem:[%s772_s0 + $0x40] sm:$0xf]  ;;  %v497_v19 = vld [vmem:[%s772_s0 + $0x44] sm:$0xf0]  ;;  %v364_v21 = vld [vmem:[%s772_s0 + $0x8] sm:$0xf0]  ;;  %v363_v24 = vor.u32 %v489_v17, %v362_v16 }
   0x9   :  { %v496_v22 = vld [vmem:[%s772_s0 + $0x44] sm:$0xf]  ;;  %v396_v23 = vld [vmem:[%s772_s0 + $0x48] sm:$0xf0]  ;;  %v395_v25 = vor.u32 %v497_v19, %v394_v18  ;;  %v367_v26 = vor.u32 %v488_v20, %v364_v21  ;;  %v402_v30 = vld [vmem:[%s772_s0 + $0x50] sm:$0xf] }
   0xa   :  { %244 = vmatpush.bf16.msra.mxu0 %v509_v4  ;;  %522 = vmatpush.bf16.msra.mxu2 %v509_v4  ;;  %v399_v27 = vor.u32 %v496_v22, %v396_v23  ;;  %v499_v31 = vld [vmem:[%s772_s0 + $0x54] sm:$0xf0]  ;;  %v490_v32 = vld [vmem:[%s772_s0 + $0x14] sm:$0xf]  ;;  %v372_v33 = vld [vmem:[%s772_s0 + $0x18] sm:$0xf0] }
   0xb   :  { %293 = vmatpush.bf16.msra.mxu1 %v517_v5  ;;  %530 = vmatpush.bf16.msra.mxu3 %v517_v5  ;;  %v498_v34 = vld [vmem:[%s772_s0 + $0x54] sm:$0xf]  ;;  %v404_v35 = vld [vmem:[%s772_s0 + $0x58] sm:$0xf0]  ;;  %v403_v37 = vor.u32 %v499_v31, %v402_v30  ;;  %v375_v38 = vor.u32 %v490_v32, %v372_v33  ;;  %v378_v40 = vld [vmem:[%s772_s0 + $0x20] sm:$0xf] }
   0xc   :  { %v407_v39 = vor.u32 %v498_v34, %v404_v35  ;;  %v493_v41 = vld [vmem:[%s772_s0 + $0x24] sm:$0xf0]  ;;  %v410_v42 = vld [vmem:[%s772_s0 + $0x60] sm:$0xf]  ;;  %v492_v44 = vld [vmem:[%s772_s0 + $0x24] sm:$0xf] }
   0xd   :  { %v501_v43 = vld [vmem:[%s772_s0 + $0x64] sm:$0xf0]  ;;  %v380_v45 = vld [vmem:[%s772_s0 + $0x28] sm:$0xf0]  ;;  %v500_v46 = vld [vmem:[%s772_s0 + $0x64] sm:$0xf]  ;;  %v379_v48 = vor.u32 %v493_v41, %v378_v40 }
   0xe   :  { %245 = vmatpush.bf16.msra.mxu0 %v508_v6  ;;  %523 = vmatpush.bf16.msra.mxu2 %v508_v6  ;;  %v412_v47 = vld [vmem:[%s772_s0 + $0x68] sm:$0xf0]  ;;  %v411_v49 = vor.u32 %v501_v43, %v410_v42  ;;  %v383_v50 = vor.u32 %v492_v44, %v380_v45  ;;  %v386_v52 = vld [vmem:[%s772_s0 + $0x30] sm:$0xf]  ;;  %v495_v53 = vld [vmem:[%s772_s0 + $0x34] sm:$0xf0] }
   0xf   :  { %294 = vmatpush.bf16.msra.mxu1 %v516_v7  ;;  %531 = vmatpush.bf16.msra.mxu3 %v516_v7  ;;  %v415_v51 = vor.u32 %v500_v46, %v412_v47  ;;  %v418_v54 = vld [vmem:[%s772_s0 + $0x70] sm:$0xf]  ;;  %v503_v55 = vld [vmem:[%s772_s0 + $0x74] sm:$0xf0]  ;;  %v494_v56 = vld [vmem:[%s772_s0 + $0x34] sm:$0xf]  ;;  %v387_v60 = vor.u32 %v495_v53, %v386_v52 }
  0x10   :  { %v388_v57 = vld [vmem:[%s772_s0 + $0x38] sm:$0xf0]  ;;  %v502_v58 = vld [vmem:[%s772_s0 + $0x74] sm:$0xf]  ;;  %v419_v61 = vor.u32 %v503_v55, %v418_v54  ;;  %v704_v0 = vld [vmem:[%s771_s2] ss:$0 sm:$0xff] }
  0x11   :  { %v420_v59 = vld [vmem:[%s772_s0 + $0x78] sm:$0xf0]  ;;  %v391_v62 = vor.u32 %v494_v56, %v388_v57 }
  0x12   :  { %246 = vmatpush.bf16.msra.mxu0 %v507_v8  ;;  %524 = vmatpush.bf16.msra.mxu2 %v507_v8  ;;  %v423_v63 = vor.u32 %v502_v58, %v420_v59 }
  0x13   :  { %295 = vmatpush.bf16.msra.mxu1 %v515_v9  ;;  %532 = vmatpush.bf16.msra.mxu3 %v515_v9 }
  0x16   :  { %247 = vmatpush.bf16.msra.mxu0 %v506_v10  ;;  %525 = vmatpush.bf16.msra.mxu2 %v506_v10 }
  0x17   :  { %296 = vmatpush.bf16.msra.mxu1 %v514_v11  ;;  %533 = vmatpush.bf16.msra.mxu3 %v514_v11 }
  0x1a   :  { %248 = vmatpush.bf16.msra.mxu0 %v505_v12  ;;  %526 = vmatpush.bf16.msra.mxu2 %v505_v12 }
  0x1b   :  { %297 = vmatpush.bf16.msra.mxu1 %v513_v13  ;;  %534 = vmatpush.bf16.msra.mxu3 %v513_v13 }
  0x1e   :  { %249 = vmatpush.bf16.msra.mxu0 %v504_v14  ;;  %527 = vmatpush.bf16.msra.mxu2 %v504_v14 }
  0x1f   :  { %298 = vmatpush.bf16.msra.mxu1 %v512_v15  ;;  %535 = vmatpush.bf16.msra.mxu3 %v512_v15 }
  0x21   :  { %250 = vmatmul.bf16.vlgmr.msra.gmra.mxu0 %v363_v24  ;;  %270 = vmatmul.bf16.vlgmr.msra.gmra.mxu2 %v395_v25 }
  0x22   :  { %299 = vmatmul.bf16.vlgmr.msra.gmra.mxu1 %v367_v26  ;;  %319 = vmatmul.bf16.vlgmr.msra.gmra.mxu3 %v399_v27 }
  0x31   :  { %255 = vmatmul.bf16.gmra.mxu0 %v371_v36  ;;  %275 = vmatmul.bf16.gmra.mxu2 %v403_v37 }
  0x32   :  { %304 = vmatmul.bf16.gmra.mxu1 %v375_v38  ;;  %324 = vmatmul.bf16.gmra.mxu3 %v407_v39 }
  0x41   :  { %260 = vmatmul.bf16.gmra.mxu0 %v379_v48  ;;  %280 = vmatmul.bf16.gmra.mxu2 %v411_v49 }
  0x42   :  { %309 = vmatmul.bf16.gmra.mxu1 %v383_v50  ;;  %329 = vmatmul.bf16.gmra.mxu3 %v415_v51 }
  0x51   :  { %265 = vmatmul.bf16.gmra.mxu0 %v387_v60  ;;  %285 = vmatmul.bf16.gmra.mxu2 %v419_v61 }
  0x52   :  { %314 = vmatmul.bf16.gmra.mxu1 %v391_v62  ;;  %334 = vmatmul.bf16.gmra.mxu3 %v423_v63 }
  0x9e   :  { %v251_v1 = vpop.f32.mrf.mxu0 }
  0x9f   :  { %v252_v2 = vadd.f32 %v704_v0, %v251_v1  ;;  %v300_v3 = vpop.f32.mrf.mxu1 }
  0xa1   :  { %v301_v4 = vadd.f32 %v300_v3, %v252_v2 }
  0xa3   :  { %340 = vst [vmem:[%s773_s3] sm:$0xff] %v301_v4 }
  0xa4   :  { %v271_v5 = vpop.f32.mrf.mxu2 }
  0xa5   :  { %v272_v6 = vadd.f32 %v704_v0, %v271_v5  ;;  %v320_v7 = vpop.f32.mrf.mxu3 }
  0xa6   :  { %v253_v8 = vpop.f32.mrf.mxu0 }
  0xa7   :  { %v321_v9 = vadd.f32 %v320_v7, %v272_v6  ;;  %v254_v10 = vadd.f32 %v704_v0, %v253_v8  ;;  %v302_v11 = vpop.f32.mrf.mxu1 }
  0xa9   :  { %348 = vst [vmem:[%s773_s3 + $0x40] sm:$0xff] %v321_v9  ;;  %v303_v12 = vadd.f32 %v302_v11, %v254_v10 }
  0xab   :  { %341 = vst [vmem:[%s773_s3 + $0x8] sm:$0xff] %v303_v12 }
  0xac   :  { %v273_v13 = vpop.f32.mrf.mxu2 }
  0xad   :  { %v274_v14 = vadd.f32 %v704_v0, %v273_v13  ;;  %v322_v15 = vpop.f32.mrf.mxu3 }
  0xae   :  { %v256_v16 = vpop.f32.mrf.mxu0 }
  0xaf   :  { %v323_v17 = vadd.f32 %v322_v15, %v274_v14  ;;  %v257_v18 = vadd.f32 %v704_v0, %v256_v16  ;;  %v305_v19 = vpop.f32.mrf.mxu1 }
  0xb1   :  { %349 = vst [vmem:[%s773_s3 + $0x48] sm:$0xff] %v323_v17  ;;  %v306_v20 = vadd.f32 %v305_v19, %v257_v18 }
  0xb3   :  { %342 = vst [vmem:[%s773_s3 + $0x10] sm:$0xff] %v306_v20 }
  0xb4   :  { %v276_v21 = vpop.f32.mrf.mxu2 }
  0xb5   :  { %v277_v22 = vadd.f32 %v704_v0, %v276_v21  ;;  %v325_v23 = vpop.f32.mrf.mxu3 }
  0xb6   :  { %v258_v24 = vpop.f32.mrf.mxu0 }
  0xb7   :  { %v326_v25 = vadd.f32 %v325_v23, %v277_v22  ;;  %v259_v26 = vadd.f32 %v704_v0, %v258_v24  ;;  %v307_v27 = vpop.f32.mrf.mxu1 }
  0xb9   :  { %350 = vst [vmem:[%s773_s3 + $0x50] sm:$0xff] %v326_v25  ;;  %v308_v28 = vadd.f32 %v307_v27, %v259_v26 }
  0xbb   :  { %343 = vst [vmem:[%s773_s3 + $0x18] sm:$0xff] %v308_v28 }
  0xbc   :  { %v278_v29 = vpop.f32.mrf.mxu2 }
  0xbd   :  { %v279_v30 = vadd.f32 %v704_v0, %v278_v29  ;;  %v327_v31 = vpop.f32.mrf.mxu3 }
  0xbe   :  { %v261_v32 = vpop.f32.mrf.mxu0 }
  0xbf   :  { %v328_v33 = vadd.f32 %v327_v31, %v279_v30  ;;  %v262_v34 = vadd.f32 %v704_v0, %v261_v32  ;;  %v310_v35 = vpop.f32.mrf.mxu1 }
  0xc1   :  { %351 = vst [vmem:[%s773_s3 + $0x58] sm:$0xff] %v328_v33  ;;  %v311_v36 = vadd.f32 %v310_v35, %v262_v34 }
  0xc3   :  { %344 = vst [vmem:[%s773_s3 + $0x20] sm:$0xff] %v311_v36 }
  0xc4   :  { %v281_v37 = vpop.f32.mrf.mxu2 }
  0xc5   :  { %v282_v38 = vadd.f32 %v704_v0, %v281_v37  ;;  %v330_v39 = vpop.f32.mrf.mxu3 }
  0xc6   :  { %v263_v40 = vpop.f32.mrf.mxu0 }
  0xc7   :  { %v331_v41 = vadd.f32 %v330_v39, %v282_v38  ;;  %v264_v42 = vadd.f32 %v704_v0, %v263_v40  ;;  %v312_v43 = vpop.f32.mrf.mxu1 }
  0xc9   :  { %352 = vst [vmem:[%s773_s3 + $0x60] sm:$0xff] %v331_v41  ;;  %v313_v44 = vadd.f32 %v312_v43, %v264_v42 }
  0xcb   :  { %345 = vst [vmem:[%s773_s3 + $0x28] sm:$0xff] %v313_v44 }
  0xcc   :  { %v283_v45 = vpop.f32.mrf.mxu2 }
  0xcd   :  { %v284_v46 = vadd.f32 %v704_v0, %v283_v45  ;;  %v332_v47 = vpop.f32.mrf.mxu3 }
  0xce   :  { %v266_v48 = vpop.f32.mrf.mxu0 }
  0xcf   :  { %v333_v49 = vadd.f32 %v332_v47, %v284_v46  ;;  %v267_v50 = vadd.f32 %v704_v0, %v266_v48  ;;  %v315_v51 = vpop.f32.mrf.mxu1 }
  0xd1   :  { %353 = vst [vmem:[%s773_s3 + $0x68] sm:$0xff] %v333_v49  ;;  %v316_v52 = vadd.f32 %v315_v51, %v267_v50 }
  0xd3   :  { %346 = vst [vmem:[%s773_s3 + $0x30] sm:$0xff] %v316_v52 }
  0xd4   :  { %v286_v53 = vpop.f32.mrf.mxu2 }
  0xd5   :  { %v287_v54 = vadd.f32 %v704_v0, %v286_v53  ;;  %v335_v55 = vpop.f32.mrf.mxu3 }
  0xd6   :  { %v268_v56 = vpop.f32.mrf.mxu0 }
  0xd7   :  { %v336_v57 = vadd.f32 %v335_v55, %v287_v54  ;;  %v269_v58 = vadd.f32 %v704_v0, %v268_v56  ;;  %v317_v59 = vpop.f32.mrf.mxu1 }
  0xd9   :  { %354 = vst [vmem:[%s773_s3 + $0x70] sm:$0xff] %v336_v57  ;;  %v318_v60 = vadd.f32 %v317_v59, %v269_v58 }
  0xdb   :  { %347 = vst [vmem:[%s773_s3 + $0x38] sm:$0xff] %v318_v60 }
  0xdc   :  { %v288_v61 = vpop.f32.mrf.mxu2 }
  0xdd   :  { %v289_v62 = vadd.f32 %v704_v0, %v288_v61  ;;  %v337_v63 = vpop.f32.mrf.mxu3 }
  0xdf   :  { %v338_v1 = vadd.f32 %v337_v63, %v289_v62 }
  0xe1   :  { %355 = vst [vmem:[%s773_s3 + $0x78] sm:$0xff] %v338_v1 }

// kernel: lstm_model_forward.6
= control target key start
LH: loop header
LB: loop body
LE: loop exit
PB: predicated region body
PF: predicated region fallthrough
CT: control target
= control target key end

     0   :  { %7 = vsyncpa [#allocation6], 0  ;;  %s1871_s0 = inlined_call_operand.vmem [shape: bf16[8,16,1024], index: 0, kind: input, shape index: {}]   ;;  %s1872_s1 = inlined_call_operand.hbm [shape: bf16[2,128,512], index: 1, kind: input, shape index: {}]   ;;  %s1873_s2 = inlined_call_operand.vmem [shape: bf16[8,16,256], index: 2, kind: output, shape index: {}]  }
   0x1   :  { %9 = vsyncpa [#allocation6 + $0x1], 0  ;;  %s1355_s9 = smov 0   ;;  %s1357_s10 = smov 0  }
   0x2   :  { %s1359_s11 = smov 0   ;;  %s1361_s12 = smov 0  }
   0x3   :  { %s1363_s13 = smov 0   ;;  %s1365_s14 = smov 0  }
   0x4 LB: > { %s958_s15 = sadd.s32 4294967295, %s1331_s14   ;;  %s27_s16 = sadd.s32 1, %s1327_s13  ;;  %s1331_s14 = sphi %s1365_s14, %s15_s14   ;;  %s1327_s13 = sphi %s1363_s13, %s1943_s13   ;;  %s1323_s12 = sphi %s1361_s12, %s1942_s12   ;;  %s1319_s11 = sphi %s1359_s11, %s1941_s11   ;;  %s1315_s10 = sphi %s1357_s10, %s1940_s10   ;;  %s1311_s9 = sphi %s1355_s9, %s1939_s9  }
   0x5   : > { %p29_p0 = scmp.ge.s32.totalorder %s27_s16, 2  ;;  %s44_s17 = sadd.s32 1, %s1319_s11 }
   0x6   : > { %p51_p1 = scmp.ne.s32.totalorder %s1319_s11, %s1315_s10  ;;  %p52_p2 = scmp.eq.s32.totalorder %s1331_s14, 0 }
   0x7   : > { %s1945_s16 = smov (%p29_p0, %s27_s16), 0  ;;  %p83_p4 = scmp.ne.s32.totalorder %s1315_s10, %s1311_s9 }
   0x8   : > { %p1391_p3 = por %p52_p2, %p51_p1  ;;  %s40_s19 = ssub.s32 %s1327_s13, %s1945_s16 }
   0x9   : > { %p84_p5 = scmp.eq.s32.totalorder %s958_s15, 0  ;;  %p42_p6 = scmp.eq.s32.totalorder %s40_s19, 0 }
   0xa   : > { %p117_p7 = scmp.eq.s32.totalorder %s958_s15, 1  ;;  %p961_p10 = scmp.ge.s32.totalorder %s1331_s14, 2 }
   0xb   : > { %p1398_p8 = por %p84_p5, %p83_p4 }
   0xc   : > { %s1403_s21 = scalar_select %p42_p6, %s1319_s11, %s44_s17  }
   0xd   : > { %p1405_p9 = por %p117_p7, %p51_p1  ;;  %139 = sbr.rel (%p961_p10) target bundleno = 60 (0x3c), region = 16 }
  0x12   : > { %142 = sbr.rel (!%p1391_p3) target bundleno = 54 (0x36), region = 20  ;;  %s144_s23 = sand.u32 (%p1391_p3), 1, %s1319_s11  }
  0x13   : > { %s1115_s24 = sshll.u32 (%p1391_p3), %s1327_s13, 4  ;;  %s962_s25 = sshll.u32 (%p1391_p3), %s144_s23, 8 }
  0x14   : > { %s1417_s28 = scalar_lea.vmem (%p1391_p3), %s1871_s0, %s1115_s24  ;;  %s1422_s29 = scalar_lea.vmem (%p1391_p3), [#allocation4], %s962_s25 }
  0x15   : > { %v169_v0 = vld [vmem:[%s1417_s28] sm:$0xff] (%p1391_p3)  ;;  %v171_v1 = vld [vmem:[%s1417_s28 + $0x8] sm:$0xff] (%p1391_p3) }
  0x16   : > { %v173_v2 = vld [vmem:[%s1417_s28 + $0x20] sm:$0xff] (%p1391_p3)  ;;  %170 = vst [vmem:[%s1422_s29] sm:$0xff] (%p1391_p3), %v169_v0  ;;  %v175_v3 = vld [vmem:[%s1417_s28 + $0x28] sm:$0xff] (%p1391_p3) }
  0x17   : > { %172 = vst [vmem:[%s1422_s29 + $0x8] sm:$0xff] %v171_v1  ;;  %v177_v4 = vld [vmem:[%s1417_s28 + $0x40] sm:$0xff]  ;;  %v179_v5 = vld [vmem:[%s1417_s28 + $0x48] sm:$0xff] }
  0x18   : > { %174 = vst [vmem:[%s1422_s29 + $0x10] sm:$0xff] %v173_v2  ;;  %v181_v6 = vld [vmem:[%s1417_s28 + $0x60] sm:$0xff]  ;;  %v183_v7 = vld [vmem:[%s1417_s28 + $0x68] sm:$0xff] }
  0x19   : > { %176 = vst [vmem:[%s1422_s29 + $0x18] sm:$0xff] %v175_v3  ;;  %v185_v8 = vld [vmem:[%s1417_s28 + $0x80] sm:$0xff]  ;;  %v187_v9 = vld [vmem:[%s1417_s28 + $0x88] sm:$0xff] }
  0x1a   : > { %178 = vst [vmem:[%s1422_s29 + $0x20] sm:$0xff] %v177_v4  ;;  %v189_v10 = vld [vmem:[%s1417_s28 + $0xa0] sm:$0xff]  ;;  %v191_v11 = vld [vmem:[%s1417_s28 + $0xa8] sm:$0xff] }
  0x1b   : > { %180 = vst [vmem:[%s1422_s29 + $0x28] sm:$0xff] %v179_v5  ;;  %v193_v12 = vld [vmem:[%s1417_s28 + $0xc0] sm:$0xff]  ;;  %v195_v13 = vld [vmem:[%s1417_s28 + $0xc8] sm:$0xff] }
  0x1c   : > { %182 = vst [vmem:[%s1422_s29 + $0x30] sm:$0xff] %v181_v6  ;;  %v197_v14 = vld [vmem:[%s1417_s28 + $0xe0] sm:$0xff]  ;;  %v199_v15 = vld [vmem:[%s1417_s28 + $0xe8] sm:$0xff] }
  0x1d   : > { %184 = vst [vmem:[%s1422_s29 + $0x38] sm:$0xff] %v183_v7  ;;  %v201_v16 = vld [vmem:[%s1417_s28 + $0x100] sm:$0xff]  ;;  %v203_v17 = vld [vmem:[%s1417_s28 + $0x108] sm:$0xff] }
  0x1e   : > { %186 = vst [vmem:[%s1422_s29 + $0x40] sm:$0xff] %v185_v8  ;;  %v205_v18 = vld [vmem:[%s1417_s28 + $0x120] sm:$0xff]  ;;  %v207_v19 = vld [vmem:[%s1417_s28 + $0x128] sm:$0xff] }
  0x1f   : > { %188 = vst [vmem:[%s1422_s29 + $0x48] sm:$0xff] %v187_v9  ;;  %v209_v20 = vld [vmem:[%s1417_s28 + $0x140] sm:$0xff]  ;;  %v211_v21 = vld [vmem:[%s1417_s28 + $0x148] sm:$0xff] }
  0x20   : > { %190 = vst [vmem:[%s1422_s29 + $0x50] sm:$0xff] %v189_v10  ;;  %v213_v22 = vld [vmem:[%s1417_s28 + $0x160] sm:$0xff]  ;;  %v215_v23 = vld [vmem:[%s1417_s28 + $0x168] sm:$0xff] }
  0x21   : > { %192 = vst [vmem:[%s1422_s29 + $0x58] sm:$0xff] %v191_v11  ;;  %v217_v24 = vld [vmem:[%s1417_s28 + $0x180] sm:$0xff]  ;;  %v219_v25 = vld [vmem:[%s1417_s28 + $0x188] sm:$0xff] }
  0x22   : > { %194 = vst [vmem:[%s1422_s29 + $0x60] sm:$0xff] %v193_v12  ;;  %v221_v26 = vld [vmem:[%s1417_s28 + $0x1a0] sm:$0xff]  ;;  %v223_v27 = vld [vmem:[%s1417_s28 + $0x1a8] sm:$0xff] }
  0x23   : > { %196 = vst [vmem:[%s1422_s29 + $0x68] sm:$0xff] %v195_v13  ;;  %v225_v28 = vld [vmem:[%s1417_s28 + $0x1c0] sm:$0xff]  ;;  %v227_v29 = vld [vmem:[%s1417_s28 + $0x1c8] sm:$0xff] }
  0x24   : > { %198 = vst [vmem:[%s1422_s29 + $0x70] sm:$0xff] %v197_v14  ;;  %v229_v30 = vld [vmem:[%s1417_s28 + $0x1e0] sm:$0xff]  ;;  %v231_v31 = vld [vmem:[%s1417_s28 + $0x1e8] sm:$0xff] }
  0x25   : > { %200 = vst [vmem:[%s1422_s29 + $0x78] sm:$0xff] %v199_v15 }
  0x26   : > { %202 = vst [vmem:[%s1422_s29 + $0x80] sm:$0xff] %v201_v16 }
  0x27   : > { %204 = vst [vmem:[%s1422_s29 + $0x88] sm:$0xff] %v203_v17 }
  0x28   : > { %206 = vst [vmem:[%s1422_s29 + $0x90] sm:$0xff] %v205_v18 }
  0x29   : > { %208 = vst [vmem:[%s1422_s29 + $0x98] sm:$0xff] %v207_v19 }
  0x2a   : > { %210 = vst [vmem:[%s1422_s29 + $0xa0] sm:$0xff] %v209_v20 }
  0x2b   : > { %212 = vst [vmem:[%s1422_s29 + $0xa8] sm:$0xff] %v211_v21 }
  0x2c   : > { %214 = vst [vmem:[%s1422_s29 + $0xb0] sm:$0xff] %v213_v22 }
  0x2d   : > { %216 = vst [vmem:[%s1422_s29 + $0xb8] sm:$0xff] %v215_v23 }
  0x2e   : > { %218 = vst [vmem:[%s1422_s29 + $0xc0] sm:$0xff] %v217_v24 }
  0x2f   : > { %220 = vst [vmem:[%s1422_s29 + $0xc8] sm:$0xff] %v219_v25 }
  0x30   : > { %222 = vst [vmem:[%s1422_s29 + $0xd0] sm:$0xff] %v221_v26 }
  0x31   : > { %224 = vst [vmem:[%s1422_s29 + $0xd8] sm:$0xff] %v223_v27 }
  0x32   : > { %226 = vst [vmem:[%s1422_s29 + $0xe0] sm:$0xff] %v225_v28 }
  0x33   : > { %228 = vst [vmem:[%s1422_s29 + $0xe8] sm:$0xff] %v227_v29 }
  0x34   : > { %230 = vst [vmem:[%s1422_s29 + $0xf0] sm:$0xff] %v229_v30 }
  0x35   : > { %232 = vst [vmem:[%s1422_s29 + $0xf8] sm:$0xff] %v231_v31 }
  0x36 PF: > { %s239_s30 = sand.u32 1, %s1319_s11   ;;  %s1116_s3 = sshll.u32 %s1327_s13, 8 }
  0x37   : > { %s965_s4 = sshll.u32 %s239_s30, 8  ;;  %s248_s7 = scalar_lea.hbm %s1872_s1, %s1116_s3 }
  0x38   : > { %s249_s8 = sshll.u32 %s248_s7, 4  ;;  %s243_s9 = scalar_lea.vmem [#allocation5], %s965_s4  ;;  %s250_s8 = int_to_ptr.hbm [resolvable:$true] %s249_s8 }
  0x39   : > { %s251_s15 = sshll.u32 %s243_s9, 4  ;;  %s240_s17 = scalar_lea.sflag [#allocation6], %s239_s30  ;;  %s252_s15 = int_to_ptr.vmem [resolvable:$true] %s251_s15 }
  0x3a   : > { %s1337_s19 = smov 256   ;;  %s1338_s23 = smov 16  }
  0x3b   : > { %1156 = dma.hbm_to_vmem [thread:$0]  (%p1391_p3), %s250_s8, 4096, %s252_s15, %s240_s17, %s1337_s19, %s1337_s19, %s1338_s23  }
  0x3c PF: > { %p968_p11 = scmp.ge.s32.totalorder %s1331_s14, 1  ;;  %p259_p12 = scmp.lt.s32.totalorder %s1331_s14, 3 }
  0x3e   : > { %p260_p13 = pnand %p968_p11, %p259_p12 }
  0x40   : > { %263 = sbr.rel (%p260_p13) target bundleno = 358 (0x166), region = 47 }
  0x45   : > { %s1495_s24 = sand.u32 1, %s1315_s10  }
  0x46   : > { %s969_s25 = sshll.u32 %s1495_s24, 8  ;;  %s273_s27 = scalar_lea.sflag [#allocation6], %s1495_s24 }
  0x47   : > { %s1498_s26 = scalar_lea.vmem [#allocation4], %s969_s25  ;;  %s1501_s28 = scalar_lea.vmem [#allocation5], %s969_s25 }
  0x48   : > { %1306 = dma.done.wait (%p1398_p8), %s273_s27, 4096  }
  0x49   : > { %1308 = vsyncadd (%p1398_p8), %s273_s27, 4294963200  ;;  %s971_s18 = sshll.u32 %s1495_s24, 6  ;;  %v1339_v32 = vmov 0.0   ;;  %v1509_v33 = vld [vmem:[%s1501_s28 + $0x4] sm:$0xf]  ;;  %s1704_s29 = smov 0  }
  0x4a   : > { %316 = vst [vmem:[#allocation2] sm:$0xff] %v1339_v32  ;;  %v1512_v34 = vld [vmem:[%s1501_s28] sm:$0xf]  ;;  %v1515_v35 = vld [vmem:[%s1501_s28 + $0xc] sm:$0xf]  ;;  %s1702_s20 = scalar_lea.vmem [#allocation7], %s971_s18 }
  0x4b   : > { %317 = vst [vmem:[#allocation2 + $0x8] sm:$0xff] %v1339_v32  ;;  %v1518_v36 = vld [vmem:[%s1501_s28 + $0x8] sm:$0xf]  ;;  %v1521_v37 = vld [vmem:[%s1501_s28 + $0x10] sm:$0xf0] }
  0x4c   : > { %318 = vst [vmem:[#allocation3 + $0x8] sm:$0xff] %v1339_v32  ;;  %v1524_v38 = vld [vmem:[%s1501_s28 + $0xc] sm:$0xf0]  ;;  %v1527_v39 = vld [vmem:[%s1501_s28 + $0x18] sm:$0xf0] }
  0x4d   : > { %319 = vst [vmem:[#allocation3] sm:$0xff] %v1339_v32  ;;  %v1530_v40 = vld [vmem:[%s1501_s28 + $0x14] sm:$0xf0]  ;;  %v1533_v41 = vld [vmem:[%s1501_s28 + $0x24] sm:$0xf] }
  0x4e   : > { %1877 = vst [vmem:[#allocation9_spill] sm:$0xff] %v1509_v33  ;;  %v1536_v42 = vld [vmem:[%s1501_s28 + $0x20] sm:$0xf]  ;;  %v1539_v43 = vld [vmem:[%s1501_s28 + $0x2c] sm:$0xf] }
  0x4f   : > { %1878 = vst [vmem:[#allocation10_spill] sm:$0xff] %v1515_v35  ;;  %v1542_v44 = vld [vmem:[%s1501_s28 + $0x28] sm:$0xf]  ;;  %v1545_v45 = vld [vmem:[%s1501_s28 + $0x30] sm:$0xf0] }
  0x50   : > { %1879 = vst [vmem:[#allocation11_spill] sm:$0xff] %v1518_v36  ;;  %v1548_v46 = vld [vmem:[%s1501_s28 + $0x2c] sm:$0xf0]  ;;  %v1551_v47 = vld [vmem:[%s1501_s28 + $0x38] sm:$0xf0] }
  0x51   : > { %1880 = vst [vmem:[#allocation12_spill] sm:$0xff] %v1521_v37  ;;  %v1554_v48 = vld [vmem:[%s1501_s28 + $0x34] sm:$0xf0]  ;;  %v1557_v49 = vld [vmem:[%s1501_s28 + $0x44] sm:$0xf] }
  0x52   : > { %1881 = vst [vmem:[#allocation13_spill] sm:$0xff] %v1527_v39  ;;  %v1560_v50 = vld [vmem:[%s1501_s28 + $0x40] sm:$0xf]  ;;  %v1563_v51 = vld [vmem:[%s1501_s28 + $0x4c] sm:$0xf] }
  0x53   : > { %1882 = vst [vmem:[#allocation14_spill] sm:$0xff] %v1530_v40  ;;  %v1566_v52 = vld [vmem:[%s1501_s28 + $0x48] sm:$0xf]  ;;  %v1569_v53 = vld [vmem:[%s1501_s28 + $0x50] sm:$0xf0] }
  0x54   : > { %v1572_v54 = vld [vmem:[%s1501_s28 + $0x4c] sm:$0xf0]  ;;  %v1575_v55 = vld [vmem:[%s1501_s28 + $0x58] sm:$0xf0]  ;;  %v1578_v56 = vld [vmem:[%s1501_s28 + $0x54] sm:$0xf0] }
  0x55   : > { %v1581_v57 = vld [vmem:[%s1501_s28 + $0x64] sm:$0xf]  ;;  %v1584_v58 = vld [vmem:[%s1501_s28 + $0x60] sm:$0xf]  ;;  %v1587_v59 = vld [vmem:[%s1501_s28 + $0x6c] sm:$0xf] }
  0x56   : > { %v1590_v60 = vld [vmem:[%s1501_s28 + $0x68] sm:$0xf]  ;;  %v1593_v61 = vld [vmem:[%s1501_s28 + $0x70] sm:$0xf0]  ;;  %v1596_v62 = vld [vmem:[%s1501_s28 + $0x6c] sm:$0xf0] }
  0x57   : > { %v1599_v63 = vld [vmem:[%s1501_s28 + $0x78] sm:$0xf0]  ;;  %v1602_v0 = vld [vmem:[%s1501_s28 + $0x74] sm:$0xf0]  ;;  %v1605_v1 = vld [vmem:[%s1501_s28 + $0x84] sm:$0xf] }
  0x58   : > { %1883 = vst [vmem:[#allocation15_spill] sm:$0xff] %v1602_v0  ;;  %v1608_v2 = vld [vmem:[%s1501_s28 + $0x80] sm:$0xf]  ;;  %v1611_v3 = vld [vmem:[%s1501_s28 + $0x8c] sm:$0xf] }
  0x59   : > { %1884 = vst [vmem:[#allocation16_spill] sm:$0xff] %v1605_v1  ;;  %v1614_v4 = vld [vmem:[%s1501_s28 + $0x88] sm:$0xf]  ;;  %v1617_v5 = vld [vmem:[%s1501_s28 + $0x90] sm:$0xf0] }
  0x5a   : > { %1885 = vst [vmem:[#allocation17_spill] sm:$0xff] %v1608_v2  ;;  %v1620_v6 = vld [vmem:[%s1501_s28 + $0x8c] sm:$0xf0]  ;;  %v1623_v7 = vld [vmem:[%s1501_s28 + $0x98] sm:$0xf0] }
  0x5b   : > { %1886 = vst [vmem:[#allocation18_spill] sm:$0xff] %v1611_v3  ;;  %v1626_v8 = vld [vmem:[%s1501_s28 + $0x94] sm:$0xf0]  ;;  %v1629_v9 = vld [vmem:[%s1501_s28 + $0xa4] sm:$0xf] }
  0x5c   : > { %1887 = vst [vmem:[#allocation19_spill] sm:$0xff] %v1614_v4  ;;  %v1632_v10 = vld [vmem:[%s1501_s28 + $0xa0] sm:$0xf]  ;;  %v1635_v11 = vld [vmem:[%s1501_s28 + $0xac] sm:$0xf] }
  0x5d   : > { %1888 = vst [vmem:[#allocation20_spill] sm:$0xff] %v1617_v5  ;;  %v1638_v12 = vld [vmem:[%s1501_s28 + $0xa8] sm:$0xf]  ;;  %v1641_v13 = vld [vmem:[%s1501_s28 + $0xb0] sm:$0xf0] }
  0x5e   : > { %1889 = vst [vmem:[#allocation21_spill] sm:$0xff] %v1620_v6  ;;  %v1644_v14 = vld [vmem:[%s1501_s28 + $0xac] sm:$0xf0]  ;;  %v1647_v15 = vld [vmem:[%s1501_s28 + $0xb8] sm:$0xf0] }
  0x5f   : > { %1890 = vst [vmem:[#allocation22_spill] sm:$0xff] %v1623_v7  ;;  %v1650_v16 = vld [vmem:[%s1501_s28 + $0xb4] sm:$0xf0]  ;;  %v1653_v17 = vld [vmem:[%s1501_s28 + $0xc4] sm:$0xf] }
  0x60   : > { %1891 = vst [vmem:[#allocation23_spill] sm:$0xff] %v1626_v8  ;;  %v1656_v18 = vld [vmem:[%s1501_s28 + $0xc0] sm:$0xf]  ;;  %v1659_v19 = vld [vmem:[%s1501_s28 + $0xcc] sm:$0xf] }
  0x61   : > { %1892 = vst [vmem:[#allocation24_spill] sm:$0xff] %v1629_v9  ;;  %v1662_v20 = vld [vmem:[%s1501_s28 + $0xc8] sm:$0xf]  ;;  %v1665_v21 = vld [vmem:[%s1501_s28 + $0xd0] sm:$0xf0] }
  0x62   : > { %1893 = vst [vmem:[#allocation25_spill] sm:$0xff] %v1632_v10  ;;  %v1668_v22 = vld [vmem:[%s1501_s28 + $0xcc] sm:$0xf0]  ;;  %v1671_v23 = vld [vmem:[%s1501_s28 + $0xd8] sm:$0xf0] }
  0x63   : > { %1894 = vst [vmem:[#allocation26_spill] sm:$0xff] %v1635_v11  ;;  %v1674_v24 = vld [vmem:[%s1501_s28 + $0xd4] sm:$0xf0]  ;;  %v1677_v25 = vld [vmem:[%s1501_s28 + $0xe4] sm:$0xf] }
  0x64   : > { %1895 = vst [vmem:[#allocation27_spill] sm:$0xff] %v1638_v12  ;;  %v1680_v26 = vld [vmem:[%s1501_s28 + $0xe0] sm:$0xf]  ;;  %v1683_v27 = vld [vmem:[%s1501_s28 + $0xec] sm:$0xf] }
  0x65   : > { %1896 = vst [vmem:[#allocation28_spill] sm:$0xff] %v1641_v13  ;;  %v1686_v28 = vld [vmem:[%s1501_s28 + $0xe8] sm:$0xf]  ;;  %v1689_v29 = vld [vmem:[%s1501_s28 + $0xf0] sm:$0xf0] }
  0x66   : > { %1897 = vst [vmem:[#allocation29_spill] sm:$0xff] %v1644_v14  ;;  %v1692_v30 = vld [vmem:[%s1501_s28 + $0xec] sm:$0xf0]  ;;  %v1695_v31 = vld [vmem:[%s1501_s28 + $0xf8] sm:$0xf0] }
  0x67   : > { %1898 = vst [vmem:[#allocation30_spill] sm:$0xff] %v1647_v15  ;;  %v1698_v32 = vld [vmem:[%s1501_s28 + $0xf4] sm:$0xf0] }
  0x68   : > { %1899 = vst [vmem:[#allocation31_spill] sm:$0xff] %v1650_v16 }
  0x69   : > { %1900 = vst [vmem:[#allocation32_spill] sm:$0xff] %v1653_v17 }
  0x6a   : > { %1901 = vst [vmem:[#allocation33_spill] sm:$0xff] %v1656_v18 }
  0x6b   : > { %1902 = vst [vmem:[#allocation34_spill] sm:$0xff] %v1659_v19 }
  0x6c   : > { %1903 = vst [vmem:[#allocation35_spill] sm:$0xff] %v1662_v20 }
  0x6d   : > { %1904 = vst [vmem:[#allocation36_spill] sm:$0xff] %v1665_v21 }
  0x6e   : > { %1905 = vst [vmem:[#allocation37_spill] sm:$0xff] %v1677_v25 }
  0x6f   : > { %1906 = vst [vmem:[#allocation38_spill] sm:$0xff] %v1680_v26 }
  0x70 LB: >> { %v1098_v40 = vor.u32 %v1698_v32, %v1686_v28  ;;  %v1102_v36 = vor.u32 %v1683_v27, %v1695_v31  ;;  %v1911_v17 = vld [vmem:[#allocation32_spill] sm:$0xff]  ;;  %v1914_v10 = vld [vmem:[#allocation25_spill] sm:$0xff]  ;;  %v1918_v12 = vld [vmem:[#allocation27_spill] sm:$0xff]  ;;  %s972_s30 = sshll.u32 %s1335_s29, 1  ;;  %s1335_s29 = sphi %s1704_s29, %s357_s29  }
  0x71   : >> { %v1909_v18 = vld [vmem:[#allocation33_spill] sm:$0xff]  ;;  %v1916_v13 = vld [vmem:[#allocation28_spill] sm:$0xff]  ;;  %v1919_v16 = vld [vmem:[#allocation31_spill] sm:$0xff]  ;;  %s359_s3 = ssub.s32 7, %s972_s30 }
  0x72   : >> { %v1074_v33 = vor.u32 %v1668_v22, %v1909_v18  ;;  %570 = vmatpush.bf16.msra.mxu2 %v1098_v40  ;;  %584 = vmatpush.bf16.msra.mxu3 %v1102_v36  ;;  %v1913_v19 = vld [vmem:[#allocation34_spill] sm:$0xff]  ;;  %v1915_v14 = vld [vmem:[#allocation29_spill] sm:$0xff]  ;;  %v1917_v9 = vld [vmem:[#allocation24_spill] sm:$0xff]  ;;  %s360_s4 = smul.u32 %s1323_s12, %s359_s3 }
  0x73   : >> { %v1912_v20 = vld [vmem:[#allocation35_spill] sm:$0xff]  ;;  %v1920_v15 = vld [vmem:[#allocation30_spill] sm:$0xff]  ;;  %v1922_v2 = vld [vmem:[#allocation17_spill] sm:$0xff] }
  0x74   : >> { %v1910_v21 = vld [vmem:[#allocation36_spill] sm:$0xff]  ;;  %v1921_v11 = vld [vmem:[#allocation26_spill] sm:$0xff]  ;;  %v1923_v6 = vld [vmem:[#allocation21_spill] sm:$0xff]  ;;  %s1776_s5 = sadd.s32 %s1335_s29, %s360_s4  ;;  %s357_s29 = sadd.s32 1, %s1335_s29  }
  0x75   : >> { %v1908_v25 = vld [vmem:[#allocation37_spill] sm:$0xff]  ;;  %v1078_v37 = vor.u32 %v1911_v17, %v1910_v21  ;;  %v1066_v17 = vor.u32 %v1919_v16, %v1918_v12  ;;  %v1070_v40 = vor.u32 %v1921_v11, %v1920_v15  ;;  %v1924_v5 = vld [vmem:[#allocation20_spill] sm:$0xff]  ;;  %v1926_v4 = vld [vmem:[#allocation19_spill] sm:$0xff]  ;;  %s1149_s6 = sshll.u32 %s1776_s5, 5  ;;  %s1150_s8 = sshll.u32 %s1776_s5, 3 }
  0x76   : >> { %v1907_v26 = vld [vmem:[#allocation38_spill] sm:$0xff]  ;;  %v1094_v39 = vor.u32 %v1908_v25, %v1689_v29  ;;  %v1086_v25 = vor.u32 %v1913_v19, %v1671_v23  ;;  %v1925_v1 = vld [vmem:[#allocation16_spill] sm:$0xff]  ;;  %v1927_v8 = vld [vmem:[#allocation23_spill] sm:$0xff]  ;;  %s369_s7 = scalar_lea.vmem %s1498_s26, %s1149_s6 [#allocation4]  ;;  %s732_s9 = scalar_lea.vmem %s1702_s20, %s1150_s8 [#allocation7] }
  0x77   : >> { %v1090_v35 = vor.u32 %v1692_v30, %v1907_v26  ;;  %v1082_v26 = vor.u32 %v1674_v24, %v1912_v20  ;;  %v1046_v36 = vor.u32 %v1925_v1, %v1924_v5  ;;  %v1928_v7 = vld [vmem:[#allocation22_spill] sm:$0xff]  ;;  %v1930_v0 = vld [vmem:[#allocation15_spill] sm:$0xff]  ;;  %v362_v1 = vld [vmem:[#allocation2] sm:$0xff]  ;;  %p354_p0 = scmp.ge.s32.totalorder %s357_s29, 8  }
  0x78   : >> { %556 = vmatpush.bf16.msra.mxu1 %v1094_v39  ;;  %v1062_v39 = vor.u32 %v1917_v9, %v1916_v13  ;;  %585 = vmatpush.bf16.msra.mxu3 %v1086_v25  ;;  %v1929_v3 = vld [vmem:[#allocation18_spill] sm:$0xff]  ;;  %v1026_v25 = vor.u32 %v1596_v62, %v1584_v58 }
  0x79   : >> { %542 = vmatpush.bf16.msra.mxu0 %v1090_v35  ;;  %v1058_v35 = vor.u32 %v1915_v14, %v1914_v10  ;;  %571 = vmatpush.bf16.msra.mxu2 %v1082_v26  ;;  %v1054_v26 = vor.u32 %v1929_v3, %v1928_v7  ;;  %v1934_v3 = vld [vmem:[#allocation14_spill] sm:$0xff] }
  0x7a   : >> { %v1936_v5 = vld [vmem:[#allocation10_spill] sm:$0xff] }
  0x7c   : >> { %557 = vmatpush.bf16.msra.mxu1 %v1078_v37  ;;  %v1050_v37 = vor.u32 %v1927_v8, %v1926_v4  ;;  %586 = vmatpush.bf16.msra.mxu3 %v1070_v40  ;;  %v1010_v40 = vor.u32 %v1572_v54, %v1560_v50  ;;  %v1935_v4 = vld [vmem:[#allocation13_spill] sm:$0xff] }
  0x7d   : >> { %543 = vmatpush.bf16.msra.mxu0 %v1074_v33  ;;  %v1042_v33 = vor.u32 %v1923_v6, %v1922_v2  ;;  %572 = vmatpush.bf16.msra.mxu2 %v1066_v17  ;;  %v1038_v17 = vor.u32 %v1587_v59, %v1599_v63  ;;  %v363_v2 = vld [vmem:[#allocation2 + $0x8] sm:$0xff] }
  0x80   : >> { %558 = vmatpush.bf16.msra.mxu1 %v1062_v39  ;;  %v1034_v39 = vor.u32 %v1930_v0, %v1590_v60  ;;  %587 = vmatpush.bf16.msra.mxu3 %v1054_v26  ;;  %v994_v26 = vor.u32 %v1548_v46, %v1536_v42 }
  0x81   : >> { %544 = vmatpush.bf16.msra.mxu0 %v1058_v35  ;;  %v1030_v35 = vor.u32 %v1581_v57, %v1593_v61  ;;  %573 = vmatpush.bf16.msra.mxu2 %v1050_v37  ;;  %v1022_v37 = vor.u32 %v1563_v51, %v1575_v55 }
  0x84   : >> { %559 = vmatpush.bf16.msra.mxu1 %v1046_v36  ;;  %v1018_v36 = vor.u32 %v1578_v56, %v1566_v52  ;;  %588 = vmatpush.bf16.msra.mxu3 %v1038_v17  ;;  %v978_v17 = vor.u32 %v1524_v38, %v1512_v34 }
  0x85   : >> { %545 = vmatpush.bf16.msra.mxu0 %v1042_v33  ;;  %v1014_v33 = vor.u32 %v1557_v49, %v1569_v53  ;;  %574 = vmatpush.bf16.msra.mxu2 %v1034_v39  ;;  %v1006_v39 = vor.u32 %v1539_v43, %v1551_v47 }
  0x88   : >> { %560 = vmatpush.bf16.msra.mxu1 %v1030_v35  ;;  %v1002_v35 = vor.u32 %v1554_v48, %v1542_v44  ;;  %589 = vmatpush.bf16.msra.mxu3 %v1022_v37 }
  0x89   : >> { %546 = vmatpush.bf16.msra.mxu0 %v1026_v25  ;;  %v998_v25 = vor.u32 %v1533_v41, %v1545_v45  ;;  %575 = vmatpush.bf16.msra.mxu2 %v1018_v36  ;;  %v1933_v36 = vld [vmem:[#allocation11_spill] sm:$0xff] }
  0x8a   : >> { %v986_v37 = vor.u32 %v1934_v3, %v1933_v36  ;;  %v370_v3 = vld [vmem:[%s369_s7] sm:$0xff] }
  0x8c   : >> { %561 = vmatpush.bf16.msra.mxu1 %v1014_v33  ;;  %v1932_v33 = vld [vmem:[#allocation9_spill] sm:$0xff]  ;;  %590 = vmatpush.bf16.msra.mxu3 %v1006_v39  ;;  %v371_v39 = vld [vmem:[%s369_s7 + $0x8] sm:$0xff] }
  0x8d   : >> { %547 = vmatpush.bf16.msra.mxu0 %v1010_v40  ;;  %v1931_v40 = vld [vmem:[#allocation12_spill] sm:$0xff]  ;;  %576 = vmatpush.bf16.msra.mxu2 %v1002_v35  ;;  %v374_v35 = vunpack.c.l.bf16 %v370_v3  ;;  %v376_v36 = vunpack.c.l.bf16 %v371_v39 }
  0x8e   : >> { %v982_v0 = vor.u32 %v1932_v33, %v1931_v40 }
  0x90   : >> { %562 = vmatpush.bf16.msra.mxu1 %v998_v25  ;;  %v366_v25 = vpack.c.bf16 %v363_v2, %v362_v1 }
  0x91   : >> { %548 = vmatpush.bf16.msra.mxu0 %v994_v26  ;;  %v990_v26 = vor.u32 %v1936_v5, %v1935_v4  ;;  %577 = vmatpush.bf16.msra.mxu2 %v986_v37  ;;  %v375_v4 = vunpack.c.h.bf16 %v370_v3  ;;  %v373_v3 = vld [vmem:[%s369_s7 + $0x18] sm:$0xff] }
  0x93   : >> { %591 = vmatpush.bf16.msra.mxu3 %v990_v26 }
  0x94   : >> { %563 = vmatpush.bf16.msra.mxu1 %v982_v0  ;;  %578 = vmatmul.bf16.vlgmr.msra.gmra.mxu2 %v366_v25 }
  0x95   : >> { %549 = vmatpush.bf16.msra.mxu0 %v978_v17  ;;  %v372_v17 = vld [vmem:[%s369_s7 + $0x10] sm:$0xff] }
  0x96   : >> { %592 = vmatmul.bf16.vlgmr.msra.gmra.mxu3 %v366_v25  ;;  %v378_v37 = vunpack.c.l.bf16 %v372_v17  ;;  %v379_v26 = vunpack.c.h.bf16 %v372_v17 }
  0x97   : >> { %564 = vmatmul.bf16.vlgmr.msra.gmra.mxu1 %v366_v25 }
  0x98   : >> { %550 = vmatmul.bf16.vlgmr.msra.gmra.mxu0 %v366_v25 }
 0x114   : >> { %v565_v2 = vpop.f32.mrf.mxu1 }
 0x115   : >> { %v551_v1 = vpop.f32.mrf.mxu0  ;;  %v566_v5 = vadd.f32 %v565_v2, %v375_v4  ;;  %v377_v4 = vunpack.c.h.bf16 %v371_v39 }
 0x116   : >> { %v552_v0 = vadd.f32 %v551_v1, %v374_v35 }
 0x117   : >> { %v1104_v33 = vmul.f32 -1.442695, %v566_v5  ;;  %v579_v25 = vpop.f32.mrf.mxu2  ;;  %v380_v5 = vunpack.c.l.bf16 %v373_v3 }
 0x118   : >> { %v1103_v40 = vmul.f32 -1.442695, %v552_v0  ;;  %v580_v6 = vadd.f32 %v579_v25, %v376_v36 }
 0x119   : >> { %v593_v17 = vpop.f32.mrf.mxu3 }
 0x11a   : >> { %1217 = vpow2.f32 %v1103_v40  ;;  %v1105_v11 = vmul.f32 -1.442695, %v580_v6 }
 0x11b   : >> { %1219 = vpow2.f32 %v1104_v33  ;;  %v594_v33 = vadd.f32 %v593_v17, %v377_v4 }
 0x11c   : >> { %v567_v8 = vpop.f32.mrf.mxu1  ;;  %1221 = vpow2.f32 %v1105_v11 }
 0x11d   : >> { %v553_v7 = vpop.f32.mrf.mxu0  ;;  %v568_v10 = vadd.f32 %v567_v8, %v379_v26 }
 0x11e   : >> { %v554_v9 = vadd.f32 %v553_v7, %v378_v37 }
 0x11f   : >> { %v1107_v0 = vmul.f32 -1.442695, %v568_v10  ;;  %v581_v36 = vpop.f32.mrf.mxu2 }
 0x120   : >> { %v1218_v12 = vpop.eup %1217  ;;  %v1106_v35 = vmul.f32 -1.442695, %v554_v9  ;;  %v582_v7 = vadd.f32 %v581_v36, %v380_v5 }
 0x121   : >> { %v1220_v1 = vpop.eup %1219  ;;  %v616_v2 = vadd.f32 1.0, %v1218_v12  ;;  %v595_v5 = vpop.f32.mrf.mxu3 }
 0x122   : >> { %v617_v40 = vadd.f32 1.0, %v1220_v1  ;;  %1223 = vpow2.f32 %v1106_v35  ;;  %v1222_v8 = vpop.eup %1221  ;;  %v1108_v37 = vmul.f32 -1.442695, %v582_v7  ;;  %v381_v35 = vunpack.c.h.bf16 %v373_v3 }
 0x123   : >> { %1225 = vrcp.f32 %v616_v2  ;;  %v1780_v26 = vadd.f32 1.0, %v1222_v8  ;;  %v633_v36 = vand.u32 2147483648, %v616_v2  ;;  %vm627_vm2 = vweird.f32 %v616_v2 }
 0x124   : >> { %1227 = vrcp.f32 %v617_v40  ;;  %v596_v14 = vadd.f32 %v595_v5, %v381_v35  ;;  %vm642_vm3 = vweird.f32 %v617_v40  ;;  %v364_v35 = vld [vmem:[#allocation3 + $0x8] sm:$0xff] }
 0x125   : >> { %1229 = vpow2.f32 %v1107_v0  ;;  %v631_v0 = vand.u32 2147483647, %v616_v2  ;;  %vm657_vm13 = vweird.f32 %v1780_v26 }
 0x126   : >> { %1231 = vtanh.f32 %v594_v33  ;;  %v648_v33 = vand.u32 2147483648, %v617_v40 }
 0x127   : >> { %1233 = vpow2.f32 %v1108_v37  ;;  %v646_v37 = vand.u32 2147483647, %v617_v40  ;;  %vm632_vm4 = vcmp.eq.f32.partialorder %v631_v0, 8.507059e+37 }
 0x128   : >> { %v1224_v6 = vpop.eup %1223  ;;  %1235 = vrcp.f32 %v1780_v26  ;;  %v649_v15 = vor.u32 1.1754944e-38, %v648_v33 }
 0x129   : >> { %v1226_v9 = vpop.eup %1225  ;;  %v1782_v12 = vadd.f32 1.0, %v1224_v6  ;;  %vm647_vm7 = vcmp.eq.f32.partialorder %v646_v37, 8.507059e+37 }
 0x12a   : >> { %v1228_v10 = vpop.eup %1227  ;;  %v623_v11 = vmul.f32 %v1226_v9, %v616_v2  ;;  %vm628_vm0 = vweird.f32 %v1226_v9 }
 0x12b   : >> { %v1230_v39 = vpop.eup %1229  ;;  %v638_v25 = vmul.f32 %v1228_v10, %v617_v40  ;;  %1237 = vrcp.f32 %v1782_v12  ;;  %vm643_vm1 = vweird.f32 %v1228_v10  ;;  %vm629_vm5 = vmor %vm627_vm2, %vm628_vm0  ;;  %v678_v20 = vand.u32 2147483648, %v1782_v12 }
 0x12c   : >> { %v624_v4 = vsub.f32 1.0, %v623_v11  ;;  %v1786_v1 = vadd.f32 1.0, %v1230_v39  ;;  %v1232_v7 = vpop.eup %1231  ;;  %vm644_vm6 = vmor %vm642_vm3, %vm643_vm1  ;;  %vm672_vm8 = vweird.f32 %v1782_v12 }
 0x12d   : >> { %v639_v17 = vsub.f32 1.0, %v638_v25  ;;  %v1234_v6 = vpop.eup %1233 }
 0x12e   : >> { %1239 = vrcp.f32 %v1786_v1  ;;  %v625_v8 = vmul.f32 %v1226_v9, %v624_v4  ;;  %v1789_v3 = vpop.eup %1235  ;;  %v1791_v39 = vadd.f32 1.0, %v1234_v6  ;;  %v634_v4 = vor.u32 1.1754944e-38, %v633_v36 }
 0x12f   : >> { %v640_v13 = vmul.f32 %v1228_v10, %v639_v17  ;;  %v653_v16 = vmul.f32 %v1789_v3, %v1780_v26  ;;  %v663_v36 = vand.u32 2147483648, %v1780_v26  ;;  %vm658_vm10 = vweird.f32 %v1789_v3 }
 0x130   : >> { %v626_v11 = vadd.f32 %v1226_v9, %v625_v8  ;;  %1241 = vrcp.f32 %v1791_v39  ;;  %vm1814_vm15 = vmor %vm657_vm13, %vm658_vm10  ;;  %vm687_vm0 = vweird.f32 %v1786_v1 }
 0x131   : >> { %v1238_v25 = vpop.eup %1237  ;;  %v641_v18 = vadd.f32 %v1228_v10, %v640_v13  ;;  %v654_v40 = vsub.f32 1.0, %v653_v16  ;;  %1243 = vtanh.f32 %v596_v14  ;;  %v676_v16 = vand.u32 2147483647, %v1782_v12 }
 0x132   : >> { %v668_v2 = vmul.f32 %v1238_v25, %v1782_v12  ;;  %v630_v5 = vsel %vm629_vm5, %v1226_v9, %v626_v11  ;;  %vm673_vm9 = vweird.f32 %v1238_v25  ;;  %vm702_vm5 = vweird.f32 %v1791_v39 }
 0x133   : >> { %v635_v0 = vsel %vm632_vm4, %v634_v4, %v630_v5  ;;  %v645_v17 = vsel %vm644_vm6, %v1228_v10, %v641_v18  ;;  %v655_v13 = vmul.f32 %v1789_v3, %v654_v40  ;;  %v693_v18 = vand.u32 2147483648, %v1786_v1  ;;  %vm674_vm12 = vmor %vm672_vm8, %vm673_vm9 }
 0x134   : >> { %v1240_v33 = vpop.eup %1239  ;;  %v669_v8 = vsub.f32 1.0, %v668_v2  ;;  %v650_v6 = vsel %vm647_vm7, %v649_v15, %v645_v17  ;;  %v716_v19 = vmul.f32 %v1232_v7, %v635_v0  ;;  %v691_v10 = vand.u32 2147483647, %v1786_v1 }
 0x135   : >> { %v683_v21 = vmul.f32 %v1240_v33, %v1786_v1  ;;  %v714_v9 = vmul.f32 %v650_v6, %v364_v35  ;;  %v656_v11 = vadd.f32 %v1789_v3, %v655_v13  ;;  %v679_v2 = vor.u32 1.1754944e-38, %v678_v20  ;;  %v365_v13 = vld [vmem:[#allocation3] sm:$0xff] }
 0x136   : >> { %v670_v37 = vmul.f32 %v1238_v25, %v669_v8  ;;  %v1242_v7 = vpop.eup %1241  ;;  %vm688_vm11 = vweird.f32 %v1240_v33  ;;  %vm677_vm14 = vcmp.eq.f32.partialorder %v676_v16, 8.507059e+37  ;;  %v694_v6 = vor.u32 1.1754944e-38, %v693_v18 }
 0x137   : >> { %v684_v14 = vsub.f32 1.0, %v683_v21  ;;  %v718_v15 = vadd.f32 %v716_v19, %v714_v9  ;;  %v1244_v35 = vpop.eup %1243  ;;  %v698_v40 = vmul.f32 %v1242_v7, %v1791_v39  ;;  %v661_v19 = vand.u32 2147483647, %v1780_v26  ;;  %vm689_vm1 = vmor %vm687_vm0, %vm688_vm11 }
 0x138   : >> { %v671_v4 = vadd.f32 %v1238_v25, %v670_v37  ;;  %v660_v12 = vsel %vm1814_vm15, %v1789_v3, %v656_v11  ;;  %v664_v26 = vor.u32 1.1754944e-38, %v663_v36  ;;  %vm692_vm2 = vcmp.eq.f32.partialorder %v691_v10, 8.507059e+37 }
 0x139   : >> { %v685_v5 = vmul.f32 %v1240_v33, %v684_v14  ;;  %1245 = vtanh.f32 %v718_v15  ;;  %726 = vst [vmem:[#allocation3 + $0x8] sm:$0xff] %v718_v15  ;;  %v699_v20 = vsub.f32 1.0, %v698_v40  ;;  %vm662_vm3 = vcmp.eq.f32.partialorder %v661_v19, 8.507059e+37 }
 0x13a   : >> { %v675_v21 = vsel %vm674_vm12, %v1238_v25, %v671_v4  ;;  %v665_v1 = vsel %vm662_vm3, %v664_v26, %v660_v12  ;;  %vm703_vm4 = vweird.f32 %v1242_v7  ;;  %v708_v18 = vand.u32 2147483648, %v1791_v39 }
 0x13b   : >> { %v680_v17 = vsel %vm677_vm14, %v679_v2, %v675_v21  ;;  %v686_v8 = vadd.f32 %v1240_v33, %v685_v5  ;;  %v700_v37 = vmul.f32 %v1242_v7, %v699_v20  ;;  %vm704_vm6 = vmor %vm702_vm5, %vm703_vm4 }
 0x13c   : >> { %v717_v9 = vmul.f32 %v1244_v35, %v680_v17  ;;  %v709_v10 = vor.u32 1.1754944e-38, %v708_v18 }
 0x13d   : >> { %v690_v25 = vsel %vm689_vm1, %v1240_v33, %v686_v8  ;;  %v701_v3 = vadd.f32 %v1242_v7, %v700_v37  ;;  %v706_v33 = vand.u32 2147483647, %v1791_v39 }
 0x13e   : >> { %v695_v16 = vsel %vm692_vm2, %v694_v6, %v690_v25 }
 0x13f   : >> { %v1246_v14 = vpop.eup %1245  ;;  %v715_v15 = vmul.f32 %v695_v16, %v365_v13  ;;  %v705_v36 = vsel %vm704_vm6, %v1242_v7, %v701_v3  ;;  %vm707_vm7 = vcmp.eq.f32.partialorder %v706_v33, 8.507059e+37 }
 0x140   : >> { %v722_v4 = vmul.f32 %v1246_v14, %v665_v1  ;;  %v710_v35 = vsel %vm707_vm7, %v709_v10, %v705_v36 }
 0x141   : >> { %v719_v2 = vadd.f32 %v717_v9, %v715_v15 }
 0x142   : >> { %724 = vst [vmem:[#allocation2] sm:$0xff] %v722_v4 }
 0x143   : >> { %1247 = vtanh.f32 %v719_v2  ;;  %727 = vst [vmem:[#allocation3] sm:$0xff] %v719_v2 }
 0x149   : >> { %v1248_v11 = vpop.eup %1247 }
 0x14a   : >> { %v723_v5 = vmul.f32 %v1248_v11, %v710_v35  ;;  %356 = sbr.rel (!%p354_p0) target bundleno = 112 (0x70), region = 153 }
 0x14c   : >> { %725 = vst [vmem:[#allocation2 + $0x8] sm:$0xff] %v723_v5  ;;  %v1154_v40 = vpack.c.bf16 %v723_v5, %v722_v4 }
 0x14e   : >> { %1155 = vst [vmem:[%s732_s9] sm:$0xff] %v1154_v40  }
 0x14f   : > { %741 = sbr.rel (!%p1405_p9) target bundleno = 358 (0x166), region = 70  ;;  %s1112_s15 = sshll.u32 (%p1405_p9), %s1323_s12, 2 }
 0x150   : > { %s750_s23 = scalar_lea.vmem (%p1405_p9), %s1873_s2, %s1112_s15 }
 0x155   : > { %v767_v39 = vld [vmem:[%s1702_s20] sm:$0xf]  ;;  %v769_v7 = vld [vmem:[%s1702_s20 + $0x4] sm:$0xf]  ;;  %v771_v34 = vld [vmem:[%s1702_s20 + $0x8] sm:$0xf] }
 0x156   : > { %768 = vst [vmem:[%s750_s23] sm:$0xf] %v767_v39  ;;  %v773_v38 = vld [vmem:[%s1702_s20 + $0xc] sm:$0xf]  ;;  %v775_v41 = vld [vmem:[%s1702_s20 + $0x10] sm:$0xf] }
 0x157   : > { %770 = vst [vmem:[%s750_s23 + $0x8] sm:$0xf] %v769_v7  ;;  %v777_v42 = vld [vmem:[%s1702_s20 + $0x14] sm:$0xf]  ;;  %v779_v43 = vld [vmem:[%s1702_s20 + $0x18] sm:$0xf] }
 0x158   : > { %772 = vst [vmem:[%s750_s23 + $0x10] sm:$0xf] %v771_v34  ;;  %v781_v44 = vld [vmem:[%s1702_s20 + $0x1c] sm:$0xf]  ;;  %v783_v45 = vld [vmem:[%s1702_s20 + $0x20] sm:$0xf] }
 0x159   : > { %774 = vst [vmem:[%s750_s23 + $0x18] sm:$0xf] %v773_v38  ;;  %v785_v46 = vld [vmem:[%s1702_s20 + $0x24] sm:$0xf]  ;;  %v787_v47 = vld [vmem:[%s1702_s20 + $0x28] sm:$0xf] }
 0x15a   : > { %776 = vst [vmem:[%s750_s23 + $0x20] sm:$0xf] %v775_v41  ;;  %v789_v48 = vld [vmem:[%s1702_s20 + $0x2c] sm:$0xf]  ;;  %v791_v49 = vld [vmem:[%s1702_s20 + $0x30] sm:$0xf] }
 0x15b   : > { %778 = vst [vmem:[%s750_s23 + $0x28] sm:$0xf] %v777_v42  ;;  %v793_v50 = vld [vmem:[%s1702_s20 + $0x34] sm:$0xf]  ;;  %v795_v51 = vld [vmem:[%s1702_s20 + $0x38] sm:$0xf] }
 0x15c   : > { %780 = vst [vmem:[%s750_s23 + $0x30] sm:$0xf] %v779_v43  ;;  %v797_v52 = vld [vmem:[%s1702_s20 + $0x3c] sm:$0xf] }
 0x15d   : > { %782 = vst [vmem:[%s750_s23 + $0x38] sm:$0xf] %v781_v44 }
 0x15e   : > { %784 = vst [vmem:[%s750_s23 + $0x40] sm:$0xf] %v783_v45 }
 0x15f   : > { %786 = vst [vmem:[%s750_s23 + $0x48] sm:$0xf] %v785_v46 }
 0x160   : > { %788 = vst [vmem:[%s750_s23 + $0x50] sm:$0xf] %v787_v47 }
 0x161   : > { %790 = vst [vmem:[%s750_s23 + $0x58] sm:$0xf] %v789_v48 }
 0x162   : > { %792 = vst [vmem:[%s750_s23 + $0x60] sm:$0xf] %v791_v49 }
 0x163   : > { %794 = vst [vmem:[%s750_s23 + $0x68] sm:$0xf] %v793_v50 }
 0x164   : > { %796 = vst [vmem:[%s750_s23 + $0x70] sm:$0xf] %v795_v51 }
 0x165   : > { %798 = vst [vmem:[%s750_s23 + $0x78] sm:$0xf] %v797_v52 }
 0x166 PF: > { %s15_s14 = sadd.s32 1, %s1331_s14   ;;  %s1939_s9 = smov %s1315_s10 }
 0x167   : > { %p12_p1 = scmp.ge.s32.totalorder %s15_s14, 4   ;;  %s1940_s10 = smov %s1319_s11 }
 0x168   : > { %s1941_s11 = smov %s1403_s21  ;;  %s1942_s12 = smov %s1327_s13 }
 0x169   : > { %s1943_s13 = smov %s1945_s16  ;;  %14 = sbr.rel (!%p12_p1) target bundleno = 4 (0x4), region = 164 }
 0x16e   :  { %864 = vsyncpa [#allocation6], 1 }
 0x16f   :  { %866 = vsyncpa [#allocation6 + $0x1], 1 }

// kernel: lstm_model_forward.5
= control target key start
LH: loop header
LB: loop body
LE: loop exit
PB: predicated region body
PF: predicated region fallthrough
CT: control target
= control target key end

     0   :  { %8 = vsyncpa [#allocation3], 0  ;;  %s964_s15 = smov [#allocation2]   ;;  %s965_s17 = smov 512   ;;  %s1507_s0 = inlined_call_operand.vmem [shape: bf16[128,32], index: 0, kind: input, shape index: {}]   ;;  %s1508_s1 = inlined_call_operand.hbm [shape: bf16[32,1024], index: 1, kind: input, shape index: {}]   ;;  %s1509_s2 = inlined_call_operand.vmem [shape: f32[1,1024], index: 2, kind: input, shape index: {}]   ;;  %s1510_s3 = inlined_call_operand.vmem [shape: bf16[128,1024], index: 3, kind: output, shape index: {}]  }
   0x1   :  { %s15_s14 = sshll.u32 %s1508_s1, 4  ;;  %s17_s16 = sshll.u32 %s964_s15, 4  ;;  %s16_s14 = int_to_ptr.hbm [resolvable:$true] %s15_s14  ;;  %s18_s16 = int_to_ptr.vmem [resolvable:$true] %s17_s16 }
   0x2   :  { %s966_s18 = smov 32  }
   0x3   :  { %23 = dma.hbm_to_vmem [thread:$0]  %s16_s14, 2048, %s18_s16, [#allocation3], %s965_s17, %s965_s17, %s966_s18  }
   0x4   :  { %962 = dma.done.wait [#allocation3], 2048  }
   0x5   :  { %963 = vsyncadd [#allocation3], 4294965248  ;;  %v817_v0 = vld [vmem:[#allocation2 + $0x40] sm:$0xf]  ;;  %v927_v2 = vld [vmem:[#allocation2 + $0x44] sm:$0xf] }
   0x6   :  { %v931_v1 = vld [vmem:[#allocation2 + $0x5c] sm:$0xf0]  ;;  %v819_v4 = vld [vmem:[#allocation2 + $0x60] sm:$0xf0]  ;;  %v825_v5 = vld [vmem:[#allocation2 + $0x48] sm:$0xf] }
   0x7   :  { %v818_v3 = vor.u32 %v931_v1, %v817_v0  ;;  %v932_v6 = vld [vmem:[#allocation2 + $0x64] sm:$0xf0]  ;;  %v822_v7 = vor.u32 %v927_v2, %v819_v4  ;;  %v928_v9 = vld [vmem:[#allocation2 + $0x4c] sm:$0xf]  ;;  %v785_v11 = vld [vmem:[#allocation2] sm:$0xf] }
   0x8   :  { %v826_v8 = vor.u32 %v932_v6, %v825_v5  ;;  %v827_v10 = vld [vmem:[#allocation2 + $0x68] sm:$0xf0]  ;;  %v923_v13 = vld [vmem:[#allocation2 + $0x1c] sm:$0xf0]  ;;  %v919_v14 = vld [vmem:[#allocation2 + $0x4] sm:$0xf] }
   0x9   :  { %232 = vmatpush.bf16.msra.mxu0 %v818_v3  ;;  %v830_v12 = vor.u32 %v928_v9, %v827_v10  ;;  %v787_v15 = vld [vmem:[#allocation2 + $0x20] sm:$0xf0]  ;;  %281 = vmatpush.bf16.msra.mxu1 %v822_v7  ;;  %v786_v16 = vor.u32 %v923_v13, %v785_v11  ;;  %v793_v18 = vld [vmem:[#allocation2 + $0x8] sm:$0xf]  ;;  %v920_v20 = vld [vmem:[#allocation2 + $0xc] sm:$0xf] }
   0xa   :  { %330 = vmatpush.bf16.msra.mxu2 %v826_v8  ;;  %v790_v17 = vor.u32 %v919_v14, %v787_v15  ;;  %v924_v19 = vld [vmem:[#allocation2 + $0x24] sm:$0xf0]  ;;  %v795_v22 = vld [vmem:[#allocation2 + $0x28] sm:$0xf0]  ;;  %v993_v23 = vld [vmem:[%s1507_s0] sm:$0xff]  ;;  %vm201_vm0 = vcmask 261120  }
   0xb   :  { %379 = vmatpush.bf16.msra.mxu3 %v830_v12  ;;  %v794_v21 = vor.u32 %v924_v19, %v793_v18  ;;  %v841_v24 = vld [vmem:[#allocation2 + $0x58] sm:$0xf]  ;;  %v798_v25 = vor.u32 %v920_v20, %v795_v22  ;;  %v930_v27 = vld [vmem:[#allocation2 + $0x5c] sm:$0xf]  ;;  %v833_v31 = vld [vmem:[#allocation2 + $0x50] sm:$0xf] }
   0xc   :  { %v934_v26 = vld [vmem:[#allocation2 + $0x74] sm:$0xf0]  ;;  %v843_v28 = vld [vmem:[#allocation2 + $0x78] sm:$0xf0]  ;;  %v933_v32 = vld [vmem:[#allocation2 + $0x6c] sm:$0xf0] }
   0xd   :  { %233 = vmatpush.bf16.msra.mxu0 %v786_v16  ;;  %v842_v29 = vor.u32 %v934_v26, %v841_v24  ;;  %v846_v30 = vor.u32 %v930_v27, %v843_v28  ;;  %v929_v33 = vld [vmem:[#allocation2 + $0x54] sm:$0xf]  ;;  %282 = vmatpush.bf16.msra.mxu1 %v790_v17  ;;  %v834_v34 = vor.u32 %v933_v32, %v833_v31  ;;  %v1006_v37 = vld [vmem:[%s1507_s0 + $0x8] sm:$0xff]  ;;  %v809_v39 = vld [vmem:[#allocation2 + $0x18] sm:$0xf] }
   0xe   :  { %331 = vmatpush.bf16.msra.mxu2 %v794_v21  ;;  %v835_v35 = vld [vmem:[#allocation2 + $0x70] sm:$0xf0]  ;;  %v926_v40 = vld [vmem:[#allocation2 + $0x34] sm:$0xf0]  ;;  %v922_v41 = vld [vmem:[#allocation2 + $0x1c] sm:$0xf] }
   0xf   :  { %380 = vmatpush.bf16.msra.mxu3 %v798_v25  ;;  %v838_v36 = vor.u32 %v929_v33, %v835_v35  ;;  %v1019_v38 = vld [vmem:[%s1507_s0 + $0x10] sm:$0xff]  ;;  %v810_v42 = vor.u32 %v926_v40, %v809_v39  ;;  %v811_v43 = vld [vmem:[#allocation2 + $0x38] sm:$0xf0]  ;;  %v1045_v52 = vld [vmem:[%s1507_s0 + $0x20] sm:$0xff] }
  0x10   :  { %847 = vmatmul.msk.bf16.vlgmr.msra.gmra.mxu0 %vm201_vm0, %v993_v23  ;;  %855 = vmatmul.msk.bf16.vlgmr.msra.gmra.mxu1 %vm201_vm0, %v993_v23  ;;  %v801_v44 = vld [vmem:[#allocation2 + $0x10] sm:$0xf]  ;;  %v814_v46 = vor.u32 %v922_v41, %v811_v43  ;;  %v921_v48 = vld [vmem:[#allocation2 + $0x14] sm:$0xf]  ;;  %v1032_v51 = vld [vmem:[%s1507_s0 + $0x18] sm:$0xff] }
  0x11   :  { %863 = vmatmul.msk.bf16.vlgmr.msra.gmra.mxu2 %vm201_vm0, %v993_v23  ;;  %428 = vmatpush.bf16.msrb.mxu0 %v834_v34  ;;  %v925_v45 = vld [vmem:[#allocation2 + $0x2c] sm:$0xf0]  ;;  %v803_v49 = vld [vmem:[#allocation2 + $0x30] sm:$0xf0]  ;;  %v1058_v53 = vld [vmem:[%s1507_s0 + $0x28] sm:$0xff] }
  0x12   :  { %526 = vmatpush.bf16.msrb.mxu2 %v842_v29  ;;  %871 = vmatmul.msk.bf16.vlgmr.msra.gmra.mxu3 %vm201_vm0, %v993_v23  ;;  %v802_v47 = vor.u32 %v925_v45, %v801_v44  ;;  %v806_v50 = vor.u32 %v921_v48, %v803_v49  ;;  %v1071_v54 = vld [vmem:[%s1507_s0 + $0x30] sm:$0xff]  ;;  %v1084_v55 = vld [vmem:[%s1507_s0 + $0x38] sm:$0xff]  ;;  %v1097_v56 = vld [vmem:[%s1509_s2] sm:$0xff] }
  0x13   :  { %575 = vmatpush.bf16.msrb.mxu3 %v846_v30  ;;  %477 = vmatpush.bf16.msrb.mxu1 %v838_v36  ;;  %v1100_v57 = vperm.slane %v1097_v56, 0  ;;  %v1103_v58 = vperm.slane %v1097_v56, 1  ;;  %v1114_v0 = vperm.slane %v1097_v56, 2  ;;  %v1119_v1 = vperm.slane %v1097_v56, 3 }
  0x15   :  { %429 = vmatpush.bf16.msrb.mxu0 %v802_v47 }
  0x16   :  { %527 = vmatpush.bf16.msrb.mxu2 %v810_v42 }
  0x17   :  { %576 = vmatpush.bf16.msrb.mxu3 %v814_v46  ;;  %478 = vmatpush.bf16.msrb.mxu1 %v806_v50 }
  0x20   :  { %848 = vmatmul.msk.bf16.gmra.mxu0 %vm201_vm0, %v1006_v37  ;;  %856 = vmatmul.msk.bf16.gmra.mxu1 %vm201_vm0, %v1006_v37 }
  0x21   :  { %864 = vmatmul.msk.bf16.gmra.mxu2 %vm201_vm0, %v1006_v37 }
  0x22   :  { %872 = vmatmul.msk.bf16.gmra.mxu3 %vm201_vm0, %v1006_v37 }
  0x30   :  { %849 = vmatmul.msk.bf16.gmra.mxu0 %vm201_vm0, %v1019_v38  ;;  %857 = vmatmul.msk.bf16.gmra.mxu1 %vm201_vm0, %v1019_v38 }
  0x31   :  { %865 = vmatmul.msk.bf16.gmra.mxu2 %vm201_vm0, %v1019_v38 }
  0x32   :  { %873 = vmatmul.msk.bf16.gmra.mxu3 %vm201_vm0, %v1019_v38 }
  0x40   :  { %850 = vmatmul.msk.bf16.gmra.mxu0 %vm201_vm0, %v1032_v51  ;;  %858 = vmatmul.msk.bf16.gmra.mxu1 %vm201_vm0, %v1032_v51 }
  0x41   :  { %866 = vmatmul.msk.bf16.gmra.mxu2 %vm201_vm0, %v1032_v51 }
  0x42   :  { %874 = vmatmul.msk.bf16.gmra.mxu3 %vm201_vm0, %v1032_v51 }
  0x50   :  { %851 = vmatmul.msk.bf16.gmra.mxu0 %vm201_vm0, %v1045_v52  ;;  %859 = vmatmul.msk.bf16.gmra.mxu1 %vm201_vm0, %v1045_v52 }
  0x51   :  { %867 = vmatmul.msk.bf16.gmra.mxu2 %vm201_vm0, %v1045_v52 }
  0x52   :  { %875 = vmatmul.msk.bf16.gmra.mxu3 %vm201_vm0, %v1045_v52 }
  0x60   :  { %852 = vmatmul.msk.bf16.gmra.mxu0 %vm201_vm0, %v1058_v53  ;;  %860 = vmatmul.msk.bf16.gmra.mxu1 %vm201_vm0, %v1058_v53 }
  0x61   :  { %868 = vmatmul.msk.bf16.gmra.mxu2 %vm201_vm0, %v1058_v53 }
  0x62   :  { %876 = vmatmul.msk.bf16.gmra.mxu3 %vm201_vm0, %v1058_v53 }
  0x70   :  { %853 = vmatmul.msk.bf16.gmra.mxu0 %vm201_vm0, %v1071_v54  ;;  %861 = vmatmul.msk.bf16.gmra.mxu1 %vm201_vm0, %v1071_v54 }
  0x71   :  { %869 = vmatmul.msk.bf16.gmra.mxu2 %vm201_vm0, %v1071_v54 }
  0x72   :  { %877 = vmatmul.msk.bf16.gmra.mxu3 %vm201_vm0, %v1071_v54 }
  0x80   :  { %854 = vmatmul.msk.bf16.gmra.mxu0 %vm201_vm0, %v1084_v55  ;;  %862 = vmatmul.msk.bf16.gmra.mxu1 %vm201_vm0, %v1084_v55 }
  0x81   :  { %870 = vmatmul.msk.bf16.gmra.mxu2 %vm201_vm0, %v1084_v55 }
  0x82   :  { %878 = vmatmul.msk.bf16.gmra.mxu3 %vm201_vm0, %v1084_v55 }
  0x8d   :  { %v235_v59 = vpop.f32.mrf.mxu0  ;;  %v284_v61 = vpop.f32.mrf.mxu1 }
  0x8e   :  { %v236_v60 = vadd.f32 %v235_v59, %v1100_v57  ;;  %v285_v62 = vadd.f32 %v284_v61, %v1103_v58 }
  0x90   :  { %879 = vmatmul.msk.bf16.vlgmr.msrb.gmra.mxu0 %vm201_vm0, %v993_v23  ;;  %v618_v63 = vpack.c.bf16 %v285_v62, %v236_v60  ;;  %887 = vmatmul.msk.bf16.vlgmr.msrb.gmra.mxu1 %vm201_vm0, %v993_v23 }
  0x91   :  { %895 = vmatmul.msk.bf16.vlgmr.msrb.gmra.mxu2 %vm201_vm0, %v993_v23 }
  0x92   :  { %903 = vmatmul.msk.bf16.vlgmr.msrb.gmra.mxu3 %vm201_vm0, %v993_v23  ;;  %682 = vst [vmem:[%s1510_s3] sm:$0xff] %v618_v63 }
  0x94   :  { %v333_v2 = vpop.f32.mrf.mxu2 }
  0x95   :  { %v334_v3 = vadd.f32 %v333_v2, %v1114_v0  ;;  %v382_v4 = vpop.f32.mrf.mxu3  ;;  %v237_v5 = vpop.f32.mrf.mxu0 }
  0x96   :  { %v383_v6 = vadd.f32 %v382_v4, %v1119_v1  ;;  %v238_v7 = vadd.f32 %v237_v5, %v1100_v57  ;;  %v286_v8 = vpop.f32.mrf.mxu1 }
  0x97   :  { %v287_v9 = vadd.f32 %v286_v8, %v1103_v58 }
  0x98   :  { %v619_v10 = vpack.c.bf16 %v383_v6, %v334_v3 }
  0x99   :  { %v622_v11 = vpack.c.bf16 %v287_v9, %v238_v7 }
  0x9a   :  { %683 = vst [vmem:[%s1510_s3 + $0x8] sm:$0xff] %v619_v10 }
  0x9b   :  { %686 = vst [vmem:[%s1510_s3 + $0x20] sm:$0xff] %v622_v11 }
  0x9c   :  { %v335_v12 = vpop.f32.mrf.mxu2 }
  0x9d   :  { %v336_v13 = vadd.f32 %v335_v12, %v1114_v0  ;;  %v384_v14 = vpop.f32.mrf.mxu3  ;;  %v240_v15 = vpop.f32.mrf.mxu0 }
  0x9e   :  { %v385_v16 = vadd.f32 %v384_v14, %v1119_v1  ;;  %v241_v17 = vadd.f32 %v240_v15, %v1100_v57  ;;  %v289_v18 = vpop.f32.mrf.mxu1 }
  0x9f   :  { %v290_v19 = vadd.f32 %v289_v18, %v1103_v58 }
  0xa0   :  { %v623_v20 = vpack.c.bf16 %v385_v16, %v336_v13  ;;  %880 = vmatmul.msk.bf16.gmra.mxu0 %vm201_vm0, %v1006_v37  ;;  %888 = vmatmul.msk.bf16.gmra.mxu1 %vm201_vm0, %v1006_v37 }
  0xa1   :  { %v626_v21 = vpack.c.bf16 %v290_v19, %v241_v17  ;;  %896 = vmatmul.msk.bf16.gmra.mxu2 %vm201_vm0, %v1006_v37 }
  0xa2   :  { %687 = vst [vmem:[%s1510_s3 + $0x28] sm:$0xff] %v623_v20  ;;  %904 = vmatmul.msk.bf16.gmra.mxu3 %vm201_vm0, %v1006_v37 }
  0xa3   :  { %690 = vst [vmem:[%s1510_s3 + $0x40] sm:$0xff] %v626_v21 }
  0xa4   :  { %v338_v22 = vpop.f32.mrf.mxu2 }
  0xa5   :  { %v339_v23 = vadd.f32 %v338_v22, %v1114_v0  ;;  %v387_v24 = vpop.f32.mrf.mxu3  ;;  %v242_v25 = vpop.f32.mrf.mxu0 }
  0xa6   :  { %v388_v26 = vadd.f32 %v387_v24, %v1119_v1  ;;  %v243_v27 = vadd.f32 %v242_v25, %v1100_v57  ;;  %v291_v28 = vpop.f32.mrf.mxu1 }
  0xa7   :  { %v292_v29 = vadd.f32 %v291_v28, %v1103_v58 }
  0xa8   :  { %v627_v30 = vpack.c.bf16 %v388_v26, %v339_v23 }
  0xa9   :  { %v630_v31 = vpack.c.bf16 %v292_v29, %v243_v27 }
  0xaa   :  { %691 = vst [vmem:[%s1510_s3 + $0x48] sm:$0xff] %v627_v30 }
  0xab   :  { %694 = vst [vmem:[%s1510_s3 + $0x60] sm:$0xff] %v630_v31 }
  0xac   :  { %v340_v32 = vpop.f32.mrf.mxu2 }
  0xad   :  { %v341_v33 = vadd.f32 %v340_v32, %v1114_v0  ;;  %v389_v34 = vpop.f32.mrf.mxu3  ;;  %v245_v35 = vpop.f32.mrf.mxu0 }
  0xae   :  { %v390_v36 = vadd.f32 %v389_v34, %v1119_v1  ;;  %v246_v37 = vadd.f32 %v245_v35, %v1100_v57  ;;  %v294_v39 = vpop.f32.mrf.mxu1 }
  0xaf   :  { %v295_v40 = vadd.f32 %v294_v39, %v1103_v58 }
  0xb0   :  { %v631_v41 = vpack.c.bf16 %v390_v36, %v341_v33  ;;  %881 = vmatmul.msk.bf16.gmra.mxu0 %vm201_vm0, %v1019_v38  ;;  %889 = vmatmul.msk.bf16.gmra.mxu1 %vm201_vm0, %v1019_v38 }
  0xb1   :  { %v634_v42 = vpack.c.bf16 %v295_v40, %v246_v37  ;;  %897 = vmatmul.msk.bf16.gmra.mxu2 %vm201_vm0, %v1019_v38 }
  0xb2   :  { %695 = vst [vmem:[%s1510_s3 + $0x68] sm:$0xff] %v631_v41  ;;  %905 = vmatmul.msk.bf16.gmra.mxu3 %vm201_vm0, %v1019_v38 }
  0xb3   :  { %698 = vst [vmem:[%s1510_s3 + $0x80] sm:$0xff] %v634_v42 }
  0xb4   :  { %v343_v43 = vpop.f32.mrf.mxu2 }
  0xb5   :  { %v344_v44 = vadd.f32 %v343_v43, %v1114_v0  ;;  %v392_v45 = vpop.f32.mrf.mxu3  ;;  %v247_v46 = vpop.f32.mrf.mxu0 }
  0xb6   :  { %v393_v47 = vadd.f32 %v392_v45, %v1119_v1  ;;  %v248_v48 = vadd.f32 %v247_v46, %v1100_v57  ;;  %v296_v49 = vpop.f32.mrf.mxu1 }
  0xb7   :  { %v297_v50 = vadd.f32 %v296_v49, %v1103_v58 }
  0xb8   :  { %v635_v59 = vpack.c.bf16 %v393_v47, %v344_v44 }
  0xb9   :  { %v638_v60 = vpack.c.bf16 %v297_v50, %v248_v48 }
  0xba   :  { %699 = vst [vmem:[%s1510_s3 + $0x88] sm:$0xff] %v635_v59 }
  0xbb   :  { %702 = vst [vmem:[%s1510_s3 + $0xa0] sm:$0xff] %v638_v60 }
  0xbc   :  { %v345_v38 = vpop.f32.mrf.mxu2 }
  0xbd   :  { %v346_v61 = vadd.f32 %v345_v38, %v1114_v0  ;;  %v394_v62 = vpop.f32.mrf.mxu3  ;;  %v250_v63 = vpop.f32.mrf.mxu0 }
  0xbe   :  { %v395_v2 = vadd.f32 %v394_v62, %v1119_v1  ;;  %v251_v3 = vadd.f32 %v250_v63, %v1100_v57  ;;  %v299_v4 = vpop.f32.mrf.mxu1 }
  0xbf   :  { %v300_v5 = vadd.f32 %v299_v4, %v1103_v58 }
  0xc0   :  { %v639_v6 = vpack.c.bf16 %v395_v2, %v346_v61  ;;  %882 = vmatmul.msk.bf16.gmra.mxu0 %vm201_vm0, %v1032_v51  ;;  %890 = vmatmul.msk.bf16.gmra.mxu1 %vm201_vm0, %v1032_v51 }
  0xc1   :  { %v642_v7 = vpack.c.bf16 %v300_v5, %v251_v3  ;;  %898 = vmatmul.msk.bf16.gmra.mxu2 %vm201_vm0, %v1032_v51 }
  0xc2   :  { %703 = vst [vmem:[%s1510_s3 + $0xa8] sm:$0xff] %v639_v6  ;;  %906 = vmatmul.msk.bf16.gmra.mxu3 %vm201_vm0, %v1032_v51 }
  0xc3   :  { %706 = vst [vmem:[%s1510_s3 + $0xc0] sm:$0xff] %v642_v7 }
  0xc4   :  { %v348_v8 = vpop.f32.mrf.mxu2 }
  0xc5   :  { %v349_v9 = vadd.f32 %v348_v8, %v1114_v0  ;;  %v397_v10 = vpop.f32.mrf.mxu3  ;;  %v252_v11 = vpop.f32.mrf.mxu0 }
  0xc6   :  { %v398_v12 = vadd.f32 %v397_v10, %v1119_v1  ;;  %v253_v13 = vadd.f32 %v252_v11, %v1100_v57  ;;  %v301_v14 = vpop.f32.mrf.mxu1 }
  0xc7   :  { %v302_v15 = vadd.f32 %v301_v14, %v1103_v58 }
  0xc8   :  { %v643_v16 = vpack.c.bf16 %v398_v12, %v349_v9 }
  0xc9   :  { %v646_v17 = vpack.c.bf16 %v302_v15, %v253_v13 }
  0xca   :  { %707 = vst [vmem:[%s1510_s3 + $0xc8] sm:$0xff] %v643_v16 }
  0xcb   :  { %710 = vst [vmem:[%s1510_s3 + $0xe0] sm:$0xff] %v646_v17 }
  0xcc   :  { %v350_v51 = vpop.f32.mrf.mxu2 }
  0xcd   :  { %v351_v18 = vadd.f32 %v350_v51, %v1114_v0  ;;  %v399_v19 = vpop.f32.mrf.mxu3  ;;  %v255_v20 = vpop.f32.mrf.mxu0 }
  0xce   :  { %v400_v21 = vadd.f32 %v399_v19, %v1119_v1  ;;  %v256_v22 = vadd.f32 %v255_v20, %v1100_v57  ;;  %v304_v23 = vpop.f32.mrf.mxu1 }
  0xcf   :  { %v305_v24 = vadd.f32 %v304_v23, %v1103_v58 }
  0xd0   :  { %v647_v25 = vpack.c.bf16 %v400_v21, %v351_v18  ;;  %883 = vmatmul.msk.bf16.gmra.mxu0 %vm201_vm0, %v1045_v52  ;;  %891 = vmatmul.msk.bf16.gmra.mxu1 %vm201_vm0, %v1045_v52 }
  0xd1   :  { %v650_v26 = vpack.c.bf16 %v305_v24, %v256_v22  ;;  %899 = vmatmul.msk.bf16.gmra.mxu2 %vm201_vm0, %v1045_v52 }
  0xd2   :  { %711 = vst [vmem:[%s1510_s3 + $0xe8] sm:$0xff] %v647_v25  ;;  %907 = vmatmul.msk.bf16.gmra.mxu3 %vm201_vm0, %v1045_v52 }
  0xd3   :  { %714 = vst [vmem:[%s1510_s3 + $0x100] sm:$0xff] %v650_v26 }
  0xd4   :  { %v353_v27 = vpop.f32.mrf.mxu2 }
  0xd5   :  { %v354_v28 = vadd.f32 %v353_v27, %v1114_v0  ;;  %v402_v29 = vpop.f32.mrf.mxu3  ;;  %v257_v30 = vpop.f32.mrf.mxu0 }
  0xd6   :  { %v403_v31 = vadd.f32 %v402_v29, %v1119_v1  ;;  %v258_v32 = vadd.f32 %v257_v30, %v1100_v57  ;;  %v306_v33 = vpop.f32.mrf.mxu1 }
  0xd7   :  { %v307_v34 = vadd.f32 %v306_v33, %v1103_v58 }
  0xd8   :  { %v651_v35 = vpack.c.bf16 %v403_v31, %v354_v28 }
  0xd9   :  { %v654_v36 = vpack.c.bf16 %v307_v34, %v258_v32 }
  0xda   :  { %715 = vst [vmem:[%s1510_s3 + $0x108] sm:$0xff] %v651_v35 }
  0xdb   :  { %718 = vst [vmem:[%s1510_s3 + $0x120] sm:$0xff] %v654_v36 }
  0xdc   :  { %v355_v52 = vpop.f32.mrf.mxu2 }
  0xdd   :  { %v356_v37 = vadd.f32 %v355_v52, %v1114_v0  ;;  %v404_v39 = vpop.f32.mrf.mxu3  ;;  %v260_v40 = vpop.f32.mrf.mxu0 }
  0xde   :  { %v405_v41 = vadd.f32 %v404_v39, %v1119_v1  ;;  %v261_v42 = vadd.f32 %v260_v40, %v1100_v57  ;;  %v309_v43 = vpop.f32.mrf.mxu1  ;;  %v1334_v39 = vperm.slane %v1097_v56, 5 }
  0xdf   :  { %v310_v44 = vadd.f32 %v309_v43, %v1103_v58 }
  0xe0   :  { %v655_v45 = vpack.c.bf16 %v405_v41, %v356_v37  ;;  %884 = vmatmul.msk.bf16.gmra.mxu0 %vm201_vm0, %v1058_v53  ;;  %892 = vmatmul.msk.bf16.gmra.mxu1 %vm201_vm0, %v1058_v53 }
  0xe1   :  { %v658_v46 = vpack.c.bf16 %v310_v44, %v261_v42  ;;  %900 = vmatmul.msk.bf16.gmra.mxu2 %vm201_vm0, %v1058_v53 }
  0xe2   :  { %719 = vst [vmem:[%s1510_s3 + $0x128] sm:$0xff] %v655_v45  ;;  %908 = vmatmul.msk.bf16.gmra.mxu3 %vm201_vm0, %v1058_v53 }
  0xe3   :  { %722 = vst [vmem:[%s1510_s3 + $0x140] sm:$0xff] %v658_v46 }
  0xe4   :  { %v358_v47 = vpop.f32.mrf.mxu2 }
  0xe5   :  { %v359_v48 = vadd.f32 %v358_v47, %v1114_v0  ;;  %v407_v49 = vpop.f32.mrf.mxu3  ;;  %v262_v50 = vpop.f32.mrf.mxu0 }
  0xe6   :  { %v408_v59 = vadd.f32 %v407_v49, %v1119_v1  ;;  %v263_v60 = vadd.f32 %v262_v50, %v1100_v57  ;;  %v311_v38 = vpop.f32.mrf.mxu1 }
  0xe7   :  { %v312_v61 = vadd.f32 %v311_v38, %v1103_v58 }
  0xe8   :  { %v659_v62 = vpack.c.bf16 %v408_v59, %v359_v48  ;;  %v1341_v48 = vperm.slane %v1097_v56, 6 }
  0xe9   :  { %v662_v63 = vpack.c.bf16 %v312_v61, %v263_v60 }
  0xea   :  { %723 = vst [vmem:[%s1510_s3 + $0x148] sm:$0xff] %v659_v62 }
  0xeb   :  { %726 = vst [vmem:[%s1510_s3 + $0x160] sm:$0xff] %v662_v63 }
  0xec   :  { %v360_v53 = vpop.f32.mrf.mxu2 }
  0xed   :  { %v361_v2 = vadd.f32 %v360_v53, %v1114_v0  ;;  %v409_v3 = vpop.f32.mrf.mxu3  ;;  %v265_v4 = vpop.f32.mrf.mxu0 }
  0xee   :  { %v410_v5 = vadd.f32 %v409_v3, %v1119_v1  ;;  %v266_v6 = vadd.f32 %v265_v4, %v1100_v57  ;;  %v314_v7 = vpop.f32.mrf.mxu1 }
  0xef   :  { %v315_v8 = vadd.f32 %v314_v7, %v1103_v58 }
  0xf0   :  { %v663_v9 = vpack.c.bf16 %v410_v5, %v361_v2  ;;  %885 = vmatmul.msk.bf16.gmra.mxu0 %vm201_vm0, %v1071_v54  ;;  %893 = vmatmul.msk.bf16.gmra.mxu1 %vm201_vm0, %v1071_v54 }
  0xf1   :  { %v666_v10 = vpack.c.bf16 %v315_v8, %v266_v6  ;;  %901 = vmatmul.msk.bf16.gmra.mxu2 %vm201_vm0, %v1071_v54 }
  0xf2   :  { %727 = vst [vmem:[%s1510_s3 + $0x168] sm:$0xff] %v663_v9  ;;  %909 = vmatmul.msk.bf16.gmra.mxu3 %vm201_vm0, %v1071_v54 }
  0xf3   :  { %730 = vst [vmem:[%s1510_s3 + $0x180] sm:$0xff] %v666_v10 }
  0xf4   :  { %v363_v11 = vpop.f32.mrf.mxu2 }
  0xf5   :  { %v364_v12 = vadd.f32 %v363_v11, %v1114_v0  ;;  %v412_v13 = vpop.f32.mrf.mxu3  ;;  %v267_v14 = vpop.f32.mrf.mxu0 }
  0xf6   :  { %v413_v15 = vadd.f32 %v412_v13, %v1119_v1  ;;  %v268_v16 = vadd.f32 %v267_v14, %v1100_v57  ;;  %v316_v17 = vpop.f32.mrf.mxu1 }
  0xf7   :  { %v317_v51 = vadd.f32 %v316_v17, %v1103_v58 }
  0xf8   :  { %v667_v18 = vpack.c.bf16 %v413_v15, %v364_v12 }
  0xf9   :  { %v670_v19 = vpack.c.bf16 %v317_v51, %v268_v16 }
  0xfa   :  { %731 = vst [vmem:[%s1510_s3 + $0x188] sm:$0xff] %v667_v18 }
  0xfb   :  { %734 = vst [vmem:[%s1510_s3 + $0x1a0] sm:$0xff] %v670_v19 }
  0xfc   :  { %v365_v54 = vpop.f32.mrf.mxu2 }
  0xfd   :  { %v366_v20 = vadd.f32 %v365_v54, %v1114_v0  ;;  %v414_v21 = vpop.f32.mrf.mxu3  ;;  %v270_v22 = vpop.f32.mrf.mxu0 }
  0xfe   :  { %v415_v23 = vadd.f32 %v414_v21, %v1119_v1  ;;  %v271_v24 = vadd.f32 %v270_v22, %v1100_v57  ;;  %v319_v25 = vpop.f32.mrf.mxu1 }
  0xff   :  { %v320_v26 = vadd.f32 %v319_v25, %v1103_v58 }
 0x100   :  { %v671_v27 = vpack.c.bf16 %v415_v23, %v366_v20  ;;  %886 = vmatmul.msk.bf16.gmra.mxu0 %vm201_vm0, %v1084_v55  ;;  %894 = vmatmul.msk.bf16.gmra.mxu1 %vm201_vm0, %v1084_v55 }
 0x101   :  { %v674_v28 = vpack.c.bf16 %v320_v26, %v271_v24  ;;  %902 = vmatmul.msk.bf16.gmra.mxu2 %vm201_vm0, %v1084_v55 }
 0x102   :  { %735 = vst [vmem:[%s1510_s3 + $0x1a8] sm:$0xff] %v671_v27  ;;  %910 = vmatmul.msk.bf16.gmra.mxu3 %vm201_vm0, %v1084_v55  ;;  %v1328_v55 = vperm.slane %v1097_v56, 4 }
 0x103   :  { %738 = vst [vmem:[%s1510_s3 + $0x1c0] sm:$0xff] %v674_v28 }
 0x104   :  { %v368_v29 = vpop.f32.mrf.mxu2 }
 0x105   :  { %v369_v30 = vadd.f32 %v368_v29, %v1114_v0  ;;  %v417_v31 = vpop.f32.mrf.mxu3  ;;  %v272_v32 = vpop.f32.mrf.mxu0 }
 0x106   :  { %v418_v33 = vadd.f32 %v417_v31, %v1119_v1  ;;  %v273_v34 = vadd.f32 %v272_v32, %v1100_v57  ;;  %v321_v35 = vpop.f32.mrf.mxu1 }
 0x107   :  { %v322_v36 = vadd.f32 %v321_v35, %v1103_v58 }
 0x108   :  { %v675_v52 = vpack.c.bf16 %v418_v33, %v369_v30 }
 0x109   :  { %v678_v37 = vpack.c.bf16 %v322_v36, %v273_v34 }
 0x10a   :  { %739 = vst [vmem:[%s1510_s3 + $0x1c8] sm:$0xff] %v675_v52 }
 0x10b   :  { %742 = vst [vmem:[%s1510_s3 + $0x1e0] sm:$0xff] %v678_v37 }
 0x10c   :  { %v370_v57 = vpop.f32.mrf.mxu2 }
 0x10d   :  { %v371_v40 = vadd.f32 %v370_v57, %v1114_v0  ;;  %v419_v58 = vpop.f32.mrf.mxu3  ;;  %v431_v41 = vpop.f32.mrf.mxu0  ;;  %v1347_v0 = vperm.slane %v1097_v56, 7 }
 0x10e   :  { %v420_v42 = vadd.f32 %v419_v58, %v1119_v1  ;;  %v432_v43 = vadd.f32 %v431_v41, %v1328_v55  ;;  %v480_v44 = vpop.f32.mrf.mxu1 }
 0x10f   :  { %v481_v45 = vadd.f32 %v480_v44, %v1334_v39 }
 0x110   :  { %v679_v46 = vpack.c.bf16 %v420_v42, %v371_v40 }
 0x111   :  { %v620_v47 = vpack.c.bf16 %v481_v45, %v432_v43 }
 0x112   :  { %743 = vst [vmem:[%s1510_s3 + $0x1e8] sm:$0xff] %v679_v46 }
 0x113   :  { %684 = vst [vmem:[%s1510_s3 + $0x10] sm:$0xff] %v620_v47 }
 0x114   :  { %v529_v1 = vpop.f32.mrf.mxu2 }
 0x115   :  { %v530_v49 = vadd.f32 %v529_v1, %v1341_v48  ;;  %v578_v50 = vpop.f32.mrf.mxu3  ;;  %v433_v59 = vpop.f32.mrf.mxu0 }
 0x116   :  { %v579_v60 = vadd.f32 %v578_v50, %v1347_v0  ;;  %v434_v38 = vadd.f32 %v433_v59, %v1328_v55  ;;  %v482_v61 = vpop.f32.mrf.mxu1 }
 0x117   :  { %v483_v62 = vadd.f32 %v482_v61, %v1334_v39 }
 0x118   :  { %v621_v63 = vpack.c.bf16 %v579_v60, %v530_v49 }
 0x119   :  { %v624_v53 = vpack.c.bf16 %v483_v62, %v434_v38 }
 0x11a   :  { %685 = vst [vmem:[%s1510_s3 + $0x18] sm:$0xff] %v621_v63 }
 0x11b   :  { %688 = vst [vmem:[%s1510_s3 + $0x30] sm:$0xff] %v624_v53 }
 0x11c   :  { %v531_v56 = vpop.f32.mrf.mxu2 }
 0x11d   :  { %v532_v2 = vadd.f32 %v531_v56, %v1341_v48  ;;  %v580_v3 = vpop.f32.mrf.mxu3  ;;  %v436_v4 = vpop.f32.mrf.mxu0 }
 0x11e   :  { %v581_v5 = vadd.f32 %v580_v3, %v1347_v0  ;;  %v437_v6 = vadd.f32 %v436_v4, %v1328_v55  ;;  %v485_v7 = vpop.f32.mrf.mxu1 }
 0x11f   :  { %v486_v8 = vadd.f32 %v485_v7, %v1334_v39 }
 0x120   :  { %v625_v9 = vpack.c.bf16 %v581_v5, %v532_v2 }
 0x121   :  { %v628_v10 = vpack.c.bf16 %v486_v8, %v437_v6 }
 0x122   :  { %689 = vst [vmem:[%s1510_s3 + $0x38] sm:$0xff] %v625_v9 }
 0x123   :  { %692 = vst [vmem:[%s1510_s3 + $0x50] sm:$0xff] %v628_v10 }
 0x124   :  { %v534_v11 = vpop.f32.mrf.mxu2 }
 0x125   :  { %v535_v12 = vadd.f32 %v534_v11, %v1341_v48  ;;  %v583_v13 = vpop.f32.mrf.mxu3  ;;  %v438_v14 = vpop.f32.mrf.mxu0 }
 0x126   :  { %v584_v15 = vadd.f32 %v583_v13, %v1347_v0  ;;  %v439_v16 = vadd.f32 %v438_v14, %v1328_v55  ;;  %v487_v17 = vpop.f32.mrf.mxu1 }
 0x127   :  { %v488_v51 = vadd.f32 %v487_v17, %v1334_v39 }
 0x128   :  { %v629_v18 = vpack.c.bf16 %v584_v15, %v535_v12 }
 0x129   :  { %v632_v19 = vpack.c.bf16 %v488_v51, %v439_v16 }
 0x12a   :  { %693 = vst [vmem:[%s1510_s3 + $0x58] sm:$0xff] %v629_v18 }
 0x12b   :  { %696 = vst [vmem:[%s1510_s3 + $0x70] sm:$0xff] %v632_v19 }
 0x12c   :  { %v536_v54 = vpop.f32.mrf.mxu2 }
 0x12d   :  { %v537_v20 = vadd.f32 %v536_v54, %v1341_v48  ;;  %v585_v21 = vpop.f32.mrf.mxu3  ;;  %v441_v22 = vpop.f32.mrf.mxu0 }
 0x12e   :  { %v586_v23 = vadd.f32 %v585_v21, %v1347_v0  ;;  %v442_v24 = vadd.f32 %v441_v22, %v1328_v55  ;;  %v490_v25 = vpop.f32.mrf.mxu1 }
 0x12f   :  { %v491_v26 = vadd.f32 %v490_v25, %v1334_v39 }
 0x130   :  { %v633_v27 = vpack.c.bf16 %v586_v23, %v537_v20 }
 0x131   :  { %v636_v28 = vpack.c.bf16 %v491_v26, %v442_v24 }
 0x132   :  { %697 = vst [vmem:[%s1510_s3 + $0x78] sm:$0xff] %v633_v27 }
 0x133   :  { %700 = vst [vmem:[%s1510_s3 + $0x90] sm:$0xff] %v636_v28 }
 0x134   :  { %v539_v29 = vpop.f32.mrf.mxu2 }
 0x135   :  { %v540_v30 = vadd.f32 %v539_v29, %v1341_v48  ;;  %v588_v31 = vpop.f32.mrf.mxu3  ;;  %v443_v32 = vpop.f32.mrf.mxu0 }
 0x136   :  { %v589_v33 = vadd.f32 %v588_v31, %v1347_v0  ;;  %v444_v34 = vadd.f32 %v443_v32, %v1328_v55  ;;  %v492_v35 = vpop.f32.mrf.mxu1 }
 0x137   :  { %v493_v36 = vadd.f32 %v492_v35, %v1334_v39 }
 0x138   :  { %v637_v52 = vpack.c.bf16 %v589_v33, %v540_v30 }
 0x139   :  { %v640_v37 = vpack.c.bf16 %v493_v36, %v444_v34 }
 0x13a   :  { %701 = vst [vmem:[%s1510_s3 + $0x98] sm:$0xff] %v637_v52 }
 0x13b   :  { %704 = vst [vmem:[%s1510_s3 + $0xb0] sm:$0xff] %v640_v37 }
 0x13c   :  { %v541_v57 = vpop.f32.mrf.mxu2 }
 0x13d   :  { %v542_v40 = vadd.f32 %v541_v57, %v1341_v48  ;;  %v590_v58 = vpop.f32.mrf.mxu3  ;;  %v446_v41 = vpop.f32.mrf.mxu0 }
 0x13e   :  { %v591_v42 = vadd.f32 %v590_v58, %v1347_v0  ;;  %v447_v43 = vadd.f32 %v446_v41, %v1328_v55  ;;  %v495_v44 = vpop.f32.mrf.mxu1 }
 0x13f   :  { %v496_v45 = vadd.f32 %v495_v44, %v1334_v39 }
 0x140   :  { %v641_v46 = vpack.c.bf16 %v591_v42, %v542_v40 }
 0x141   :  { %v644_v47 = vpack.c.bf16 %v496_v45, %v447_v43 }
 0x142   :  { %705 = vst [vmem:[%s1510_s3 + $0xb8] sm:$0xff] %v641_v46 }
 0x143   :  { %708 = vst [vmem:[%s1510_s3 + $0xd0] sm:$0xff] %v644_v47 }
 0x144   :  { %v544_v1 = vpop.f32.mrf.mxu2 }
 0x145   :  { %v545_v49 = vadd.f32 %v544_v1, %v1341_v48  ;;  %v593_v50 = vpop.f32.mrf.mxu3  ;;  %v448_v59 = vpop.f32.mrf.mxu0 }
 0x146   :  { %v594_v60 = vadd.f32 %v593_v50, %v1347_v0  ;;  %v449_v38 = vadd.f32 %v448_v59, %v1328_v55  ;;  %v497_v61 = vpop.f32.mrf.mxu1 }
 0x147   :  { %v498_v62 = vadd.f32 %v497_v61, %v1334_v39 }
 0x148   :  { %v645_v63 = vpack.c.bf16 %v594_v60, %v545_v49 }
 0x149   :  { %v648_v53 = vpack.c.bf16 %v498_v62, %v449_v38 }
 0x14a   :  { %709 = vst [vmem:[%s1510_s3 + $0xd8] sm:$0xff] %v645_v63 }
 0x14b   :  { %712 = vst [vmem:[%s1510_s3 + $0xf0] sm:$0xff] %v648_v53 }
 0x14c   :  { %v546_v56 = vpop.f32.mrf.mxu2 }
 0x14d   :  { %v547_v2 = vadd.f32 %v546_v56, %v1341_v48  ;;  %v595_v3 = vpop.f32.mrf.mxu3  ;;  %v451_v4 = vpop.f32.mrf.mxu0 }
 0x14e   :  { %v596_v5 = vadd.f32 %v595_v3, %v1347_v0  ;;  %v452_v6 = vadd.f32 %v451_v4, %v1328_v55  ;;  %v500_v7 = vpop.f32.mrf.mxu1 }
 0x14f   :  { %v501_v8 = vadd.f32 %v500_v7, %v1334_v39 }
 0x150   :  { %v649_v9 = vpack.c.bf16 %v596_v5, %v547_v2 }
 0x151   :  { %v652_v10 = vpack.c.bf16 %v501_v8, %v452_v6 }
 0x152   :  { %713 = vst [vmem:[%s1510_s3 + $0xf8] sm:$0xff] %v649_v9 }
 0x153   :  { %716 = vst [vmem:[%s1510_s3 + $0x110] sm:$0xff] %v652_v10 }
 0x154   :  { %v549_v11 = vpop.f32.mrf.mxu2 }
 0x155   :  { %v550_v12 = vadd.f32 %v549_v11, %v1341_v48  ;;  %v598_v13 = vpop.f32.mrf.mxu3  ;;  %v453_v14 = vpop.f32.mrf.mxu0 }
 0x156   :  { %v599_v15 = vadd.f32 %v598_v13, %v1347_v0  ;;  %v454_v16 = vadd.f32 %v453_v14, %v1328_v55  ;;  %v502_v17 = vpop.f32.mrf.mxu1 }
 0x157   :  { %v503_v51 = vadd.f32 %v502_v17, %v1334_v39 }
 0x158   :  { %v653_v18 = vpack.c.bf16 %v599_v15, %v550_v12 }
 0x159   :  { %v656_v19 = vpack.c.bf16 %v503_v51, %v454_v16 }
 0x15a   :  { %717 = vst [vmem:[%s1510_s3 + $0x118] sm:$0xff] %v653_v18 }
 0x15b   :  { %720 = vst [vmem:[%s1510_s3 + $0x130] sm:$0xff] %v656_v19 }
 0x15c   :  { %v551_v54 = vpop.f32.mrf.mxu2 }
 0x15d   :  { %v552_v20 = vadd.f32 %v551_v54, %v1341_v48  ;;  %v600_v21 = vpop.f32.mrf.mxu3  ;;  %v456_v22 = vpop.f32.mrf.mxu0 }
 0x15e   :  { %v601_v23 = vadd.f32 %v600_v21, %v1347_v0  ;;  %v457_v24 = vadd.f32 %v456_v22, %v1328_v55  ;;  %v505_v25 = vpop.f32.mrf.mxu1 }
 0x15f   :  { %v506_v26 = vadd.f32 %v505_v25, %v1334_v39 }
 0x160   :  { %v657_v27 = vpack.c.bf16 %v601_v23, %v552_v20 }
 0x161   :  { %v660_v28 = vpack.c.bf16 %v506_v26, %v457_v24 }
 0x162   :  { %721 = vst [vmem:[%s1510_s3 + $0x138] sm:$0xff] %v657_v27 }
 0x163   :  { %724 = vst [vmem:[%s1510_s3 + $0x150] sm:$0xff] %v660_v28 }
 0x164   :  { %v554_v29 = vpop.f32.mrf.mxu2 }
 0x165   :  { %v555_v30 = vadd.f32 %v554_v29, %v1341_v48  ;;  %v603_v31 = vpop.f32.mrf.mxu3  ;;  %v458_v32 = vpop.f32.mrf.mxu0 }
 0x166   :  { %v604_v33 = vadd.f32 %v603_v31, %v1347_v0  ;;  %v459_v34 = vadd.f32 %v458_v32, %v1328_v55  ;;  %v507_v35 = vpop.f32.mrf.mxu1 }
 0x167   :  { %v508_v36 = vadd.f32 %v507_v35, %v1334_v39 }
 0x168   :  { %v661_v52 = vpack.c.bf16 %v604_v33, %v555_v30 }
 0x169   :  { %v664_v37 = vpack.c.bf16 %v508_v36, %v459_v34 }
 0x16a   :  { %725 = vst [vmem:[%s1510_s3 + $0x158] sm:$0xff] %v661_v52 }
 0x16b   :  { %728 = vst [vmem:[%s1510_s3 + $0x170] sm:$0xff] %v664_v37 }
 0x16c   :  { %v556_v57 = vpop.f32.mrf.mxu2 }
 0x16d   :  { %v557_v40 = vadd.f32 %v556_v57, %v1341_v48  ;;  %v605_v58 = vpop.f32.mrf.mxu3  ;;  %v461_v41 = vpop.f32.mrf.mxu0 }
 0x16e   :  { %v606_v42 = vadd.f32 %v605_v58, %v1347_v0  ;;  %v462_v43 = vadd.f32 %v461_v41, %v1328_v55  ;;  %v510_v44 = vpop.f32.mrf.mxu1 }
 0x16f   :  { %v511_v45 = vadd.f32 %v510_v44, %v1334_v39 }
 0x170   :  { %v665_v46 = vpack.c.bf16 %v606_v42, %v557_v40 }
 0x171   :  { %v668_v47 = vpack.c.bf16 %v511_v45, %v462_v43 }
 0x172   :  { %729 = vst [vmem:[%s1510_s3 + $0x178] sm:$0xff] %v665_v46 }
 0x173   :  { %732 = vst [vmem:[%s1510_s3 + $0x190] sm:$0xff] %v668_v47 }
 0x174   :  { %v559_v1 = vpop.f32.mrf.mxu2 }
 0x175   :  { %v560_v49 = vadd.f32 %v559_v1, %v1341_v48  ;;  %v608_v50 = vpop.f32.mrf.mxu3  ;;  %v463_v59 = vpop.f32.mrf.mxu0 }
 0x176   :  { %v609_v60 = vadd.f32 %v608_v50, %v1347_v0  ;;  %v464_v38 = vadd.f32 %v463_v59, %v1328_v55  ;;  %v512_v61 = vpop.f32.mrf.mxu1 }
 0x177   :  { %v513_v62 = vadd.f32 %v512_v61, %v1334_v39 }
 0x178   :  { %v669_v63 = vpack.c.bf16 %v609_v60, %v560_v49 }
 0x179   :  { %v672_v53 = vpack.c.bf16 %v513_v62, %v464_v38 }
 0x17a   :  { %733 = vst [vmem:[%s1510_s3 + $0x198] sm:$0xff] %v669_v63 }
 0x17b   :  { %736 = vst [vmem:[%s1510_s3 + $0x1b0] sm:$0xff] %v672_v53 }
 0x17c   :  { %v561_v56 = vpop.f32.mrf.mxu2 }
 0x17d   :  { %v562_v2 = vadd.f32 %v561_v56, %v1341_v48  ;;  %v610_v3 = vpop.f32.mrf.mxu3  ;;  %v466_v4 = vpop.f32.mrf.mxu0 }
 0x17e   :  { %v611_v5 = vadd.f32 %v610_v3, %v1347_v0  ;;  %v467_v6 = vadd.f32 %v466_v4, %v1328_v55  ;;  %v515_v7 = vpop.f32.mrf.mxu1 }
 0x17f   :  { %v516_v8 = vadd.f32 %v515_v7, %v1334_v39 }
 0x180   :  { %v673_v9 = vpack.c.bf16 %v611_v5, %v562_v2 }
 0x181   :  { %v676_v10 = vpack.c.bf16 %v516_v8, %v467_v6 }
 0x182   :  { %737 = vst [vmem:[%s1510_s3 + $0x1b8] sm:$0xff] %v673_v9 }
 0x183   :  { %740 = vst [vmem:[%s1510_s3 + $0x1d0] sm:$0xff] %v676_v10 }
 0x184   :  { %v564_v11 = vpop.f32.mrf.mxu2 }
 0x185   :  { %v565_v12 = vadd.f32 %v564_v11, %v1341_v48  ;;  %v613_v13 = vpop.f32.mrf.mxu3  ;;  %v468_v14 = vpop.f32.mrf.mxu0 }
 0x186   :  { %v614_v15 = vadd.f32 %v613_v13, %v1347_v0  ;;  %v469_v16 = vadd.f32 %v468_v14, %v1328_v55  ;;  %v517_v17 = vpop.f32.mrf.mxu1 }
 0x187   :  { %v518_v51 = vadd.f32 %v517_v17, %v1334_v39 }
 0x188   :  { %v677_v18 = vpack.c.bf16 %v614_v15, %v565_v12 }
 0x189   :  { %v680_v19 = vpack.c.bf16 %v518_v51, %v469_v16 }
 0x18a   :  { %741 = vst [vmem:[%s1510_s3 + $0x1d8] sm:$0xff] %v677_v18 }
 0x18b   :  { %744 = vst [vmem:[%s1510_s3 + $0x1f0] sm:$0xff] %v680_v19 }
 0x18c   :  { %v566_v54 = vpop.f32.mrf.mxu2 }
 0x18d   :  { %v567_v20 = vadd.f32 %v566_v54, %v1341_v48  ;;  %v615_v21 = vpop.f32.mrf.mxu3 }
 0x18e   :  { %v616_v22 = vadd.f32 %v615_v21, %v1347_v0 }
 0x190   :  { %v681_v55 = vpack.c.bf16 %v616_v22, %v567_v20 }
 0x192   :  { %745 = vst [vmem:[%s1510_s3 + $0x1f8] sm:$0xff] %v681_v55 }
 0x193   :  { %750 = vsyncpa [#allocation3], 1 }

// kernel: lstm_model_forward.7
= control target key start
LH: loop header
LB: loop body
LE: loop exit
PB: predicated region body
PF: predicated region fallthrough
CT: control target
= control target key end

     0   :  { %8 = vsyncpa [#allocation3], 0  ;;  %s2579_s15 = smov [#allocation2]   ;;  %s2580_s17 = smov 512   ;;  %s3215_s0 = inlined_call_operand.vmem [shape: bf16[128,256], index: 0, kind: input, shape index: {}]   ;;  %s3216_s1 = inlined_call_operand.hbm [shape: bf16[256,1024], index: 1, kind: input, shape index: {}]   ;;  %s3217_s2 = inlined_call_operand.vmem [shape: f32[1,1024], index: 2, kind: input, shape index: {}]   ;;  %s3218_s3 = inlined_call_operand.vmem [shape: bf16[128,1024], index: 3, kind: output, shape index: {}]  }
   0x1   :  { %s15_s14 = sshll.u32 %s3216_s1, 4  ;;  %s17_s16 = sshll.u32 %s2579_s15, 4  ;;  %s16_s14 = int_to_ptr.hbm [resolvable:$true] %s15_s14  ;;  %s18_s16 = int_to_ptr.vmem [resolvable:$true] %s17_s16 }
   0x2   :  { %s2581_s18 = smov 32  }
   0x3   :  { %23 = dma.hbm_to_vmem [thread:$0]  %s16_s14, 16384, %s18_s16, [#allocation3], %s2580_s17, %s2580_s17, %s2581_s18  }
   0x4   :  { %2577 = dma.done.wait [#allocation3], 16384  }
   0x5   :  { %2578 = vsyncadd [#allocation3], 4294950912  ;;  %v2119_v0 = vld [vmem:[#allocation2 + $0x1c0] sm:$0xf]  ;;  %v2477_v5 = vld [vmem:[#allocation2 + $0x1c4] sm:$0xf] }
   0x6   :  { %v2481_v1 = vld [vmem:[#allocation2 + $0x1dc] sm:$0xf0]  ;;  %v2121_v6 = vld [vmem:[#allocation2 + $0x1e0] sm:$0xf0] }
   0x7   :  { %v2375_v2 = vld [vmem:[#allocation2 + $0x3c0] sm:$0xf]  ;;  %v2120_v3 = vor.u32 %v2481_v1, %v2119_v0  ;;  %v2124_v8 = vor.u32 %v2477_v5, %v2121_v6  ;;  %v2541_v9 = vld [vmem:[#allocation2 + $0x3c4] sm:$0xf] }
   0x8   :  { %v2545_v4 = vld [vmem:[#allocation2 + $0x3dc] sm:$0xf0]  ;;  %v2377_v10 = vld [vmem:[#allocation2 + $0x3e0] sm:$0xf0] }
   0x9   :  { %v2376_v7 = vor.u32 %v2545_v4, %v2375_v2  ;;  %v2087_v11 = vld [vmem:[#allocation2 + $0x180] sm:$0xf]  ;;  %912 = vmatpush.bf16.msra.mxu0 %v2120_v3  ;;  %v2380_v12 = vor.u32 %v2541_v9, %v2377_v10  ;;  %1010 = vmatpush.bf16.msra.mxu2 %v2124_v8  ;;  %v2469_v18 = vld [vmem:[#allocation2 + $0x184] sm:$0xf] }
   0xa   :  { %v2473_v13 = vld [vmem:[#allocation2 + $0x19c] sm:$0xf0]  ;;  %v2089_v19 = vld [vmem:[#allocation2 + $0x1a0] sm:$0xf0] }
   0xb   :  { %v2343_v14 = vld [vmem:[#allocation2 + $0x380] sm:$0xf]  ;;  %961 = vmatpush.bf16.msra.mxu1 %v2376_v7  ;;  %v2088_v16 = vor.u32 %v2473_v13, %v2087_v11  ;;  %v2533_v20 = vld [vmem:[#allocation2 + $0x384] sm:$0xf]  ;;  %1059 = vmatpush.bf16.msra.mxu3 %v2380_v12  ;;  %v2092_v21 = vor.u32 %v2469_v18, %v2089_v19 }
   0xc   :  { %v2537_v15 = vld [vmem:[#allocation2 + $0x39c] sm:$0xf0]  ;;  %v2345_v22 = vld [vmem:[#allocation2 + $0x3a0] sm:$0xf0] }
   0xd   :  { %v2344_v17 = vor.u32 %v2537_v15, %v2343_v14  ;;  %v2055_v23 = vld [vmem:[#allocation2 + $0x140] sm:$0xf]  ;;  %v2348_v25 = vor.u32 %v2533_v20, %v2345_v22  ;;  %v2461_v28 = vld [vmem:[#allocation2 + $0x144] sm:$0xf]  ;;  %913 = vmatpush.bf16.msra.mxu0 %v2088_v16  ;;  %1011 = vmatpush.bf16.msra.mxu2 %v2092_v21 }
   0xe   :  { %v2465_v24 = vld [vmem:[#allocation2 + $0x15c] sm:$0xf0]  ;;  %v2057_v30 = vld [vmem:[#allocation2 + $0x160] sm:$0xf0] }
   0xf   :  { %v2311_v26 = vld [vmem:[#allocation2 + $0x340] sm:$0xf]  ;;  %v2056_v29 = vor.u32 %v2465_v24, %v2055_v23  ;;  %v2525_v31 = vld [vmem:[#allocation2 + $0x344] sm:$0xf]  ;;  %962 = vmatpush.bf16.msra.mxu1 %v2344_v17  ;;  %v2060_v34 = vor.u32 %v2461_v28, %v2057_v30  ;;  %1060 = vmatpush.bf16.msra.mxu3 %v2348_v25  ;;  %v2129_v30 = vld [vmem:[#allocation2 + $0x1e8] sm:$0xf0] }
  0x10   :  { %v2529_v27 = vld [vmem:[#allocation2 + $0x35c] sm:$0xf0]  ;;  %v2313_v32 = vld [vmem:[#allocation2 + $0x360] sm:$0xf0] }
  0x11   :  { %v2312_v33 = vor.u32 %v2529_v27, %v2311_v26  ;;  %v2023_v35 = vld [vmem:[#allocation2 + $0x100] sm:$0xf]  ;;  %v2316_v38 = vor.u32 %v2525_v31, %v2313_v32  ;;  %v2453_v40 = vld [vmem:[#allocation2 + $0x104] sm:$0xf]  ;;  %914 = vmatpush.bf16.msra.mxu0 %v2056_v29  ;;  %1012 = vmatpush.bf16.msra.mxu2 %v2060_v34  ;;  %v2478_v29 = vld [vmem:[#allocation2 + $0x1cc] sm:$0xf] }
  0x12   :  { %v2457_v36 = vld [vmem:[#allocation2 + $0x11c] sm:$0xf0]  ;;  %v2025_v41 = vld [vmem:[#allocation2 + $0x120] sm:$0xf0]  ;;  %v2406_v32 = vld [vmem:[%s3215_s0 + $0x4] sm:$0xf0] }
  0x13   :  { %v2279_v37 = vld [vmem:[#allocation2 + $0x300] sm:$0xf]  ;;  %v2517_v42 = vld [vmem:[#allocation2 + $0x304] sm:$0xf]  ;;  %v2024_v44 = vor.u32 %v2457_v36, %v2023_v35  ;;  %963 = vmatpush.bf16.msra.mxu1 %v2312_v33  ;;  %v2028_v46 = vor.u32 %v2453_v40, %v2025_v41  ;;  %1061 = vmatpush.bf16.msra.mxu3 %v2316_v38  ;;  %v2542_v33 = vld [vmem:[#allocation2 + $0x3cc] sm:$0xf]  ;;  %v2132_v40 = vor.u32 %v2478_v29, %v2129_v30 }
  0x14   :  { %v2521_v39 = vld [vmem:[#allocation2 + $0x31c] sm:$0xf0]  ;;  %v2281_v43 = vld [vmem:[#allocation2 + $0x320] sm:$0xf0]  ;;  %v2385_v34 = vld [vmem:[#allocation2 + $0x3e8] sm:$0xf0] }
  0x15   :  { %v2280_v45 = vor.u32 %v2521_v39, %v2279_v37  ;;  %v1991_v47 = vld [vmem:[#allocation2 + $0xc0] sm:$0xf]  ;;  %v2284_v50 = vor.u32 %v2517_v42, %v2281_v43  ;;  %v2445_v52 = vld [vmem:[#allocation2 + $0xc4] sm:$0xf]  ;;  %915 = vmatpush.bf16.msra.mxu0 %v2024_v44  ;;  %1013 = vmatpush.bf16.msra.mxu2 %v2028_v46  ;;  %v1833_v38 = vld [vmem:[%s3215_s0 + $0x8] sm:$0xf0] }
  0x16   :  { %v2449_v48 = vld [vmem:[#allocation2 + $0xdc] sm:$0xf0]  ;;  %v1993_v53 = vld [vmem:[#allocation2 + $0xe0] sm:$0xf0]  ;;  %v2127_v41 = vld [vmem:[#allocation2 + $0x1c8] sm:$0xf] }
  0x17   :  { %v2247_v49 = vld [vmem:[#allocation2 + $0x2c0] sm:$0xf]  ;;  %v2509_v54 = vld [vmem:[#allocation2 + $0x2c4] sm:$0xf]  ;;  %v1992_v56 = vor.u32 %v2449_v48, %v1991_v47  ;;  %964 = vmatpush.bf16.msra.mxu1 %v2280_v45  ;;  %v1996_v58 = vor.u32 %v2445_v52, %v1993_v53  ;;  %1062 = vmatpush.bf16.msra.mxu3 %v2284_v50  ;;  %v2482_v42 = vld [vmem:[#allocation2 + $0x1e4] sm:$0xf0]  ;;  %v2388_v45 = vor.u32 %v2542_v33, %v2385_v34 }
  0x18   :  { %v2513_v51 = vld [vmem:[#allocation2 + $0x2dc] sm:$0xf0]  ;;  %v2249_v55 = vld [vmem:[#allocation2 + $0x2e0] sm:$0xf0]  ;;  %v2383_v43 = vld [vmem:[#allocation2 + $0x3c8] sm:$0xf]  ;;  %v2128_v52 = vor.u32 %v2482_v42, %v2127_v41 }
  0x19   :  { %v2248_v57 = vor.u32 %v2513_v51, %v2247_v49  ;;  %v1959_v59 = vld [vmem:[#allocation2 + $0x80] sm:$0xf]  ;;  %v2252_v62 = vor.u32 %v2509_v54, %v2249_v55  ;;  %v2437_v0 = vld [vmem:[#allocation2 + $0x84] sm:$0xf]  ;;  %916 = vmatpush.bf16.msra.mxu0 %v1992_v56  ;;  %1014 = vmatpush.bf16.msra.mxu2 %v1996_v58  ;;  %v2546_v46 = vld [vmem:[#allocation2 + $0x3e4] sm:$0xf0] }
  0x1a   :  { %v2441_v60 = vld [vmem:[#allocation2 + $0x9c] sm:$0xf0]  ;;  %v1961_v1 = vld [vmem:[#allocation2 + $0xa0] sm:$0xf0]  ;;  %v2470_v47 = vld [vmem:[#allocation2 + $0x18c] sm:$0xf]  ;;  %v2384_v53 = vor.u32 %v2546_v46, %v2383_v43 }
  0x1b   :  { %v2215_v61 = vld [vmem:[#allocation2 + $0x280] sm:$0xf]  ;;  %v2501_v2 = vld [vmem:[#allocation2 + $0x284] sm:$0xf]  ;;  %v1960_v4 = vor.u32 %v2441_v60, %v1959_v59  ;;  %965 = vmatpush.bf16.msra.mxu1 %v2248_v57  ;;  %v1964_v6 = vor.u32 %v2437_v0, %v1961_v1  ;;  %1063 = vmatpush.bf16.msra.mxu3 %v2252_v62  ;;  %v2097_v48 = vld [vmem:[#allocation2 + $0x1a8] sm:$0xf0] }
  0x1c   :  { %v2505_v63 = vld [vmem:[#allocation2 + $0x29c] sm:$0xf0]  ;;  %v2217_v3 = vld [vmem:[#allocation2 + $0x2a0] sm:$0xf0]  ;;  %v2534_v50 = vld [vmem:[#allocation2 + $0x38c] sm:$0xf]  ;;  %v2100_v54 = vor.u32 %v2470_v47, %v2097_v48 }
  0x1d   :  { %v2216_v5 = vor.u32 %v2505_v63, %v2215_v61  ;;  %v1927_v7 = vld [vmem:[#allocation2 + $0x40] sm:$0xf]  ;;  %v2220_v10 = vor.u32 %v2501_v2, %v2217_v3  ;;  %v2429_v12 = vld [vmem:[#allocation2 + $0x44] sm:$0xf]  ;;  %917 = vmatpush.bf16.msra.mxu0 %v1960_v4  ;;  %1015 = vmatpush.bf16.msra.mxu2 %v1964_v6  ;;  %v2353_v51 = vld [vmem:[#allocation2 + $0x3a8] sm:$0xf0] }
  0x1e   :  { %v2433_v8 = vld [vmem:[#allocation2 + $0x5c] sm:$0xf0]  ;;  %v1929_v13 = vld [vmem:[#allocation2 + $0x60] sm:$0xf0]  ;;  %v2095_v55 = vld [vmem:[#allocation2 + $0x188] sm:$0xf]  ;;  %v2356_v57 = vor.u32 %v2534_v50, %v2353_v51 }
  0x1f   :  { %v2183_v9 = vld [vmem:[#allocation2 + $0x240] sm:$0xf]  ;;  %v2493_v14 = vld [vmem:[#allocation2 + $0x244] sm:$0xf]  ;;  %v1928_v16 = vor.u32 %v2433_v8, %v1927_v7  ;;  %966 = vmatpush.bf16.msra.mxu1 %v2216_v5  ;;  %v1932_v20 = vor.u32 %v2429_v12, %v1929_v13  ;;  %1064 = vmatpush.bf16.msra.mxu3 %v2220_v10  ;;  %v2474_v56 = vld [vmem:[#allocation2 + $0x1a4] sm:$0xf0] }
  0x20   :  { %v2497_v11 = vld [vmem:[#allocation2 + $0x25c] sm:$0xf0]  ;;  %v2185_v15 = vld [vmem:[#allocation2 + $0x260] sm:$0xf0]  ;;  %v2351_v58 = vld [vmem:[#allocation2 + $0x388] sm:$0xf]  ;;  %v2096_v60 = vor.u32 %v2474_v56, %v2095_v55 }
  0x21   :  { %v1895_v17 = vld [vmem:[#allocation2] sm:$0xf]  ;;  %v2184_v19 = vor.u32 %v2497_v11, %v2183_v9  ;;  %v2421_v23 = vld [vmem:[#allocation2 + $0x4] sm:$0xf]  ;;  %v2188_v24 = vor.u32 %v2493_v14, %v2185_v15  ;;  %918 = vmatpush.bf16.msra.mxu0 %v1928_v16  ;;  %1016 = vmatpush.bf16.msra.mxu2 %v1932_v20  ;;  %v2538_v59 = vld [vmem:[#allocation2 + $0x3a4] sm:$0xf0] }
  0x22   :  { %v2425_v18 = vld [vmem:[#allocation2 + $0x1c] sm:$0xf0]  ;;  %v1897_v25 = vld [vmem:[#allocation2 + $0x20] sm:$0xf0]  ;;  %v2462_v61 = vld [vmem:[#allocation2 + $0x14c] sm:$0xf]  ;;  %v2352_v0 = vor.u32 %v2538_v59, %v2351_v58 }
  0x23   :  { %v2151_v21 = vld [vmem:[#allocation2 + $0x200] sm:$0xf]  ;;  %v2485_v26 = vld [vmem:[#allocation2 + $0x204] sm:$0xf]  ;;  %v1896_v31 = vor.u32 %v2425_v18, %v1895_v17  ;;  %967 = vmatpush.bf16.msra.mxu1 %v2184_v19  ;;  %v1900_v36 = vor.u32 %v2421_v23, %v1897_v25  ;;  %1065 = vmatpush.bf16.msra.mxu3 %v2188_v24  ;;  %v2065_v62 = vld [vmem:[#allocation2 + $0x168] sm:$0xf0] }
  0x24   :  { %v2489_v22 = vld [vmem:[#allocation2 + $0x21c] sm:$0xf0]  ;;  %v2153_v27 = vld [vmem:[#allocation2 + $0x220] sm:$0xf0]  ;;  %v2526_v63 = vld [vmem:[#allocation2 + $0x34c] sm:$0xf]  ;;  %v2068_v1 = vor.u32 %v2462_v61, %v2065_v62 }
  0x25   :  { %v1831_v28 = vld [vmem:[%s3215_s0] sm:$0xf]  ;;  %v2152_v35 = vor.u32 %v2489_v22, %v2151_v21  ;;  %v2405_v37 = vld [vmem:[%s3215_s0 + $0x4] sm:$0xf]  ;;  %v2156_v39 = vor.u32 %v2485_v26, %v2153_v27  ;;  %919 = vmatpush.bf16.msra.mxu0 %v1896_v31  ;;  %1017 = vmatpush.bf16.msra.mxu2 %v1900_v36  ;;  %v2321_v2 = vld [vmem:[#allocation2 + $0x368] sm:$0xf0] }
  0x26   :  { %v2617_v44 = vor.u32 %v2406_v32, %v1831_v28  ;;  %v2619_v49 = vor.u32 %v2405_v37, %v1833_v38  ;;  %v2063_v3 = vld [vmem:[#allocation2 + $0x148] sm:$0xf]  ;;  %v2324_v5 = vor.u32 %v2526_v63, %v2321_v2  ;;  %v1839_v10 = vld [vmem:[%s3215_s0 + $0x10] sm:$0xf]  ;;  %v2408_v11 = vld [vmem:[%s3215_s0 + $0x14] sm:$0xf0] }
  0x27   :  { %968 = vmatpush.bf16.msra.mxu1 %v2152_v35  ;;  %1066 = vmatpush.bf16.msra.mxu3 %v2156_v39  ;;  %v2466_v4 = vld [vmem:[#allocation2 + $0x164] sm:$0xf0]  ;;  %v2407_v12 = vld [vmem:[%s3215_s0 + $0x14] sm:$0xf]  ;;  %v1841_v13 = vld [vmem:[%s3215_s0 + $0x18] sm:$0xf0]  ;;  %v2637_v14 = vor.u32 %v2408_v11, %v1839_v10 }
  0x28   :  { %920 = vmatmul.bf16.vlgmr.msra.gmra.mxu0 %v2617_v44  ;;  %1018 = vmatmul.bf16.vlgmr.msra.gmra.mxu2 %v2617_v44  ;;  %v2319_v6 = vld [vmem:[#allocation2 + $0x348] sm:$0xf]  ;;  %v2064_v8 = vor.u32 %v2466_v4, %v2063_v3  ;;  %v2639_v15 = vor.u32 %v2407_v12, %v1841_v13  ;;  %v2454_v16 = vld [vmem:[#allocation2 + $0x10c] sm:$0xf]  ;;  %v1847_v28 = vld [vmem:[%s3215_s0 + $0x20] sm:$0xf] }
  0x29   :  { %1206 = vmatpush.bf16.msrb.mxu2 %v2132_v40  ;;  %1108 = vmatpush.bf16.msrb.mxu0 %v2128_v52  ;;  %v2530_v7 = vld [vmem:[#allocation2 + $0x364] sm:$0xf0]  ;;  %v2033_v17 = vld [vmem:[#allocation2 + $0x128] sm:$0xf0]  ;;  %v2409_v30 = vld [vmem:[%s3215_s0 + $0x24] sm:$0xf] }
  0x2a   :  { %969 = vmatmul.bf16.vlgmr.msra.gmra.mxu1 %v2619_v49  ;;  %1067 = vmatmul.bf16.vlgmr.msra.gmra.mxu3 %v2619_v49  ;;  %v2320_v9 = vor.u32 %v2530_v7, %v2319_v6  ;;  %v2518_v18 = vld [vmem:[#allocation2 + $0x30c] sm:$0xf]  ;;  %v2036_v19 = vor.u32 %v2454_v16, %v2033_v17  ;;  %v2031_v21 = vld [vmem:[#allocation2 + $0x108] sm:$0xf]  ;;  %v1855_v47 = vld [vmem:[%s3215_s0 + $0x30] sm:$0xf] }
  0x2b   :  { %1255 = vmatpush.bf16.msrb.mxu3 %v2388_v45  ;;  %1157 = vmatpush.bf16.msrb.mxu1 %v2384_v53  ;;  %v2289_v20 = vld [vmem:[#allocation2 + $0x328] sm:$0xf0]  ;;  %v2458_v22 = vld [vmem:[#allocation2 + $0x124] sm:$0xf0]  ;;  %v2412_v48 = vld [vmem:[%s3215_s0 + $0x34] sm:$0xf0] }
  0x2c   :  { %v2292_v23 = vor.u32 %v2518_v18, %v2289_v20  ;;  %v2032_v24 = vor.u32 %v2458_v22, %v2031_v21  ;;  %v2287_v25 = vld [vmem:[#allocation2 + $0x308] sm:$0xf]  ;;  %v1849_v31 = vld [vmem:[%s3215_s0 + $0x28] sm:$0xf0]  ;;  %v2411_v50 = vld [vmem:[%s3215_s0 + $0x34] sm:$0xf]  ;;  %v2677_v52 = vor.u32 %v2412_v48, %v1855_v47 }
  0x2d   :  { %1207 = vmatpush.bf16.msrb.mxu2 %v2100_v54  ;;  %1109 = vmatpush.bf16.msrb.mxu0 %v2096_v60  ;;  %v2522_v26 = vld [vmem:[#allocation2 + $0x324] sm:$0xf0]  ;;  %v2659_v33 = vor.u32 %v2409_v30, %v1849_v31  ;;  %v2446_v34 = vld [vmem:[#allocation2 + $0xcc] sm:$0xf]  ;;  %v1857_v51 = vld [vmem:[%s3215_s0 + $0x38] sm:$0xf0] }
  0x2e   :  { %v2288_v27 = vor.u32 %v2522_v26, %v2287_v25  ;;  %v2410_v29 = vld [vmem:[%s3215_s0 + $0x24] sm:$0xf0]  ;;  %v2001_v35 = vld [vmem:[#allocation2 + $0xe8] sm:$0xf0]  ;;  %v2679_v53 = vor.u32 %v2411_v50, %v1857_v51  ;;  %v1863_v2 = vld [vmem:[%s3215_s0 + $0x40] sm:$0xf] }
  0x2f   :  { %1256 = vmatpush.bf16.msrb.mxu3 %v2356_v57  ;;  %1158 = vmatpush.bf16.msrb.mxu1 %v2352_v0  ;;  %v2657_v32 = vor.u32 %v2410_v29, %v1847_v28  ;;  %v2510_v36 = vld [vmem:[#allocation2 + $0x2cc] sm:$0xf]  ;;  %v2004_v37 = vor.u32 %v2446_v34, %v2001_v35  ;;  %v1999_v39 = vld [vmem:[#allocation2 + $0xc8] sm:$0xf]  ;;  %v2413_v4 = vld [vmem:[%s3215_s0 + $0x44] sm:$0xf] }
  0x30   :  { %v2257_v38 = vld [vmem:[#allocation2 + $0x2e8] sm:$0xf0]  ;;  %v2450_v40 = vld [vmem:[#allocation2 + $0xe4] sm:$0xf0]  ;;  %v1871_v22 = vld [vmem:[%s3215_s0 + $0x50] sm:$0xf] }
  0x31   :  { %1208 = vmatpush.bf16.msrb.mxu2 %v2068_v1  ;;  %1110 = vmatpush.bf16.msrb.mxu0 %v2064_v8  ;;  %v2260_v41 = vor.u32 %v2510_v36, %v2257_v38  ;;  %v2000_v42 = vor.u32 %v2450_v40, %v1999_v39  ;;  %v2255_v43 = vld [vmem:[#allocation2 + $0x2c8] sm:$0xf]  ;;  %v2438_v54 = vld [vmem:[#allocation2 + $0x8c] sm:$0xf]  ;;  %v1873_v25 = vld [vmem:[%s3215_s0 + $0x58] sm:$0xf0] }
  0x32   :  { %v2514_v45 = vld [vmem:[#allocation2 + $0x2e4] sm:$0xf0]  ;;  %v1969_v55 = vld [vmem:[#allocation2 + $0xa8] sm:$0xf0]  ;;  %v2479_v50 = vld [vmem:[#allocation2 + $0x1d4] sm:$0xf] }
  0x33   :  { %1257 = vmatpush.bf16.msrb.mxu3 %v2324_v5  ;;  %1159 = vmatpush.bf16.msrb.mxu1 %v2320_v9  ;;  %v2256_v46 = vor.u32 %v2514_v45, %v2255_v43  ;;  %v2502_v56 = vld [vmem:[#allocation2 + $0x28c] sm:$0xf]  ;;  %v1972_v57 = vor.u32 %v2438_v54, %v1969_v55  ;;  %v1967_v59 = vld [vmem:[#allocation2 + $0x88] sm:$0xf]  ;;  %v2417_v45 = vld [vmem:[%s3215_s0 + $0x64] sm:$0xf] }
  0x34   :  { %v2225_v58 = vld [vmem:[#allocation2 + $0x2a8] sm:$0xf0]  ;;  %v2442_v60 = vld [vmem:[#allocation2 + $0xa4] sm:$0xf0]  ;;  %v2137_v51 = vld [vmem:[#allocation2 + $0x1f0] sm:$0xf0] }
  0x35   :  { %1209 = vmatpush.bf16.msrb.mxu2 %v2036_v19  ;;  %1111 = vmatpush.bf16.msrb.mxu0 %v2032_v24  ;;  %v2228_v61 = vor.u32 %v2502_v56, %v2225_v58  ;;  %v1968_v62 = vor.u32 %v2442_v60, %v1967_v59  ;;  %v2223_v63 = vld [vmem:[#allocation2 + $0x288] sm:$0xf]  ;;  %v1865_v5 = vld [vmem:[%s3215_s0 + $0x48] sm:$0xf0]  ;;  %v2415_v24 = vld [vmem:[%s3215_s0 + $0x54] sm:$0xf]  ;;  %v2140_v55 = vor.u32 %v2479_v50, %v2137_v51 }
  0x36   :  { %v2506_v0 = vld [vmem:[#allocation2 + $0x2a4] sm:$0xf0]  ;;  %v2699_v7 = vor.u32 %v2413_v4, %v1865_v5  ;;  %v2430_v8 = vld [vmem:[#allocation2 + $0x4c] sm:$0xf]  ;;  %v2543_v54 = vld [vmem:[#allocation2 + $0x3d4] sm:$0xf] }
  0x37   :  { %1258 = vmatpush.bf16.msrb.mxu3 %v2292_v23  ;;  %1160 = vmatpush.bf16.msrb.mxu1 %v2288_v27  ;;  %v2224_v1 = vor.u32 %v2506_v0, %v2223_v63  ;;  %v2414_v3 = vld [vmem:[%s3215_s0 + $0x44] sm:$0xf0]  ;;  %v1937_v9 = vld [vmem:[#allocation2 + $0x68] sm:$0xf0]  ;;  %v2416_v23 = vld [vmem:[%s3215_s0 + $0x54] sm:$0xf0]  ;;  %v2719_v27 = vor.u32 %v2415_v24, %v1873_v25 }
  0x38   :  { %925 = vmatmul.bf16.gmra.mxu0 %v2637_v14  ;;  %1023 = vmatmul.bf16.gmra.mxu2 %v2637_v14  ;;  %v2697_v6 = vor.u32 %v2414_v3, %v1863_v2  ;;  %v2494_v10 = vld [vmem:[#allocation2 + $0x24c] sm:$0xf]  ;;  %v1940_v11 = vor.u32 %v2430_v8, %v1937_v9  ;;  %v1935_v13 = vld [vmem:[#allocation2 + $0x48] sm:$0xf]  ;;  %v2717_v26 = vor.u32 %v2416_v23, %v1871_v22  ;;  %v2393_v56 = vld [vmem:[#allocation2 + $0x3f0] sm:$0xf0] }
  0x39   :  { %1210 = vmatpush.bf16.msrb.mxu2 %v2004_v37  ;;  %1112 = vmatpush.bf16.msrb.mxu0 %v2000_v42  ;;  %v2193_v12 = vld [vmem:[#allocation2 + $0x268] sm:$0xf0]  ;;  %v2434_v16 = vld [vmem:[#allocation2 + $0x64] sm:$0xf0]  ;;  %v1879_v42 = vld [vmem:[%s3215_s0 + $0x60] sm:$0xf] }
  0x3a   :  { %974 = vmatmul.bf16.gmra.mxu1 %v2639_v15  ;;  %1072 = vmatmul.bf16.gmra.mxu3 %v2639_v15  ;;  %v2196_v17 = vor.u32 %v2494_v10, %v2193_v12  ;;  %v1936_v18 = vor.u32 %v2434_v16, %v1935_v13  ;;  %v2191_v19 = vld [vmem:[#allocation2 + $0x248] sm:$0xf]  ;;  %v2422_v28 = vld [vmem:[#allocation2 + $0xc] sm:$0xf]  ;;  %v1887_v58 = vld [vmem:[%s3215_s0 + $0x70] sm:$0xf] }
  0x3b   :  { %1259 = vmatpush.bf16.msrb.mxu3 %v2260_v41  ;;  %1161 = vmatpush.bf16.msrb.mxu1 %v2256_v46  ;;  %v2498_v20 = vld [vmem:[#allocation2 + $0x264] sm:$0xf0]  ;;  %v1905_v29 = vld [vmem:[#allocation2 + $0x28] sm:$0xf0]  ;;  %v2420_v59 = vld [vmem:[%s3215_s0 + $0x74] sm:$0xf0] }
  0x3c   :  { %v2192_v21 = vor.u32 %v2498_v20, %v2191_v19  ;;  %v2486_v30 = vld [vmem:[#allocation2 + $0x20c] sm:$0xf]  ;;  %v1908_v31 = vor.u32 %v2422_v28, %v1905_v29  ;;  %v1903_v35 = vld [vmem:[#allocation2 + $0x8] sm:$0xf]  ;;  %v2419_v60 = vld [vmem:[%s3215_s0 + $0x74] sm:$0xf] }
  0x3d   :  { %1211 = vmatpush.bf16.msrb.mxu2 %v1972_v57  ;;  %1113 = vmatpush.bf16.msrb.mxu0 %v1968_v62  ;;  %v2161_v34 = vld [vmem:[#allocation2 + $0x228] sm:$0xf0]  ;;  %v2426_v36 = vld [vmem:[#allocation2 + $0x24] sm:$0xf0]  ;;  %v2396_v57 = vor.u32 %v2543_v54, %v2393_v56  ;;  %v2135_v62 = vld [vmem:[#allocation2 + $0x1d0] sm:$0xf] }
  0x3e   :  { %v2164_v37 = vor.u32 %v2486_v30, %v2161_v34  ;;  %v1904_v38 = vor.u32 %v2426_v36, %v1903_v35  ;;  %v2159_v39 = vld [vmem:[#allocation2 + $0x208] sm:$0xf]  ;;  %v1881_v46 = vld [vmem:[%s3215_s0 + $0x68] sm:$0xf0]  ;;  %v2483_v63 = vld [vmem:[#allocation2 + $0x1ec] sm:$0xf0] }
  0x3f   :  { %1260 = vmatpush.bf16.msrb.mxu3 %v2228_v61  ;;  %1162 = vmatpush.bf16.msrb.mxu1 %v2224_v1  ;;  %v2490_v40 = vld [vmem:[#allocation2 + $0x224] sm:$0xf0]  ;;  %v2739_v48 = vor.u32 %v2417_v45, %v1881_v46  ;;  %v1889_v61 = vld [vmem:[%s3215_s0 + $0x78] sm:$0xf0]  ;;  %v2391_v0 = vld [vmem:[#allocation2 + $0x3d0] sm:$0xf]  ;;  %v2757_v1 = vor.u32 %v2420_v59, %v1887_v58  ;;  %v2136_v2 = vor.u32 %v2483_v63, %v2135_v62 }
  0x40   :  { %v2160_v41 = vor.u32 %v2490_v40, %v2159_v39  ;;  %v2418_v43 = vld [vmem:[%s3215_s0 + $0x64] sm:$0xf0]  ;;  %v2547_v3 = vld [vmem:[#allocation2 + $0x3ec] sm:$0xf0]  ;;  %v2759_v4 = vor.u32 %v2419_v60, %v1889_v61  ;;  %v2471_v8 = vld [vmem:[#allocation2 + $0x194] sm:$0xf] }
  0x41   :  { %1212 = vmatpush.bf16.msrb.mxu2 %v1940_v11  ;;  %1114 = vmatpush.bf16.msrb.mxu0 %v1936_v18  ;;  %v2737_v47 = vor.u32 %v2418_v43, %v1879_v42  ;;  %v2392_v5 = vor.u32 %v2547_v3, %v2391_v0  ;;  %v2105_v9 = vld [vmem:[#allocation2 + $0x1b0] sm:$0xf0]  ;;  %v2768_v16 = vld [vmem:[%s3217_s2] sm:$0xff]  ;;  %v2475_v18 = vld [vmem:[#allocation2 + $0x1ac] sm:$0xf0] }
  0x42   :  { %v2535_v10 = vld [vmem:[#allocation2 + $0x394] sm:$0xf]  ;;  %v2108_v11 = vor.u32 %v2471_v8, %v2105_v9  ;;  %v2359_v19 = vld [vmem:[#allocation2 + $0x390] sm:$0xf]  ;;  %v2771_v22 = vperm.slane %v2768_v16, 0  ;;  %v2778_v29 = vperm.slane %v2768_v16, 1 }
  0x43   :  { %1261 = vmatpush.bf16.msrb.mxu3 %v2196_v17  ;;  %1163 = vmatpush.bf16.msrb.mxu1 %v2192_v21  ;;  %v2361_v12 = vld [vmem:[#allocation2 + $0x3b0] sm:$0xf0]  ;;  %v2103_v17 = vld [vmem:[#allocation2 + $0x190] sm:$0xf] }
  0x44   :  { %v2364_v13 = vor.u32 %v2535_v10, %v2361_v12  ;;  %v2104_v20 = vor.u32 %v2475_v18, %v2103_v17  ;;  %v2539_v21 = vld [vmem:[#allocation2 + $0x3ac] sm:$0xf0]  ;;  %v2463_v30 = vld [vmem:[#allocation2 + $0x154] sm:$0xf] }
  0x45   :  { %1213 = vmatpush.bf16.msrb.mxu2 %v1908_v31  ;;  %1115 = vmatpush.bf16.msrb.mxu0 %v1904_v38  ;;  %v2360_v24 = vor.u32 %v2539_v21, %v2359_v19  ;;  %v2073_v31 = vld [vmem:[#allocation2 + $0x170] sm:$0xf0]  ;;  %v2071_v51 = vld [vmem:[#allocation2 + $0x150] sm:$0xf] }
  0x46   :  { %v2527_v34 = vld [vmem:[#allocation2 + $0x354] sm:$0xf]  ;;  %v2076_v36 = vor.u32 %v2463_v30, %v2073_v31  ;;  %v2467_v54 = vld [vmem:[#allocation2 + $0x16c] sm:$0xf0] }
  0x47   :  { %1262 = vmatpush.bf16.msrb.mxu3 %v2164_v37  ;;  %1164 = vmatpush.bf16.msrb.mxu1 %v2160_v41  ;;  %v2329_v37 = vld [vmem:[#allocation2 + $0x370] sm:$0xf0]  ;;  %v2531_v58 = vld [vmem:[#allocation2 + $0x36c] sm:$0xf0] }
  0x48   :  { %930 = vmatmul.bf16.gmra.mxu0 %v2657_v32  ;;  %1028 = vmatmul.bf16.gmra.mxu2 %v2657_v32  ;;  %v2332_v42 = vor.u32 %v2527_v34, %v2329_v37  ;;  %v2455_v8 = vld [vmem:[#allocation2 + $0x114] sm:$0xf]  ;;  %v2039_v30 = vld [vmem:[#allocation2 + $0x110] sm:$0xf] }
  0x49   :  { %1402 = vmatpush.bf16.msra.mxu2 %v2140_v55  ;;  %1304 = vmatpush.bf16.msra.mxu0 %v2136_v2  ;;  %v2327_v55 = vld [vmem:[#allocation2 + $0x350] sm:$0xf]  ;;  %v2041_v9 = vld [vmem:[#allocation2 + $0x130] sm:$0xf0] }
  0x4a   :  { %979 = vmatmul.bf16.gmra.mxu1 %v2659_v33  ;;  %1077 = vmatmul.bf16.gmra.mxu3 %v2659_v33  ;;  %v2328_v62 = vor.u32 %v2531_v58, %v2327_v55  ;;  %v2519_v12 = vld [vmem:[#allocation2 + $0x314] sm:$0xf]  ;;  %v2459_v31 = vld [vmem:[#allocation2 + $0x12c] sm:$0xf0] }
  0x4b   :  { %1451 = vmatpush.bf16.msra.mxu3 %v2396_v57  ;;  %1353 = vmatpush.bf16.msra.mxu1 %v2392_v5  ;;  %v2072_v57 = vor.u32 %v2467_v54, %v2071_v51  ;;  %v2523_v37 = vld [vmem:[#allocation2 + $0x32c] sm:$0xf0]  ;;  %v2447_v51 = vld [vmem:[#allocation2 + $0xd4] sm:$0xf] }
  0x4c   :  { %v2009_v54 = vld [vmem:[#allocation2 + $0xf0] sm:$0xf0] }
  0x4d   :  { %1403 = vmatpush.bf16.msra.mxu2 %v2108_v11  ;;  %1305 = vmatpush.bf16.msra.mxu0 %v2104_v20  ;;  %v2044_v11 = vor.u32 %v2455_v8, %v2041_v9  ;;  %v2265_v58 = vld [vmem:[#allocation2 + $0x2f0] sm:$0xf0]  ;;  %v2007_v8 = vld [vmem:[#allocation2 + $0xd0] sm:$0xf] }
  0x4e   :  { %v2451_v9 = vld [vmem:[#allocation2 + $0xec] sm:$0xf0] }
  0x4f   :  { %1452 = vmatpush.bf16.msra.mxu3 %v2364_v13  ;;  %1354 = vmatpush.bf16.msra.mxu1 %v2360_v24  ;;  %v2297_v13 = vld [vmem:[#allocation2 + $0x330] sm:$0xf0] }
  0x50   :  { %v2300_v21 = vor.u32 %v2519_v12, %v2297_v13  ;;  %v2263_v12 = vld [vmem:[#allocation2 + $0x2d0] sm:$0xf] }
  0x51   :  { %1404 = vmatpush.bf16.msra.mxu2 %v2076_v36  ;;  %1306 = vmatpush.bf16.msra.mxu0 %v2072_v57  ;;  %v2295_v36 = vld [vmem:[#allocation2 + $0x310] sm:$0xf]  ;;  %v2511_v57 = vld [vmem:[#allocation2 + $0x2d4] sm:$0xf] }
  0x52   :  { %v2515_v13 = vld [vmem:[#allocation2 + $0x2ec] sm:$0xf0] }
  0x53   :  { %1453 = vmatpush.bf16.msra.mxu3 %v2332_v42  ;;  %1355 = vmatpush.bf16.msra.mxu1 %v2328_v62 }
  0x55   :  { %1405 = vmatpush.bf16.msra.mxu2 %v2044_v11  ;;  %v2008_v11 = vor.u32 %v2451_v9, %v2007_v8  ;;  %v2431_v8 = vld [vmem:[#allocation2 + $0x54] sm:$0xf] }
  0x56   :  { %v1945_v9 = vld [vmem:[#allocation2 + $0x70] sm:$0xf0] }
  0x57   :  { %1454 = vmatpush.bf16.msra.mxu3 %v2300_v21 }
  0x58   :  { %935 = vmatmul.bf16.gmra.mxu0 %v2677_v52  ;;  %1033 = vmatmul.bf16.gmra.mxu2 %v2677_v52 }
  0x5a   :  { %984 = vmatmul.bf16.gmra.mxu1 %v2679_v53  ;;  %1082 = vmatmul.bf16.gmra.mxu3 %v2679_v53 }
  0x68   :  { %940 = vmatmul.bf16.gmra.mxu0 %v2697_v6  ;;  %1038 = vmatmul.bf16.gmra.mxu2 %v2697_v6 }
  0x6a   :  { %989 = vmatmul.bf16.gmra.mxu1 %v2699_v7  ;;  %1087 = vmatmul.bf16.gmra.mxu3 %v2699_v7 }
  0x78   :  { %945 = vmatmul.bf16.gmra.mxu0 %v2717_v26  ;;  %1043 = vmatmul.bf16.gmra.mxu2 %v2717_v26 }
  0x7a   :  { %994 = vmatmul.bf16.gmra.mxu1 %v2719_v27  ;;  %1092 = vmatmul.bf16.gmra.mxu3 %v2719_v27 }
  0x88   :  { %950 = vmatmul.bf16.gmra.mxu0 %v2737_v47  ;;  %1048 = vmatmul.bf16.gmra.mxu2 %v2737_v47 }
  0x8a   :  { %999 = vmatmul.bf16.gmra.mxu1 %v2739_v48  ;;  %1097 = vmatmul.bf16.gmra.mxu3 %v2739_v48 }
  0x98   :  { %955 = vmatmul.bf16.gmra.mxu0 %v2757_v1  ;;  %1053 = vmatmul.bf16.gmra.mxu2 %v2757_v1 }
  0x9a   :  { %1004 = vmatmul.bf16.gmra.mxu1 %v2759_v4  ;;  %1102 = vmatmul.bf16.gmra.mxu3 %v2759_v4 }
  0xa5   :  { %v921_v23 = vpop.f32.mrf.mxu0 }
  0xa6   :  { %v922_v28 = vadd.f32 %v921_v23, %v2771_v22 }
  0xa7   :  { %v970_v25 = vpop.f32.mrf.mxu1 }
  0xa8   :  { %1116 = vmatmul.bf16.vlgmr.msrb.gmra.mxu0 %v2617_v44  ;;  %1214 = vmatmul.bf16.vlgmr.msrb.gmra.mxu2 %v2617_v44  ;;  %v971_v38 = vadd.f32 %v970_v25, %v922_v28 }
  0xaa   :  { %1165 = vmatmul.bf16.vlgmr.msrb.gmra.mxu1 %v2619_v49  ;;  %1263 = vmatmul.bf16.vlgmr.msrb.gmra.mxu3 %v2619_v49 }
  0xab   :  { %v1019_v35 = vpop.f32.mrf.mxu2 }
  0xac   :  { %v1020_v39 = vadd.f32 %v1019_v35, %v2778_v29  ;;  %v2040_v35 = vor.u32 %v2459_v31, %v2039_v30  ;;  %v2439_v30 = vld [vmem:[#allocation2 + $0x94] sm:$0xf] }
  0xad   :  { %v1068_v40 = vpop.f32.mrf.mxu3  ;;  %v923_v41 = vpop.f32.mrf.mxu0  ;;  %v1977_v31 = vld [vmem:[#allocation2 + $0xb0] sm:$0xf0] }
  0xae   :  { %v1069_v45 = vadd.f32 %v1068_v40, %v1020_v39  ;;  %v924_v50 = vadd.f32 %v923_v41, %v2771_v22  ;;  %v2296_v41 = vor.u32 %v2523_v37, %v2295_v36  ;;  %1307 = vmatpush.bf16.msra.mxu0 %v2040_v35  ;;  %v1980_v35 = vor.u32 %v2439_v30, %v1977_v31  ;;  %v2503_v36 = vld [vmem:[#allocation2 + $0x294] sm:$0xf]  ;;  %v1943_v30 = vld [vmem:[#allocation2 + $0x50] sm:$0xf] }
  0xaf   :  { %v972_v43 = vpop.f32.mrf.mxu1  ;;  %v2233_v37 = vld [vmem:[#allocation2 + $0x2b0] sm:$0xf0]  ;;  %v2435_v31 = vld [vmem:[#allocation2 + $0x6c] sm:$0xf0] }
  0xb0   :  { %v1696_v46 = vpack.c.bf16 %v1069_v45, %v971_v38  ;;  %v973_v0 = vadd.f32 %v972_v43, %v924_v50  ;;  %1356 = vmatpush.bf16.msra.mxu1 %v2296_v41 }
  0xb2   :  { %1760 = vst [vmem:[%s3218_s3] sm:$0xff] %v1696_v46  ;;  %1308 = vmatpush.bf16.msra.mxu0 %v2008_v11  ;;  %v1948_v11 = vor.u32 %v2431_v8, %v1945_v9  ;;  %v1911_v8 = vld [vmem:[#allocation2 + $0x10] sm:$0xf] }
  0xb3   :  { %v1021_v56 = vpop.f32.mrf.mxu2  ;;  %v2427_v9 = vld [vmem:[#allocation2 + $0x2c] sm:$0xf0] }
  0xb4   :  { %v1022_v59 = vadd.f32 %v1021_v56, %v2778_v29  ;;  %v2012_v56 = vor.u32 %v2447_v51, %v2009_v54  ;;  %v1975_v51 = vld [vmem:[#allocation2 + $0x90] sm:$0xf] }
  0xb5   :  { %v1070_v60 = vpop.f32.mrf.mxu3  ;;  %v926_v61 = vpop.f32.mrf.mxu0  ;;  %v2443_v54 = vld [vmem:[#allocation2 + $0xac] sm:$0xf0] }
  0xb6   :  { %v1071_v2 = vadd.f32 %v1070_v60, %v1022_v59  ;;  %v927_v5 = vadd.f32 %v926_v61, %v2771_v22  ;;  %1406 = vmatpush.bf16.msra.mxu2 %v2012_v56  ;;  %v1976_v56 = vor.u32 %v2443_v54, %v1975_v51  ;;  %v2423_v51 = vld [vmem:[#allocation2 + $0x14] sm:$0xf] }
  0xb7   :  { %v975_v63 = vpop.f32.mrf.mxu1  ;;  %v1913_v54 = vld [vmem:[#allocation2 + $0x30] sm:$0xf0] }
  0xb8   :  { %1121 = vmatmul.bf16.gmra.mxu0 %v2637_v14  ;;  %v1700_v3 = vpack.c.bf16 %v1071_v2, %v973_v0  ;;  %1219 = vmatmul.bf16.gmra.mxu2 %v2637_v14  ;;  %v976_v17 = vadd.f32 %v975_v63, %v927_v5  ;;  %v2268_v63 = vor.u32 %v2511_v57, %v2265_v58  ;;  %v2231_v57 = vld [vmem:[#allocation2 + $0x290] sm:$0xf] }
  0xb9   :  { %v2507_v58 = vld [vmem:[#allocation2 + $0x2ac] sm:$0xf0]  ;;  %1309 = vmatpush.bf16.msra.mxu0 %v1976_v56  ;;  %v1916_v56 = vor.u32 %v2423_v51, %v1913_v54  ;;  %v2143_v51 = vld [vmem:[#allocation2 + $0x1d8] sm:$0xf] }
  0xba   :  { %1170 = vmatmul.bf16.gmra.mxu1 %v2639_v15  ;;  %1268 = vmatmul.bf16.gmra.mxu3 %v2639_v15  ;;  %1764 = vst [vmem:[%s3218_s3 + $0x20] sm:$0xff] %v1700_v3  ;;  %v2484_v54 = vld [vmem:[#allocation2 + $0x1f4] sm:$0xf0] }
  0xbb   :  { %v1024_v10 = vpop.f32.mrf.mxu2  ;;  %1455 = vmatpush.bf16.msra.mxu3 %v2268_v63  ;;  %1407 = vmatpush.bf16.msra.mxu2 %v1980_v35  ;;  %v1944_v35 = vor.u32 %v2435_v31, %v1943_v30  ;;  %v2480_v30 = vld [vmem:[#allocation2 + $0x1dc] sm:$0xf] }
  0xbc   :  { %v1025_v18 = vadd.f32 %v1024_v10, %v2778_v29  ;;  %v2145_v31 = vld [vmem:[#allocation2 + $0x1f8] sm:$0xf0] }
  0xbd   :  { %v1073_v19 = vpop.f32.mrf.mxu3  ;;  %v928_v20 = vpop.f32.mrf.mxu0  ;;  %1310 = vmatpush.bf16.msra.mxu0 %v1944_v35  ;;  %v2148_v35 = vor.u32 %v2480_v30, %v2145_v31  ;;  %v2111_v30 = vld [vmem:[#allocation2 + $0x198] sm:$0xf] }
  0xbe   :  { %v1074_v24 = vadd.f32 %v1073_v19, %v1025_v18  ;;  %v929_v28 = vadd.f32 %v928_v20, %v2771_v22  ;;  %v2264_v20 = vor.u32 %v2515_v13, %v2263_v12  ;;  %v2495_v12 = vld [vmem:[#allocation2 + $0x254] sm:$0xf]  ;;  %v2476_v31 = vld [vmem:[#allocation2 + $0x1b4] sm:$0xf0] }
  0xbf   :  { %v977_v23 = vpop.f32.mrf.mxu1  ;;  %v2201_v13 = vld [vmem:[#allocation2 + $0x270] sm:$0xf0]  ;;  %1408 = vmatpush.bf16.msra.mxu2 %v1948_v11  ;;  %v1912_v11 = vor.u32 %v2427_v9, %v1911_v8  ;;  %v2472_v8 = vld [vmem:[#allocation2 + $0x19c] sm:$0xf] }
  0xc0   :  { %v1704_v25 = vpack.c.bf16 %v1074_v24, %v976_v17  ;;  %v978_v43 = vadd.f32 %v977_v23, %v929_v28  ;;  %1357 = vmatpush.bf16.msra.mxu1 %v2264_v20  ;;  %v2113_v9 = vld [vmem:[#allocation2 + $0x1b8] sm:$0xf0] }
  0xc1   :  { %1311 = vmatpush.bf16.msra.mxu0 %v1912_v11  ;;  %v2116_v11 = vor.u32 %v2472_v8, %v2113_v9  ;;  %v2468_v8 = vld [vmem:[#allocation2 + $0x174] sm:$0xf0] }
  0xc2   :  { %1768 = vst [vmem:[%s3218_s3 + $0x40] sm:$0xff] %v1704_v25 }
  0xc3   :  { %v1026_v34 = vpop.f32.mrf.mxu2  ;;  %1409 = vmatpush.bf16.msra.mxu2 %v1916_v56  ;;  %v2144_v56 = vor.u32 %v2484_v54, %v2143_v51  ;;  %v2464_v51 = vld [vmem:[#allocation2 + $0x15c] sm:$0xf] }
  0xc4   :  { %v1027_v38 = vadd.f32 %v1026_v34, %v2778_v29  ;;  %v2081_v54 = vld [vmem:[#allocation2 + $0x178] sm:$0xf0] }
  0xc5   :  { %v1075_v39 = vpop.f32.mrf.mxu3  ;;  %v931_v40 = vpop.f32.mrf.mxu0  ;;  %1500 = vmatpush.bf16.msrb.mxu0 %v2144_v56  ;;  %v2084_v56 = vor.u32 %v2464_v51, %v2081_v54  ;;  %v2460_v51 = vld [vmem:[#allocation2 + $0x134] sm:$0xf0] }
  0xc6   :  { %v1076_v45 = vadd.f32 %v1075_v39, %v1027_v38  ;;  %v932_v50 = vadd.f32 %v931_v40, %v2771_v22 }
  0xc7   :  { %v980_v42 = vpop.f32.mrf.mxu1  ;;  %1598 = vmatpush.bf16.msrb.mxu2 %v2148_v35  ;;  %v2112_v35 = vor.u32 %v2476_v31, %v2111_v30  ;;  %v2049_v30 = vld [vmem:[#allocation2 + $0x138] sm:$0xf0] }
  0xc8   :  { %1126 = vmatmul.bf16.gmra.mxu0 %v2657_v32  ;;  %v1708_v46 = vpack.c.bf16 %v1076_v45, %v978_v43  ;;  %1224 = vmatmul.bf16.gmra.mxu2 %v2657_v32  ;;  %v981_v59 = vadd.f32 %v980_v42, %v932_v50  ;;  %v2236_v42 = vor.u32 %v2503_v36, %v2233_v37  ;;  %v2199_v36 = vld [vmem:[#allocation2 + $0x250] sm:$0xf] }
  0xc9   :  { %v2499_v37 = vld [vmem:[#allocation2 + $0x26c] sm:$0xf0]  ;;  %1501 = vmatpush.bf16.msrb.mxu0 %v2112_v35  ;;  %v2520_v35 = vld [vmem:[#allocation2 + $0x31c] sm:$0xf] }
  0xca   :  { %1175 = vmatmul.bf16.gmra.mxu1 %v2659_v33  ;;  %1273 = vmatmul.bf16.gmra.mxu3 %v2659_v33  ;;  %1772 = vst [vmem:[%s3218_s3 + $0x60] sm:$0xff] %v1708_v46 }
  0xcb   :  { %v1029_v55 = vpop.f32.mrf.mxu2  ;;  %1456 = vmatpush.bf16.msra.mxu3 %v2236_v42  ;;  %1599 = vmatpush.bf16.msrb.mxu2 %v2116_v11  ;;  %v2335_v11 = vld [vmem:[#allocation2 + $0x358] sm:$0xf] }
  0xcc   :  { %v1030_v60 = vadd.f32 %v1029_v55, %v2778_v29 }
  0xcd   :  { %v1078_v61 = vpop.f32.mrf.mxu3  ;;  %v933_v62 = vpop.f32.mrf.mxu0 }
  0xce   :  { %v1079_v2 = vadd.f32 %v1078_v61, %v1030_v60  ;;  %v934_v5 = vadd.f32 %v933_v62, %v2771_v22  ;;  %v2232_v62 = vor.u32 %v2507_v58, %v2231_v57  ;;  %v2487_v57 = vld [vmem:[#allocation2 + $0x214] sm:$0xf] }
  0xcf   :  { %v982_v0 = vpop.f32.mrf.mxu1  ;;  %v2169_v58 = vld [vmem:[#allocation2 + $0x230] sm:$0xf0]  ;;  %1600 = vmatpush.bf16.msrb.mxu2 %v2084_v56  ;;  %v2303_v56 = vld [vmem:[#allocation2 + $0x318] sm:$0xf] }
  0xd0   :  { %v1712_v3 = vpack.c.bf16 %v1079_v2, %v981_v59  ;;  %v983_v23 = vadd.f32 %v982_v0, %v934_v5  ;;  %1358 = vmatpush.bf16.msra.mxu1 %v2232_v62 }
  0xd2   :  { %1776 = vst [vmem:[%s3218_s3 + $0x80] sm:$0xff] %v1712_v3 }
  0xd3   :  { %v1031_v10 = vpop.f32.mrf.mxu2 }
  0xd4   :  { %v1032_v17 = vadd.f32 %v1031_v10, %v2778_v29 }
  0xd5   :  { %v1080_v18 = vpop.f32.mrf.mxu3  ;;  %v936_v19 = vpop.f32.mrf.mxu0 }
  0xd6   :  { %v1081_v24 = vadd.f32 %v1080_v18, %v1032_v17  ;;  %v937_v28 = vadd.f32 %v936_v19, %v2771_v22 }
  0xd7   :  { %v985_v21 = vpop.f32.mrf.mxu1 }
  0xd8   :  { %1131 = vmatmul.bf16.gmra.mxu0 %v2677_v52  ;;  %v1716_v25 = vpack.c.bf16 %v1081_v24, %v983_v23  ;;  %1229 = vmatmul.bf16.gmra.mxu2 %v2677_v52  ;;  %v986_v38 = vadd.f32 %v985_v21, %v937_v28  ;;  %v2204_v21 = vor.u32 %v2495_v12, %v2201_v13  ;;  %v2167_v12 = vld [vmem:[#allocation2 + $0x210] sm:$0xf] }
  0xd9   :  { %v2491_v13 = vld [vmem:[#allocation2 + $0x22c] sm:$0xf0] }
  0xda   :  { %1180 = vmatmul.bf16.gmra.mxu1 %v2679_v53  ;;  %1278 = vmatmul.bf16.gmra.mxu3 %v2679_v53  ;;  %1780 = vst [vmem:[%s3218_s3 + $0xa0] sm:$0xff] %v1716_v25 }
  0xdb   :  { %v1034_v34 = vpop.f32.mrf.mxu2  ;;  %1457 = vmatpush.bf16.msra.mxu3 %v2204_v21 }
  0xdc   :  { %v1035_v39 = vadd.f32 %v1034_v34, %v2778_v29 }
  0xdd   :  { %v1083_v40 = vpop.f32.mrf.mxu3  ;;  %v938_v41 = vpop.f32.mrf.mxu0 }
  0xde   :  { %v1084_v45 = vadd.f32 %v1083_v40, %v1035_v39  ;;  %v939_v50 = vadd.f32 %v938_v41, %v2771_v22  ;;  %v2200_v41 = vor.u32 %v2499_v37, %v2199_v36  ;;  %v2544_v36 = vld [vmem:[#allocation2 + $0x3dc] sm:$0xf] }
  0xdf   :  { %v987_v43 = vpop.f32.mrf.mxu1  ;;  %v2401_v37 = vld [vmem:[#allocation2 + $0x3f8] sm:$0xf0] }
  0xe0   :  { %v1720_v46 = vpack.c.bf16 %v1084_v45, %v986_v38  ;;  %v988_v0 = vadd.f32 %v987_v43, %v939_v50  ;;  %1359 = vmatpush.bf16.msra.mxu1 %v2200_v41 }
  0xe2   :  { %1784 = vst [vmem:[%s3218_s3 + $0xc0] sm:$0xff] %v1720_v46 }
  0xe3   :  { %v1036_v55 = vpop.f32.mrf.mxu2 }
  0xe4   :  { %v1037_v59 = vadd.f32 %v1036_v55, %v2778_v29 }
  0xe5   :  { %v1085_v60 = vpop.f32.mrf.mxu3  ;;  %v941_v61 = vpop.f32.mrf.mxu0 }
  0xe6   :  { %v1086_v2 = vadd.f32 %v1085_v60, %v1037_v59  ;;  %v942_v5 = vadd.f32 %v941_v61, %v2771_v22 }
  0xe7   :  { %v990_v63 = vpop.f32.mrf.mxu1 }
  0xe8   :  { %1136 = vmatmul.bf16.gmra.mxu0 %v2697_v6  ;;  %v1724_v3 = vpack.c.bf16 %v1086_v2, %v988_v0  ;;  %1234 = vmatmul.bf16.gmra.mxu2 %v2697_v6  ;;  %v991_v17 = vadd.f32 %v990_v63, %v942_v5  ;;  %v2172_v63 = vor.u32 %v2487_v57, %v2169_v58  ;;  %v2399_v57 = vld [vmem:[#allocation2 + $0x3d8] sm:$0xf] }
  0xe9   :  { %v2548_v58 = vld [vmem:[#allocation2 + $0x3f4] sm:$0xf0] }
  0xea   :  { %1185 = vmatmul.bf16.gmra.mxu1 %v2699_v7  ;;  %1283 = vmatmul.bf16.gmra.mxu3 %v2699_v7  ;;  %1788 = vst [vmem:[%s3218_s3 + $0xe0] sm:$0xff] %v1724_v3 }
  0xeb   :  { %v1039_v10 = vpop.f32.mrf.mxu2  ;;  %1458 = vmatpush.bf16.msra.mxu3 %v2172_v63 }
  0xec   :  { %v1040_v18 = vadd.f32 %v1039_v10, %v2778_v29 }
  0xed   :  { %v1088_v19 = vpop.f32.mrf.mxu3  ;;  %v943_v20 = vpop.f32.mrf.mxu0 }
  0xee   :  { %v1089_v24 = vadd.f32 %v1088_v19, %v1040_v18  ;;  %v944_v28 = vadd.f32 %v943_v20, %v2771_v22  ;;  %v2168_v20 = vor.u32 %v2491_v13, %v2167_v12  ;;  %v2536_v12 = vld [vmem:[#allocation2 + $0x39c] sm:$0xf] }
  0xef   :  { %v992_v23 = vpop.f32.mrf.mxu1  ;;  %v2369_v13 = vld [vmem:[#allocation2 + $0x3b8] sm:$0xf0] }
  0xf0   :  { %v1728_v25 = vpack.c.bf16 %v1089_v24, %v991_v17  ;;  %v993_v43 = vadd.f32 %v992_v23, %v944_v28  ;;  %1360 = vmatpush.bf16.msra.mxu1 %v2168_v20 }
  0xf2   :  { %1792 = vst [vmem:[%s3218_s3 + $0x100] sm:$0xff] %v1728_v25 }
  0xf3   :  { %v1041_v34 = vpop.f32.mrf.mxu2 }
  0xf4   :  { %v1042_v38 = vadd.f32 %v1041_v34, %v2778_v29 }
  0xf5   :  { %v1090_v39 = vpop.f32.mrf.mxu3  ;;  %v946_v40 = vpop.f32.mrf.mxu0 }
  0xf6   :  { %v1091_v45 = vadd.f32 %v1090_v39, %v1042_v38  ;;  %v947_v50 = vadd.f32 %v946_v40, %v2771_v22 }
  0xf7   :  { %v995_v42 = vpop.f32.mrf.mxu1 }
  0xf8   :  { %1141 = vmatmul.bf16.gmra.mxu0 %v2717_v26  ;;  %v1732_v46 = vpack.c.bf16 %v1091_v45, %v993_v43  ;;  %1239 = vmatmul.bf16.gmra.mxu2 %v2717_v26  ;;  %v996_v59 = vadd.f32 %v995_v42, %v947_v50  ;;  %v2404_v42 = vor.u32 %v2544_v36, %v2401_v37  ;;  %v2367_v36 = vld [vmem:[#allocation2 + $0x398] sm:$0xf] }
  0xf9   :  { %v2540_v37 = vld [vmem:[#allocation2 + $0x3b4] sm:$0xf0] }
  0xfa   :  { %1190 = vmatmul.bf16.gmra.mxu1 %v2719_v27  ;;  %1288 = vmatmul.bf16.gmra.mxu3 %v2719_v27  ;;  %1796 = vst [vmem:[%s3218_s3 + $0x120] sm:$0xff] %v1732_v46 }
  0xfb   :  { %v1044_v55 = vpop.f32.mrf.mxu2  ;;  %1647 = vmatpush.bf16.msrb.mxu3 %v2404_v42  ;;  %v2368_v42 = vor.u32 %v2540_v37, %v2367_v36  ;;  %v2305_v36 = vld [vmem:[#allocation2 + $0x338] sm:$0xf0] }
  0xfc   :  { %v1045_v60 = vadd.f32 %v1044_v55, %v2778_v29 }
  0xfd   :  { %v1093_v61 = vpop.f32.mrf.mxu3  ;;  %v948_v62 = vpop.f32.mrf.mxu0 }
  0xfe   :  { %v1094_v2 = vadd.f32 %v1093_v61, %v1045_v60  ;;  %v949_v5 = vadd.f32 %v948_v62, %v2771_v22  ;;  %v2400_v62 = vor.u32 %v2548_v58, %v2399_v57  ;;  %v2528_v57 = vld [vmem:[#allocation2 + $0x35c] sm:$0xf] }
  0xff   :  { %v997_v0 = vpop.f32.mrf.mxu1  ;;  %v2337_v58 = vld [vmem:[#allocation2 + $0x378] sm:$0xf0] }
 0x100   :  { %v1736_v3 = vpack.c.bf16 %v1094_v2, %v996_v59  ;;  %v998_v23 = vadd.f32 %v997_v0, %v949_v5  ;;  %1549 = vmatpush.bf16.msrb.mxu1 %v2400_v62 }
 0x102   :  { %1800 = vst [vmem:[%s3218_s3 + $0x140] sm:$0xff] %v1736_v3 }
 0x103   :  { %v1046_v10 = vpop.f32.mrf.mxu2 }
 0x104   :  { %v1047_v17 = vadd.f32 %v1046_v10, %v2778_v29  ;;  %1550 = vmatpush.bf16.msrb.mxu1 %v2368_v42  ;;  %v2308_v42 = vor.u32 %v2520_v35, %v2305_v36  ;;  %v2516_v35 = vld [vmem:[#allocation2 + $0x2f4] sm:$0xf0] }
 0x105   :  { %v1095_v18 = vpop.f32.mrf.mxu3  ;;  %v951_v19 = vpop.f32.mrf.mxu0 }
 0x106   :  { %v1096_v24 = vadd.f32 %v1095_v18, %v1047_v17  ;;  %v952_v28 = vadd.f32 %v951_v19, %v2771_v22 }
 0x107   :  { %v1000_v21 = vpop.f32.mrf.mxu1 }
 0x108   :  { %1146 = vmatmul.bf16.gmra.mxu0 %v2737_v47  ;;  %v1740_v25 = vpack.c.bf16 %v1096_v24, %v998_v23  ;;  %1244 = vmatmul.bf16.gmra.mxu2 %v2737_v47  ;;  %v1001_v38 = vadd.f32 %v1000_v21, %v952_v28  ;;  %v2372_v21 = vor.u32 %v2536_v12, %v2369_v13  ;;  %v2532_v12 = vld [vmem:[#allocation2 + $0x374] sm:$0xf0] }
 0x10a   :  { %1195 = vmatmul.bf16.gmra.mxu1 %v2739_v48  ;;  %1293 = vmatmul.bf16.gmra.mxu3 %v2739_v48  ;;  %1804 = vst [vmem:[%s3218_s3 + $0x160] sm:$0xff] %v1740_v25 }
 0x10b   :  { %v1049_v34 = vpop.f32.mrf.mxu2  ;;  %1648 = vmatpush.bf16.msrb.mxu3 %v2372_v21 }
 0x10c   :  { %v1050_v39 = vadd.f32 %v1049_v34, %v2778_v29 }
 0x10d   :  { %v1098_v40 = vpop.f32.mrf.mxu3  ;;  %v953_v41 = vpop.f32.mrf.mxu0 }
 0x10e   :  { %v1099_v45 = vadd.f32 %v1098_v40, %v1050_v39  ;;  %v954_v50 = vadd.f32 %v953_v41, %v2771_v22  ;;  %v2886_v40 = vperm.slane %v2768_v16, 2 }
 0x10f   :  { %v1002_v43 = vpop.f32.mrf.mxu1 }
 0x110   :  { %v1744_v46 = vpack.c.bf16 %v1099_v45, %v1001_v38  ;;  %v1003_v0 = vadd.f32 %v1002_v43, %v954_v50 }
 0x112   :  { %1808 = vst [vmem:[%s3218_s3 + $0x180] sm:$0xff] %v1744_v46 }
 0x113   :  { %v1051_v55 = vpop.f32.mrf.mxu2 }
 0x114   :  { %v1052_v59 = vadd.f32 %v1051_v55, %v2778_v29 }
 0x115   :  { %v1100_v60 = vpop.f32.mrf.mxu3  ;;  %v956_v61 = vpop.f32.mrf.mxu0 }
 0x116   :  { %v1101_v2 = vadd.f32 %v1100_v60, %v1052_v59  ;;  %v957_v5 = vadd.f32 %v956_v61, %v2771_v22 }
 0x117   :  { %v1005_v63 = vpop.f32.mrf.mxu1 }
 0x118   :  { %1151 = vmatmul.bf16.gmra.mxu0 %v2757_v1  ;;  %v1748_v3 = vpack.c.bf16 %v1101_v2, %v1003_v0  ;;  %1249 = vmatmul.bf16.gmra.mxu2 %v2757_v1  ;;  %v1006_v17 = vadd.f32 %v1005_v63, %v957_v5  ;;  %v2340_v63 = vor.u32 %v2528_v57, %v2337_v58  ;;  %v2079_v5 = vld [vmem:[#allocation2 + $0x158] sm:$0xf] }
 0x119   :  { %v2524_v57 = vld [vmem:[#allocation2 + $0x334] sm:$0xf0] }
 0x11a   :  { %1200 = vmatmul.bf16.gmra.mxu1 %v2759_v4  ;;  %1298 = vmatmul.bf16.gmra.mxu3 %v2759_v4  ;;  %1812 = vst [vmem:[%s3218_s3 + $0x1a0] sm:$0xff] %v1748_v3 }
 0x11b   :  { %v1054_v10 = vpop.f32.mrf.mxu2  ;;  %1649 = vmatpush.bf16.msrb.mxu3 %v2340_v63 }
 0x11c   :  { %v1055_v18 = vadd.f32 %v1054_v10, %v2778_v29  ;;  %v2080_v10 = vor.u32 %v2468_v8, %v2079_v5  ;;  %v2017_v5 = vld [vmem:[#allocation2 + $0xf8] sm:$0xf0] }
 0x11d   :  { %v1103_v19 = vpop.f32.mrf.mxu3  ;;  %v958_v20 = vpop.f32.mrf.mxu0 }
 0x11e   :  { %v1104_v24 = vadd.f32 %v1103_v19, %v1055_v18  ;;  %v959_v28 = vadd.f32 %v958_v20, %v2771_v22  ;;  %v2336_v19 = vor.u32 %v2532_v12, %v2335_v11  ;;  %1502 = vmatpush.bf16.msrb.mxu0 %v2080_v10  ;;  %v2512_v10 = vld [vmem:[#allocation2 + $0x2dc] sm:$0xf] }
 0x11f   :  { %v1007_v23 = vpop.f32.mrf.mxu1  ;;  %1650 = vmatpush.bf16.msrb.mxu3 %v2308_v42  ;;  %v2273_v11 = vld [vmem:[#allocation2 + $0x2f8] sm:$0xf0] }
 0x120   :  { %v1752_v25 = vpack.c.bf16 %v1104_v24, %v1006_v17  ;;  %v1008_v45 = vadd.f32 %v1007_v23, %v959_v28  ;;  %1551 = vmatpush.bf16.msrb.mxu1 %v2336_v19  ;;  %v2456_v28 = vld [vmem:[#allocation2 + $0x11c] sm:$0xf]  ;;  %v2276_v19 = vor.u32 %v2512_v10, %v2273_v11  ;;  %v2508_v10 = vld [vmem:[#allocation2 + $0x2b4] sm:$0xf0] }
 0x122   :  { %1816 = vst [vmem:[%s3218_s3 + $0x1c0] sm:$0xff] %v1752_v25 }
 0x123   :  { %v1056_v34 = vpop.f32.mrf.mxu2  ;;  %1651 = vmatpush.bf16.msrb.mxu3 %v2276_v19 }
 0x124   :  { %v1057_v38 = vadd.f32 %v1056_v34, %v2778_v29  ;;  %v2893_v29 = vperm.slane %v2768_v16, 3  ;;  %v2052_v34 = vor.u32 %v2456_v28, %v2049_v30  ;;  %v2452_v28 = vld [vmem:[#allocation2 + $0xf4] sm:$0xf0] }
 0x125   :  { %v1105_v39 = vpop.f32.mrf.mxu3  ;;  %v1117_v41 = vpop.f32.mrf.mxu0 }
 0x126   :  { %v1106_v46 = vadd.f32 %v1105_v39, %v1057_v38  ;;  %v1118_v50 = vadd.f32 %v1117_v41, %v2886_v40  ;;  %1601 = vmatpush.bf16.msrb.mxu2 %v2052_v34  ;;  %v2271_v34 = vld [vmem:[#allocation2 + $0x2d8] sm:$0xf] }
 0x127   :  { %v1166_v43 = vpop.f32.mrf.mxu1 }
 0x128   :  { %1312 = vmatmul.bf16.vlgmr.msra.gmra.mxu0 %v2617_v44  ;;  %v1756_v22 = vpack.c.bf16 %v1106_v46, %v1008_v45  ;;  %1410 = vmatmul.bf16.vlgmr.msra.gmra.mxu2 %v2617_v44  ;;  %v1167_v59 = vadd.f32 %v1166_v43, %v1118_v50  ;;  %v2047_v50 = vld [vmem:[#allocation2 + $0x118] sm:$0xf] }
 0x12a   :  { %1361 = vmatmul.bf16.vlgmr.msra.gmra.mxu1 %v2619_v49  ;;  %1459 = vmatmul.bf16.vlgmr.msra.gmra.mxu3 %v2619_v49  ;;  %1820 = vst [vmem:[%s3218_s3 + $0x1e0] sm:$0xff] %v1756_v22 }
 0x12b   :  { %v1215_v55 = vpop.f32.mrf.mxu2 }
 0x12c   :  { %v1216_v60 = vadd.f32 %v1215_v55, %v2893_v29  ;;  %v2048_v55 = vor.u32 %v2460_v51, %v2047_v50  ;;  %v1985_v50 = vld [vmem:[#allocation2 + $0xb8] sm:$0xf0] }
 0x12d   :  { %v1264_v61 = vpop.f32.mrf.mxu3  ;;  %v1119_v62 = vpop.f32.mrf.mxu0 }
 0x12e   :  { %v1265_v0 = vadd.f32 %v1264_v61, %v1216_v60  ;;  %v1120_v3 = vadd.f32 %v1119_v62, %v2886_v40  ;;  %v2304_v61 = vor.u32 %v2524_v57, %v2303_v56  ;;  %1503 = vmatpush.bf16.msrb.mxu0 %v2048_v55  ;;  %v2504_v55 = vld [vmem:[#allocation2 + $0x29c] sm:$0xf] }
 0x12f   :  { %v1168_v16 = vpop.f32.mrf.mxu1  ;;  %v2241_v56 = vld [vmem:[#allocation2 + $0x2b8] sm:$0xf0] }
 0x130   :  { %v1697_v2 = vpack.c.bf16 %v1265_v0, %v1167_v59  ;;  %v1169_v21 = vadd.f32 %v1168_v16, %v1120_v3  ;;  %1552 = vmatpush.bf16.msrb.mxu1 %v2304_v61  ;;  %v2448_v3 = vld [vmem:[#allocation2 + $0xdc] sm:$0xf]  ;;  %v2244_v61 = vor.u32 %v2504_v55, %v2241_v56  ;;  %v2500_v55 = vld [vmem:[#allocation2 + $0x274] sm:$0xf0] }
 0x132   :  { %1761 = vst [vmem:[%s3218_s3 + $0x8] sm:$0xff] %v1697_v2  ;;  %1652 = vmatpush.bf16.msrb.mxu3 %v2244_v61 }
 0x133   :  { %v1217_v9 = vpop.f32.mrf.mxu2 }
 0x134   :  { %v1218_v13 = vadd.f32 %v1217_v9, %v2893_v29  ;;  %v2020_v9 = vor.u32 %v2448_v3, %v2017_v5  ;;  %v2444_v3 = vld [vmem:[#allocation2 + $0xb4] sm:$0xf0] }
 0x135   :  { %v1266_v17 = vpop.f32.mrf.mxu3  ;;  %v1122_v18 = vpop.f32.mrf.mxu0 }
 0x136   :  { %v1267_v23 = vadd.f32 %v1266_v17, %v1218_v13  ;;  %v1123_v25 = vadd.f32 %v1122_v18, %v2886_v40  ;;  %1602 = vmatpush.bf16.msrb.mxu2 %v2020_v9  ;;  %v2239_v9 = vld [vmem:[#allocation2 + $0x298] sm:$0xf] }
 0x137   :  { %v1171_v20 = vpop.f32.mrf.mxu1 }
 0x138   :  { %1317 = vmatmul.bf16.gmra.mxu0 %v2637_v14  ;;  %v1701_v24 = vpack.c.bf16 %v1267_v23, %v1169_v21  ;;  %1415 = vmatmul.bf16.gmra.mxu2 %v2637_v14  ;;  %v1172_v37 = vadd.f32 %v1171_v20, %v1123_v25  ;;  %v2015_v25 = vld [vmem:[#allocation2 + $0xd8] sm:$0xf] }
 0x13a   :  { %1366 = vmatmul.bf16.gmra.mxu1 %v2639_v15  ;;  %1464 = vmatmul.bf16.gmra.mxu3 %v2639_v15  ;;  %1765 = vst [vmem:[%s3218_s3 + $0x28] sm:$0xff] %v1701_v24 }
 0x13b   :  { %v1220_v31 = vpop.f32.mrf.mxu2 }
 0x13c   :  { %v1221_v38 = vadd.f32 %v1220_v31, %v2893_v29  ;;  %v2016_v31 = vor.u32 %v2452_v28, %v2015_v25  ;;  %v1953_v25 = vld [vmem:[#allocation2 + $0x78] sm:$0xf0] }
 0x13d   :  { %v1269_v39 = vpop.f32.mrf.mxu3  ;;  %v1124_v41 = vpop.f32.mrf.mxu0 }
 0x13e   :  { %v1270_v45 = vadd.f32 %v1269_v39, %v1221_v38  ;;  %v1125_v22 = vadd.f32 %v1124_v41, %v2886_v40  ;;  %v2272_v39 = vor.u32 %v2516_v35, %v2271_v34  ;;  %1504 = vmatpush.bf16.msrb.mxu0 %v2016_v31  ;;  %v2496_v31 = vld [vmem:[#allocation2 + $0x25c] sm:$0xf] }
 0x13f   :  { %v1173_v43 = vpop.f32.mrf.mxu1  ;;  %v2209_v34 = vld [vmem:[#allocation2 + $0x278] sm:$0xf0] }
 0x140   :  { %v1705_v46 = vpack.c.bf16 %v1270_v45, %v1172_v37  ;;  %v1174_v63 = vadd.f32 %v1173_v43, %v1125_v22  ;;  %1553 = vmatpush.bf16.msrb.mxu1 %v2272_v39  ;;  %v2440_v22 = vld [vmem:[#allocation2 + $0x9c] sm:$0xf]  ;;  %v2212_v39 = vor.u32 %v2496_v31, %v2209_v34  ;;  %v2492_v31 = vld [vmem:[#allocation2 + $0x234] sm:$0xf0] }
 0x142   :  { %1769 = vst [vmem:[%s3218_s3 + $0x48] sm:$0xff] %v1705_v46  ;;  %1653 = vmatpush.bf16.msrb.mxu3 %v2212_v39 }
 0x143   :  { %v1222_v54 = vpop.f32.mrf.mxu2 }
 0x144   :  { %v1223_v58 = vadd.f32 %v1222_v54, %v2893_v29  ;;  %v1988_v54 = vor.u32 %v2440_v22, %v1985_v50  ;;  %v2436_v22 = vld [vmem:[#allocation2 + $0x74] sm:$0xf0] }
 0x145   :  { %v1271_v59 = vpop.f32.mrf.mxu3  ;;  %v1127_v60 = vpop.f32.mrf.mxu0 }
 0x146   :  { %v1272_v16 = vadd.f32 %v1271_v59, %v1223_v58  ;;  %v1128_v2 = vadd.f32 %v1127_v60, %v2886_v40  ;;  %1603 = vmatpush.bf16.msrb.mxu2 %v1988_v54  ;;  %v2207_v54 = vld [vmem:[#allocation2 + $0x258] sm:$0xf] }
 0x147   :  { %v1176_v62 = vpop.f32.mrf.mxu1 }
 0x148   :  { %1322 = vmatmul.bf16.gmra.mxu0 %v2657_v32  ;;  %v1709_v0 = vpack.c.bf16 %v1272_v16, %v1174_v63  ;;  %1420 = vmatmul.bf16.gmra.mxu2 %v2657_v32  ;;  %v1177_v12 = vadd.f32 %v1176_v62, %v1128_v2  ;;  %v1983_v2 = vld [vmem:[#allocation2 + $0x98] sm:$0xf] }
 0x14a   :  { %1371 = vmatmul.bf16.gmra.mxu1 %v2659_v33  ;;  %1469 = vmatmul.bf16.gmra.mxu3 %v2659_v33  ;;  %1773 = vst [vmem:[%s3218_s3 + $0x68] sm:$0xff] %v1709_v0 }
 0x14b   :  { %v1225_v8 = vpop.f32.mrf.mxu2 }
 0x14c   :  { %v1226_v13 = vadd.f32 %v1225_v8, %v2893_v29  ;;  %v1984_v8 = vor.u32 %v2444_v3, %v1983_v2  ;;  %v1921_v2 = vld [vmem:[#allocation2 + $0x38] sm:$0xf0] }
 0x14d   :  { %v1274_v17 = vpop.f32.mrf.mxu3  ;;  %v1129_v18 = vpop.f32.mrf.mxu0 }
 0x14e   :  { %v1275_v21 = vadd.f32 %v1274_v17, %v1226_v13  ;;  %v1130_v24 = vadd.f32 %v1129_v18, %v2886_v40  ;;  %v2240_v17 = vor.u32 %v2508_v10, %v2239_v9  ;;  %1505 = vmatpush.bf16.msrb.mxu0 %v1984_v8  ;;  %v2488_v8 = vld [vmem:[#allocation2 + $0x21c] sm:$0xf] }
 0x14f   :  { %v1178_v20 = vpop.f32.mrf.mxu1  ;;  %v2177_v9 = vld [vmem:[#allocation2 + $0x238] sm:$0xf0] }
 0x150   :  { %v1713_v23 = vpack.c.bf16 %v1275_v21, %v1177_v12  ;;  %v1179_v42 = vadd.f32 %v1178_v20, %v1130_v24  ;;  %1554 = vmatpush.bf16.msrb.mxu1 %v2240_v17  ;;  %v2432_v24 = vld [vmem:[#allocation2 + $0x5c] sm:$0xf]  ;;  %v2180_v17 = vor.u32 %v2488_v8, %v2177_v9 }
 0x152   :  { %1777 = vst [vmem:[%s3218_s3 + $0x88] sm:$0xff] %v1713_v23  ;;  %1654 = vmatpush.bf16.msrb.mxu3 %v2180_v17 }
 0x153   :  { %v1227_v30 = vpop.f32.mrf.mxu2 }
 0x154   :  { %v1228_v36 = vadd.f32 %v1227_v30, %v2893_v29  ;;  %v1956_v30 = vor.u32 %v2432_v24, %v1953_v25  ;;  %v2428_v24 = vld [vmem:[#allocation2 + $0x34] sm:$0xf0] }
 0x155   :  { %v1276_v37 = vpop.f32.mrf.mxu3  ;;  %v1132_v38 = vpop.f32.mrf.mxu0 }
 0x156   :  { %v1277_v43 = vadd.f32 %v1276_v37, %v1228_v36  ;;  %v1133_v46 = vadd.f32 %v1132_v38, %v2886_v40  ;;  %1604 = vmatpush.bf16.msrb.mxu2 %v1956_v30  ;;  %v2175_v30 = vld [vmem:[#allocation2 + $0x218] sm:$0xf] }
 0x157   :  { %v1181_v41 = vpop.f32.mrf.mxu1 }
 0x158   :  { %1327 = vmatmul.bf16.gmra.mxu0 %v2677_v52  ;;  %v1717_v45 = vpack.c.bf16 %v1277_v43, %v1179_v42  ;;  %1425 = vmatmul.bf16.gmra.mxu2 %v2677_v52  ;;  %v1182_v57 = vadd.f32 %v1181_v41, %v1133_v46  ;;  %v1951_v46 = vld [vmem:[#allocation2 + $0x58] sm:$0xf] }
 0x15a   :  { %1376 = vmatmul.bf16.gmra.mxu1 %v2679_v53  ;;  %1474 = vmatmul.bf16.gmra.mxu3 %v2679_v53  ;;  %1781 = vst [vmem:[%s3218_s3 + $0xa8] sm:$0xff] %v1717_v45 }
 0x15b   :  { %v1230_v51 = vpop.f32.mrf.mxu2 }
 0x15c   :  { %v1231_v58 = vadd.f32 %v1230_v51, %v2893_v29  ;;  %v1952_v51 = vor.u32 %v2436_v22, %v1951_v46 }
 0x15d   :  { %v1279_v59 = vpop.f32.mrf.mxu3  ;;  %v1134_v60 = vpop.f32.mrf.mxu0 }
 0x15e   :  { %v1280_v63 = vadd.f32 %v1279_v59, %v1231_v58  ;;  %v1135_v0 = vadd.f32 %v1134_v60, %v2886_v40  ;;  %v2208_v59 = vor.u32 %v2500_v55, %v2207_v54  ;;  %1506 = vmatpush.bf16.msrb.mxu0 %v1952_v51 }
 0x15f   :  { %v1183_v62 = vpop.f32.mrf.mxu1 }
 0x160   :  { %v1721_v16 = vpack.c.bf16 %v1280_v63, %v1182_v57  ;;  %v1184_v19 = vadd.f32 %v1183_v62, %v1135_v0  ;;  %1555 = vmatpush.bf16.msrb.mxu1 %v2208_v59  ;;  %v2424_v0 = vld [vmem:[#allocation2 + $0x1c] sm:$0xf] }
 0x162   :  { %1785 = vst [vmem:[%s3218_s3 + $0xc8] sm:$0xff] %v1721_v16 }
 0x163   :  { %v1232_v5 = vpop.f32.mrf.mxu2 }
 0x164   :  { %v1233_v11 = vadd.f32 %v1232_v5, %v2893_v29  ;;  %v1924_v5 = vor.u32 %v2424_v0, %v1921_v2 }
 0x165   :  { %v1281_v12 = vpop.f32.mrf.mxu3  ;;  %v1137_v13 = vpop.f32.mrf.mxu0 }
 0x166   :  { %v1282_v20 = vadd.f32 %v1281_v12, %v1233_v11  ;;  %v1138_v23 = vadd.f32 %v1137_v13, %v2886_v40  ;;  %1605 = vmatpush.bf16.msrb.mxu2 %v1924_v5 }
 0x167   :  { %v1186_v18 = vpop.f32.mrf.mxu1 }
 0x168   :  { %1332 = vmatmul.bf16.gmra.mxu0 %v2697_v6  ;;  %v1725_v21 = vpack.c.bf16 %v1282_v20, %v1184_v19  ;;  %1430 = vmatmul.bf16.gmra.mxu2 %v2697_v6  ;;  %v1187_v35 = vadd.f32 %v1186_v18, %v1138_v23  ;;  %v1919_v23 = vld [vmem:[#allocation2 + $0x18] sm:$0xf] }
 0x16a   :  { %1381 = vmatmul.bf16.gmra.mxu1 %v2699_v7  ;;  %1479 = vmatmul.bf16.gmra.mxu3 %v2699_v7  ;;  %1789 = vst [vmem:[%s3218_s3 + $0xe8] sm:$0xff] %v1725_v21 }
 0x16b   :  { %v1235_v28 = vpop.f32.mrf.mxu2 }
 0x16c   :  { %v1236_v36 = vadd.f32 %v1235_v28, %v2893_v29  ;;  %v1920_v28 = vor.u32 %v2428_v24, %v1919_v23 }
 0x16d   :  { %v1284_v37 = vpop.f32.mrf.mxu3  ;;  %v1139_v38 = vpop.f32.mrf.mxu0 }
 0x16e   :  { %v1285_v42 = vadd.f32 %v1284_v37, %v1236_v36  ;;  %v1140_v45 = vadd.f32 %v1139_v38, %v2886_v40  ;;  %v2176_v37 = vor.u32 %v2492_v31, %v2175_v30  ;;  %1507 = vmatpush.bf16.msrb.mxu0 %v1920_v28 }
 0x16f   :  { %v1188_v41 = vpop.f32.mrf.mxu1 }
 0x170   :  { %v1729_v43 = vpack.c.bf16 %v1285_v42, %v1187_v35  ;;  %v1189_v61 = vadd.f32 %v1188_v41, %v1140_v45  ;;  %1556 = vmatpush.bf16.msrb.mxu1 %v2176_v37 }
 0x172   :  { %1793 = vst [vmem:[%s3218_s3 + $0x108] sm:$0xff] %v1729_v43 }
 0x173   :  { %v1237_v50 = vpop.f32.mrf.mxu2 }
 0x174   :  { %v1238_v56 = vadd.f32 %v1237_v50, %v2893_v29 }
 0x175   :  { %v1286_v57 = vpop.f32.mrf.mxu3  ;;  %v1142_v58 = vpop.f32.mrf.mxu0 }
 0x176   :  { %v1287_v62 = vadd.f32 %v1286_v57, %v1238_v56  ;;  %v1143_v16 = vadd.f32 %v1142_v58, %v2886_v40 }
 0x177   :  { %v1191_v60 = vpop.f32.mrf.mxu1 }
 0x178   :  { %1337 = vmatmul.bf16.gmra.mxu0 %v2717_v26  ;;  %v1733_v63 = vpack.c.bf16 %v1287_v62, %v1189_v61  ;;  %1435 = vmatmul.bf16.gmra.mxu2 %v2717_v26  ;;  %v1192_v10 = vadd.f32 %v1191_v60, %v1143_v16 }
 0x17a   :  { %1386 = vmatmul.bf16.gmra.mxu1 %v2719_v27  ;;  %1484 = vmatmul.bf16.gmra.mxu3 %v2719_v27  ;;  %1797 = vst [vmem:[%s3218_s3 + $0x128] sm:$0xff] %v1733_v63 }
 0x17b   :  { %v1240_v3 = vpop.f32.mrf.mxu2 }
 0x17c   :  { %v1241_v11 = vadd.f32 %v1240_v3, %v2893_v29 }
 0x17d   :  { %v1289_v12 = vpop.f32.mrf.mxu3  ;;  %v1144_v13 = vpop.f32.mrf.mxu0 }
 0x17e   :  { %v1290_v19 = vadd.f32 %v1289_v12, %v1241_v11  ;;  %v1145_v21 = vadd.f32 %v1144_v13, %v2886_v40 }
 0x17f   :  { %v1193_v18 = vpop.f32.mrf.mxu1 }
 0x180   :  { %v1737_v20 = vpack.c.bf16 %v1290_v19, %v1192_v10  ;;  %v1194_v39 = vadd.f32 %v1193_v18, %v1145_v21  ;;  %v3006_v21 = vld [vmem:[%s3217_s2] sm:$0xff] }
 0x181   :  { %v3009_v23 = vperm.slane %v3006_v21, 4 }
 0x182   :  { %1801 = vst [vmem:[%s3218_s3 + $0x148] sm:$0xff] %v1737_v20 }
 0x183   :  { %v1242_v25 = vpop.f32.mrf.mxu2 }
 0x184   :  { %v1243_v34 = vadd.f32 %v1242_v25, %v2893_v29 }
 0x185   :  { %v1291_v35 = vpop.f32.mrf.mxu3  ;;  %v1147_v36 = vpop.f32.mrf.mxu0 }
 0x186   :  { %v1292_v41 = vadd.f32 %v1291_v35, %v1243_v34  ;;  %v1148_v43 = vadd.f32 %v1147_v36, %v2886_v40 }
 0x187   :  { %v1196_v38 = vpop.f32.mrf.mxu1 }
 0x188   :  { %1342 = vmatmul.bf16.gmra.mxu0 %v2737_v47  ;;  %v1741_v42 = vpack.c.bf16 %v1292_v41, %v1194_v39  ;;  %1440 = vmatmul.bf16.gmra.mxu2 %v2737_v47  ;;  %v1197_v46 = vadd.f32 %v1196_v38, %v1148_v43 }
 0x18a   :  { %1391 = vmatmul.bf16.gmra.mxu1 %v2739_v48  ;;  %1489 = vmatmul.bf16.gmra.mxu3 %v2739_v48  ;;  %1805 = vst [vmem:[%s3218_s3 + $0x168] sm:$0xff] %v1741_v42 }
 0x18b   :  { %v1245_v45 = vpop.f32.mrf.mxu2 }
 0x18c   :  { %v1246_v22 = vadd.f32 %v1245_v45, %v2893_v29 }
 0x18d   :  { %v1294_v50 = vpop.f32.mrf.mxu3  ;;  %v1149_v51 = vpop.f32.mrf.mxu0 }
 0x18e   :  { %v1295_v55 = vadd.f32 %v1294_v50, %v1246_v22  ;;  %v1150_v57 = vadd.f32 %v1149_v51, %v2886_v40 }
 0x18f   :  { %v1198_v54 = vpop.f32.mrf.mxu1 }
 0x190   :  { %v1745_v56 = vpack.c.bf16 %v1295_v55, %v1197_v46  ;;  %v1199_v63 = vadd.f32 %v1198_v54, %v1150_v57 }
 0x192   :  { %1809 = vst [vmem:[%s3218_s3 + $0x188] sm:$0xff] %v1745_v56 }
 0x193   :  { %v1247_v58 = vpop.f32.mrf.mxu2 }
 0x194   :  { %v1248_v59 = vadd.f32 %v1247_v58, %v2893_v29 }
 0x195   :  { %v1296_v60 = vpop.f32.mrf.mxu3  ;;  %v1152_v61 = vpop.f32.mrf.mxu0 }
 0x196   :  { %v1297_v16 = vadd.f32 %v1296_v60, %v1248_v59  ;;  %v1153_v2 = vadd.f32 %v1152_v61, %v2886_v40 }
 0x197   :  { %v1201_v62 = vpop.f32.mrf.mxu1 }
 0x198   :  { %1347 = vmatmul.bf16.gmra.mxu0 %v2757_v1  ;;  %v1749_v0 = vpack.c.bf16 %v1297_v16, %v1199_v63  ;;  %1445 = vmatmul.bf16.gmra.mxu2 %v2757_v1  ;;  %v1202_v5 = vadd.f32 %v1201_v62, %v1153_v2 }
 0x19a   :  { %1396 = vmatmul.bf16.gmra.mxu1 %v2759_v4  ;;  %1494 = vmatmul.bf16.gmra.mxu3 %v2759_v4  ;;  %1813 = vst [vmem:[%s3218_s3 + $0x1a8] sm:$0xff] %v1749_v0 }
 0x19b   :  { %v1250_v3 = vpop.f32.mrf.mxu2 }
 0x19c   :  { %v1251_v8 = vadd.f32 %v1250_v3, %v2893_v29 }
 0x19d   :  { %v1299_v9 = vpop.f32.mrf.mxu3  ;;  %v1154_v10 = vpop.f32.mrf.mxu0 }
 0x19e   :  { %v1300_v12 = vadd.f32 %v1299_v9, %v1251_v8  ;;  %v1155_v17 = vadd.f32 %v1154_v10, %v2886_v40 }
 0x19f   :  { %v1203_v11 = vpop.f32.mrf.mxu1 }
 0x1a0   :  { %v1753_v13 = vpack.c.bf16 %v1300_v12, %v1202_v5  ;;  %v1204_v28 = vadd.f32 %v1203_v11, %v1155_v17 }
 0x1a2   :  { %1817 = vst [vmem:[%s3218_s3 + $0x1c8] sm:$0xff] %v1753_v13 }
 0x1a3   :  { %v1252_v18 = vpop.f32.mrf.mxu2 }
 0x1a4   :  { %v1253_v19 = vadd.f32 %v1252_v18, %v2893_v29  ;;  %v3016_v29 = vperm.slane %v3006_v21, 5 }
 0x1a5   :  { %v1301_v20 = vpop.f32.mrf.mxu3  ;;  %v1313_v24 = vpop.f32.mrf.mxu0 }
 0x1a6   :  { %v1302_v30 = vadd.f32 %v1301_v20, %v1253_v19  ;;  %v1314_v40 = vadd.f32 %v1313_v24, %v3009_v23 }
 0x1a7   :  { %v1362_v25 = vpop.f32.mrf.mxu1 }
 0x1a8   :  { %1508 = vmatmul.bf16.vlgmr.msrb.gmra.mxu0 %v2617_v44  ;;  %v1757_v31 = vpack.c.bf16 %v1302_v30, %v1204_v28  ;;  %1606 = vmatmul.bf16.vlgmr.msrb.gmra.mxu2 %v2617_v44  ;;  %v1363_v35 = vadd.f32 %v1362_v25, %v1314_v40 }
 0x1aa   :  { %1557 = vmatmul.bf16.vlgmr.msrb.gmra.mxu1 %v2619_v49  ;;  %1655 = vmatmul.bf16.vlgmr.msrb.gmra.mxu3 %v2619_v49  ;;  %1821 = vst [vmem:[%s3218_s3 + $0x1e8] sm:$0xff] %v1757_v31 }
 0x1ab   :  { %v1411_v34 = vpop.f32.mrf.mxu2 }
 0x1ac   :  { %v1412_v36 = vadd.f32 %v1411_v34, %v3016_v29 }
 0x1ad   :  { %v1460_v37 = vpop.f32.mrf.mxu3  ;;  %v1315_v38 = vpop.f32.mrf.mxu0 }
 0x1ae   :  { %v1461_v41 = vadd.f32 %v1460_v37, %v1412_v36  ;;  %v1316_v44 = vadd.f32 %v1315_v38, %v3009_v23 }
 0x1af   :  { %v1364_v39 = vpop.f32.mrf.mxu1 }
 0x1b0   :  { %v1698_v42 = vpack.c.bf16 %v1461_v41, %v1363_v35  ;;  %v1365_v50 = vadd.f32 %v1364_v39, %v1316_v44 }
 0x1b2   :  { %1762 = vst [vmem:[%s3218_s3 + $0x10] sm:$0xff] %v1698_v42 }
 0x1b3   :  { %v1413_v49 = vpop.f32.mrf.mxu2 }
 0x1b4   :  { %v1414_v43 = vadd.f32 %v1413_v49, %v3016_v29 }
 0x1b5   :  { %v1462_v45 = vpop.f32.mrf.mxu3  ;;  %v1318_v46 = vpop.f32.mrf.mxu0 }
 0x1b6   :  { %v1463_v51 = vadd.f32 %v1462_v45, %v1414_v43  ;;  %v1319_v55 = vadd.f32 %v1318_v46, %v3009_v23 }
 0x1b7   :  { %v1367_v22 = vpop.f32.mrf.mxu1 }
 0x1b8   :  { %1513 = vmatmul.bf16.gmra.mxu0 %v2637_v14  ;;  %v1702_v54 = vpack.c.bf16 %v1463_v51, %v1365_v50  ;;  %1611 = vmatmul.bf16.gmra.mxu2 %v2637_v14  ;;  %v1368_v57 = vadd.f32 %v1367_v22, %v1319_v55 }
 0x1ba   :  { %1562 = vmatmul.bf16.gmra.mxu1 %v2639_v15  ;;  %1660 = vmatmul.bf16.gmra.mxu3 %v2639_v15  ;;  %1766 = vst [vmem:[%s3218_s3 + $0x30] sm:$0xff] %v1702_v54 }
 0x1bb   :  { %v1416_v56 = vpop.f32.mrf.mxu2 }
 0x1bc   :  { %v1417_v58 = vadd.f32 %v1416_v56, %v3016_v29 }
 0x1bd   :  { %v1465_v59 = vpop.f32.mrf.mxu3  ;;  %v1320_v60 = vpop.f32.mrf.mxu0 }
 0x1be   :  { %v1466_v62 = vadd.f32 %v1465_v59, %v1417_v58  ;;  %v1321_v14 = vadd.f32 %v1320_v60, %v3009_v23 }
 0x1bf   :  { %v1369_v61 = vpop.f32.mrf.mxu1 }
 0x1c0   :  { %v1706_v63 = vpack.c.bf16 %v1466_v62, %v1368_v57  ;;  %v1370_v5 = vadd.f32 %v1369_v61, %v1321_v14 }
 0x1c2   :  { %1770 = vst [vmem:[%s3218_s3 + $0x50] sm:$0xff] %v1706_v63 }
 0x1c3   :  { %v1418_v15 = vpop.f32.mrf.mxu2 }
 0x1c4   :  { %v1419_v16 = vadd.f32 %v1418_v15, %v3016_v29 }
 0x1c5   :  { %v1467_v0 = vpop.f32.mrf.mxu3  ;;  %v1323_v2 = vpop.f32.mrf.mxu0 }
 0x1c6   :  { %v1468_v8 = vadd.f32 %v1467_v0, %v1419_v16  ;;  %v1324_v10 = vadd.f32 %v1323_v2, %v3009_v23 }
 0x1c7   :  { %v1372_v3 = vpop.f32.mrf.mxu1 }
 0x1c8   :  { %1518 = vmatmul.bf16.gmra.mxu0 %v2657_v32  ;;  %v1710_v9 = vpack.c.bf16 %v1468_v8, %v1370_v5  ;;  %1616 = vmatmul.bf16.gmra.mxu2 %v2657_v32  ;;  %v1373_v12 = vadd.f32 %v1372_v3, %v1324_v10 }
 0x1ca   :  { %1567 = vmatmul.bf16.gmra.mxu1 %v2659_v33  ;;  %1665 = vmatmul.bf16.gmra.mxu3 %v2659_v33  ;;  %1774 = vst [vmem:[%s3218_s3 + $0x70] sm:$0xff] %v1710_v9 }
 0x1cb   :  { %v1421_v11 = vpop.f32.mrf.mxu2 }
 0x1cc   :  { %v1422_v13 = vadd.f32 %v1421_v11, %v3016_v29 }
 0x1cd   :  { %v1470_v17 = vpop.f32.mrf.mxu3  ;;  %v1325_v18 = vpop.f32.mrf.mxu0 }
 0x1ce   :  { %v1471_v20 = vadd.f32 %v1470_v17, %v1422_v13  ;;  %v1326_v32 = vadd.f32 %v1325_v18, %v3009_v23 }
 0x1cf   :  { %v1374_v19 = vpop.f32.mrf.mxu1 }
 0x1d0   :  { %v1714_v24 = vpack.c.bf16 %v1471_v20, %v1373_v12  ;;  %v1375_v40 = vadd.f32 %v1374_v19, %v1326_v32 }
 0x1d2   :  { %1778 = vst [vmem:[%s3218_s3 + $0x90] sm:$0xff] %v1714_v24 }
 0x1d3   :  { %v1423_v33 = vpop.f32.mrf.mxu2 }
 0x1d4   :  { %v1424_v25 = vadd.f32 %v1423_v33, %v3016_v29 }
 0x1d5   :  { %v1472_v28 = vpop.f32.mrf.mxu3  ;;  %v1328_v30 = vpop.f32.mrf.mxu0 }
 0x1d6   :  { %v1473_v34 = vadd.f32 %v1472_v28, %v1424_v25  ;;  %v1329_v36 = vadd.f32 %v1328_v30, %v3009_v23 }
 0x1d7   :  { %v1377_v31 = vpop.f32.mrf.mxu1 }
 0x1d8   :  { %1523 = vmatmul.bf16.gmra.mxu0 %v2677_v52  ;;  %v1718_v35 = vpack.c.bf16 %v1473_v34, %v1375_v40  ;;  %1621 = vmatmul.bf16.gmra.mxu2 %v2677_v52  ;;  %v1378_v38 = vadd.f32 %v1377_v31, %v1329_v36 }
 0x1da   :  { %1572 = vmatmul.bf16.gmra.mxu1 %v2679_v53  ;;  %1670 = vmatmul.bf16.gmra.mxu3 %v2679_v53  ;;  %1782 = vst [vmem:[%s3218_s3 + $0xb0] sm:$0xff] %v1718_v35 }
 0x1db   :  { %v1426_v37 = vpop.f32.mrf.mxu2 }
 0x1dc   :  { %v1427_v39 = vadd.f32 %v1426_v37, %v3016_v29 }
 0x1dd   :  { %v1475_v41 = vpop.f32.mrf.mxu3  ;;  %v1330_v42 = vpop.f32.mrf.mxu0 }
 0x1de   :  { %v1476_v49 = vadd.f32 %v1475_v41, %v1427_v39  ;;  %v1331_v52 = vadd.f32 %v1330_v42, %v3009_v23 }
 0x1df   :  { %v1379_v44 = vpop.f32.mrf.mxu1 }
 0x1e0   :  { %v1722_v43 = vpack.c.bf16 %v1476_v49, %v1378_v38  ;;  %v1380_v51 = vadd.f32 %v1379_v44, %v1331_v52 }
 0x1e2   :  { %1786 = vst [vmem:[%s3218_s3 + $0xd0] sm:$0xff] %v1722_v43 }
 0x1e3   :  { %v1428_v53 = vpop.f32.mrf.mxu2 }
 0x1e4   :  { %v1429_v45 = vadd.f32 %v1428_v53, %v3016_v29 }
 0x1e5   :  { %v1477_v46 = vpop.f32.mrf.mxu3  ;;  %v1333_v22 = vpop.f32.mrf.mxu0 }
 0x1e6   :  { %v1478_v54 = vadd.f32 %v1477_v46, %v1429_v45  ;;  %v1334_v56 = vadd.f32 %v1333_v22, %v3009_v23 }
 0x1e7   :  { %v1382_v50 = vpop.f32.mrf.mxu1 }
 0x1e8   :  { %1528 = vmatmul.bf16.gmra.mxu0 %v2697_v6  ;;  %v1726_v55 = vpack.c.bf16 %v1478_v54, %v1380_v51  ;;  %1626 = vmatmul.bf16.gmra.mxu2 %v2697_v6  ;;  %v1383_v58 = vadd.f32 %v1382_v50, %v1334_v56 }
 0x1ea   :  { %1577 = vmatmul.bf16.gmra.mxu1 %v2699_v7  ;;  %1675 = vmatmul.bf16.gmra.mxu3 %v2699_v7  ;;  %1790 = vst [vmem:[%s3218_s3 + $0xf0] sm:$0xff] %v1726_v55 }
 0x1eb   :  { %v1431_v57 = vpop.f32.mrf.mxu2 }
 0x1ec   :  { %v1432_v59 = vadd.f32 %v1431_v57, %v3016_v29 }
 0x1ed   :  { %v1480_v60 = vpop.f32.mrf.mxu3  ;;  %v1335_v61 = vpop.f32.mrf.mxu0 }
 0x1ee   :  { %v1481_v63 = vadd.f32 %v1480_v60, %v1432_v59  ;;  %v1336_v6 = vadd.f32 %v1335_v61, %v3009_v23 }
 0x1ef   :  { %v1384_v62 = vpop.f32.mrf.mxu1 }
 0x1f0   :  { %v1730_v14 = vpack.c.bf16 %v1481_v63, %v1383_v58  ;;  %v1385_v3 = vadd.f32 %v1384_v62, %v1336_v6  ;;  %v3127_v62 = vperm.slane %v3006_v21, 6 }
 0x1f2   :  { %1794 = vst [vmem:[%s3218_s3 + $0x110] sm:$0xff] %v1730_v14 }
 0x1f3   :  { %v1433_v7 = vpop.f32.mrf.mxu2 }
 0x1f4   :  { %v1434_v15 = vadd.f32 %v1433_v7, %v3016_v29 }
 0x1f5   :  { %v1482_v16 = vpop.f32.mrf.mxu3  ;;  %v1338_v0 = vpop.f32.mrf.mxu0 }
 0x1f6   :  { %v1483_v5 = vadd.f32 %v1482_v16, %v1434_v15  ;;  %v1339_v9 = vadd.f32 %v1338_v0, %v3009_v23  ;;  %v3131_v0 = vperm.slane %v3006_v21, 7 }
 0x1f7   :  { %v1387_v2 = vpop.f32.mrf.mxu1 }
 0x1f8   :  { %1533 = vmatmul.bf16.gmra.mxu0 %v2717_v26  ;;  %v1734_v8 = vpack.c.bf16 %v1483_v5, %v1385_v3  ;;  %1631 = vmatmul.bf16.gmra.mxu2 %v2717_v26  ;;  %v1388_v11 = vadd.f32 %v1387_v2, %v1339_v9 }
 0x1fa   :  { %1582 = vmatmul.bf16.gmra.mxu1 %v2719_v27  ;;  %1680 = vmatmul.bf16.gmra.mxu3 %v2719_v27  ;;  %1798 = vst [vmem:[%s3218_s3 + $0x130] sm:$0xff] %v1734_v8 }
 0x1fb   :  { %v1436_v10 = vpop.f32.mrf.mxu2 }
 0x1fc   :  { %v1437_v12 = vadd.f32 %v1436_v10, %v3016_v29 }
 0x1fd   :  { %v1485_v13 = vpop.f32.mrf.mxu3  ;;  %v1340_v17 = vpop.f32.mrf.mxu0 }
 0x1fe   :  { %v1486_v19 = vadd.f32 %v1485_v13, %v1437_v12  ;;  %v1341_v26 = vadd.f32 %v1340_v17, %v3009_v23 }
 0x1ff   :  { %v1389_v18 = vpop.f32.mrf.mxu1 }
 0x200   :  { %v1738_v20 = vpack.c.bf16 %v1486_v19, %v1388_v11  ;;  %v1390_v28 = vadd.f32 %v1389_v18, %v1341_v26 }
 0x202   :  { %1802 = vst [vmem:[%s3218_s3 + $0x150] sm:$0xff] %v1738_v20 }
 0x203   :  { %v1438_v27 = vpop.f32.mrf.mxu2 }
 0x204   :  { %v1439_v24 = vadd.f32 %v1438_v27, %v3016_v29 }
 0x205   :  { %v1487_v32 = vpop.f32.mrf.mxu3  ;;  %v1343_v33 = vpop.f32.mrf.mxu0 }
 0x206   :  { %v1488_v30 = vadd.f32 %v1487_v32, %v1439_v24  ;;  %v1344_v40 = vadd.f32 %v1343_v33, %v3009_v23 }
 0x207   :  { %v1392_v25 = vpop.f32.mrf.mxu1 }
 0x208   :  { %1538 = vmatmul.bf16.gmra.mxu0 %v2737_v47  ;;  %v1742_v31 = vpack.c.bf16 %v1488_v30, %v1390_v28  ;;  %1636 = vmatmul.bf16.gmra.mxu2 %v2737_v47  ;;  %v1393_v35 = vadd.f32 %v1392_v25, %v1344_v40 }
 0x20a   :  { %1587 = vmatmul.bf16.gmra.mxu1 %v2739_v48  ;;  %1685 = vmatmul.bf16.gmra.mxu3 %v2739_v48  ;;  %1806 = vst [vmem:[%s3218_s3 + $0x170] sm:$0xff] %v1742_v31 }
 0x20b   :  { %v1441_v34 = vpop.f32.mrf.mxu2 }
 0x20c   :  { %v1442_v36 = vadd.f32 %v1441_v34, %v3016_v29 }
 0x20d   :  { %v1490_v37 = vpop.f32.mrf.mxu3  ;;  %v1345_v38 = vpop.f32.mrf.mxu0 }
 0x20e   :  { %v1491_v41 = vadd.f32 %v1490_v37, %v1442_v36  ;;  %v1346_v47 = vadd.f32 %v1345_v38, %v3009_v23 }
 0x20f   :  { %v1394_v39 = vpop.f32.mrf.mxu1 }
 0x210   :  { %v1746_v42 = vpack.c.bf16 %v1491_v41, %v1393_v35  ;;  %v1395_v53 = vadd.f32 %v1394_v39, %v1346_v47 }
 0x212   :  { %1810 = vst [vmem:[%s3218_s3 + $0x190] sm:$0xff] %v1746_v42 }
 0x213   :  { %v1443_v48 = vpop.f32.mrf.mxu2 }
 0x214   :  { %v1444_v44 = vadd.f32 %v1443_v48, %v3016_v29 }
 0x215   :  { %v1492_v49 = vpop.f32.mrf.mxu3  ;;  %v1348_v43 = vpop.f32.mrf.mxu0 }
 0x216   :  { %v1493_v45 = vadd.f32 %v1492_v49, %v1444_v44  ;;  %v1349_v22 = vadd.f32 %v1348_v43, %v3009_v23 }
 0x217   :  { %v1397_v52 = vpop.f32.mrf.mxu1 }
 0x218   :  { %1543 = vmatmul.bf16.gmra.mxu0 %v2757_v1  ;;  %v1750_v46 = vpack.c.bf16 %v1493_v45, %v1395_v53  ;;  %1641 = vmatmul.bf16.gmra.mxu2 %v2757_v1  ;;  %v1398_v51 = vadd.f32 %v1397_v52, %v1349_v22 }
 0x21a   :  { %1592 = vmatmul.bf16.gmra.mxu1 %v2759_v4  ;;  %1690 = vmatmul.bf16.gmra.mxu3 %v2759_v4  ;;  %1814 = vst [vmem:[%s3218_s3 + $0x1b0] sm:$0xff] %v1750_v46 }
 0x21b   :  { %v1446_v50 = vpop.f32.mrf.mxu2 }
 0x21c   :  { %v1447_v54 = vadd.f32 %v1446_v50, %v3016_v29 }
 0x21d   :  { %v1495_v55 = vpop.f32.mrf.mxu3  ;;  %v1350_v56 = vpop.f32.mrf.mxu0 }
 0x21e   :  { %v1496_v58 = vadd.f32 %v1495_v55, %v1447_v54  ;;  %v1351_v1 = vadd.f32 %v1350_v56, %v3009_v23 }
 0x21f   :  { %v1399_v57 = vpop.f32.mrf.mxu1 }
 0x220   :  { %v1754_v59 = vpack.c.bf16 %v1496_v58, %v1398_v51  ;;  %v1400_v6 = vadd.f32 %v1399_v57, %v1351_v1 }
 0x222   :  { %1818 = vst [vmem:[%s3218_s3 + $0x1d0] sm:$0xff] %v1754_v59 }
 0x223   :  { %v1448_v4 = vpop.f32.mrf.mxu2 }
 0x224   :  { %v1449_v60 = vadd.f32 %v1448_v4, %v3016_v29 }
 0x225   :  { %v1497_v61 = vpop.f32.mrf.mxu3  ;;  %v1509_v63 = vpop.f32.mrf.mxu0 }
 0x226   :  { %v1498_v7 = vadd.f32 %v1497_v61, %v1449_v60  ;;  %v1510_v16 = vadd.f32 %v1509_v63, %v3127_v62 }
 0x227   :  { %v1558_v14 = vpop.f32.mrf.mxu1 }
 0x228   :  { %v1758_v15 = vpack.c.bf16 %v1498_v7, %v1400_v6  ;;  %v1559_v29 = vadd.f32 %v1558_v14, %v1510_v16 }
 0x22a   :  { %1822 = vst [vmem:[%s3218_s3 + $0x1f0] sm:$0xff] %v1758_v15 }
 0x22b   :  { %v1607_v23 = vpop.f32.mrf.mxu2 }
 0x22c   :  { %v1608_v2 = vadd.f32 %v1607_v23, %v3131_v0 }
 0x22d   :  { %v1656_v3 = vpop.f32.mrf.mxu3  ;;  %v1511_v5 = vpop.f32.mrf.mxu0 }
 0x22e   :  { %v1657_v9 = vadd.f32 %v1656_v3, %v1608_v2  ;;  %v1512_v21 = vadd.f32 %v1511_v5, %v3127_v62 }
 0x22f   :  { %v1560_v8 = vpop.f32.mrf.mxu1 }
 0x230   :  { %v1699_v10 = vpack.c.bf16 %v1657_v9, %v1559_v29  ;;  %v1561_v19 = vadd.f32 %v1560_v8, %v1512_v21 }
 0x232   :  { %1763 = vst [vmem:[%s3218_s3 + $0x18] sm:$0xff] %v1699_v10 }
 0x233   :  { %v1609_v11 = vpop.f32.mrf.mxu2 }
 0x234   :  { %v1610_v12 = vadd.f32 %v1609_v11, %v3131_v0 }
 0x235   :  { %v1658_v13 = vpop.f32.mrf.mxu3  ;;  %v1514_v17 = vpop.f32.mrf.mxu0 }
 0x236   :  { %v1659_v20 = vadd.f32 %v1658_v13, %v1610_v12  ;;  %v1515_v27 = vadd.f32 %v1514_v17, %v3127_v62 }
 0x237   :  { %v1563_v18 = vpop.f32.mrf.mxu1 }
 0x238   :  { %v1703_v26 = vpack.c.bf16 %v1659_v20, %v1561_v19  ;;  %v1564_v32 = vadd.f32 %v1563_v18, %v1515_v27 }
 0x23a   :  { %1767 = vst [vmem:[%s3218_s3 + $0x38] sm:$0xff] %v1703_v26 }
 0x23b   :  { %v1612_v24 = vpop.f32.mrf.mxu2 }
 0x23c   :  { %v1613_v33 = vadd.f32 %v1612_v24, %v3131_v0 }
 0x23d   :  { %v1661_v25 = vpop.f32.mrf.mxu3  ;;  %v1516_v28 = vpop.f32.mrf.mxu0 }
 0x23e   :  { %v1662_v31 = vadd.f32 %v1661_v25, %v1613_v33  ;;  %v1517_v34 = vadd.f32 %v1516_v28, %v3127_v62 }
 0x23f   :  { %v1565_v30 = vpop.f32.mrf.mxu1 }
 0x240   :  { %v1707_v40 = vpack.c.bf16 %v1662_v31, %v1564_v32  ;;  %v1566_v41 = vadd.f32 %v1565_v30, %v1517_v34 }
 0x242   :  { %1771 = vst [vmem:[%s3218_s3 + $0x58] sm:$0xff] %v1707_v40 }
 0x243   :  { %v1614_v35 = vpop.f32.mrf.mxu2 }
 0x244   :  { %v1615_v36 = vadd.f32 %v1614_v35, %v3131_v0 }
 0x245   :  { %v1663_v37 = vpop.f32.mrf.mxu3  ;;  %v1519_v38 = vpop.f32.mrf.mxu0 }
 0x246   :  { %v1664_v42 = vadd.f32 %v1663_v37, %v1615_v36  ;;  %v1520_v48 = vadd.f32 %v1519_v38, %v3127_v62 }
 0x247   :  { %v1568_v39 = vpop.f32.mrf.mxu1 }
 0x248   :  { %v1711_v47 = vpack.c.bf16 %v1664_v42, %v1566_v41  ;;  %v1569_v49 = vadd.f32 %v1568_v39, %v1520_v48 }
 0x24a   :  { %1775 = vst [vmem:[%s3218_s3 + $0x78] sm:$0xff] %v1711_v47 }
 0x24b   :  { %v1617_v44 = vpop.f32.mrf.mxu2 }
 0x24c   :  { %v1618_v43 = vadd.f32 %v1617_v44, %v3131_v0 }
 0x24d   :  { %v1666_v52 = vpop.f32.mrf.mxu3  ;;  %v1521_v53 = vpop.f32.mrf.mxu0 }
 0x24e   :  { %v1667_v46 = vadd.f32 %v1666_v52, %v1618_v43  ;;  %v1522_v50 = vadd.f32 %v1521_v53, %v3127_v62 }
 0x24f   :  { %v1570_v45 = vpop.f32.mrf.mxu1 }
 0x250   :  { %v1715_v22 = vpack.c.bf16 %v1667_v46, %v1569_v49  ;;  %v1571_v58 = vadd.f32 %v1570_v45, %v1522_v50 }
 0x252   :  { %1779 = vst [vmem:[%s3218_s3 + $0x98] sm:$0xff] %v1715_v22 }
 0x253   :  { %v1619_v51 = vpop.f32.mrf.mxu2 }
 0x254   :  { %v1620_v54 = vadd.f32 %v1619_v51, %v3131_v0 }
 0x255   :  { %v1668_v55 = vpop.f32.mrf.mxu3  ;;  %v1524_v56 = vpop.f32.mrf.mxu0 }
 0x256   :  { %v1669_v59 = vadd.f32 %v1668_v55, %v1620_v54  ;;  %v1525_v4 = vadd.f32 %v1524_v56, %v3127_v62 }
 0x257   :  { %v1573_v57 = vpop.f32.mrf.mxu1 }
 0x258   :  { %v1719_v1 = vpack.c.bf16 %v1669_v59, %v1571_v58  ;;  %v1574_v61 = vadd.f32 %v1573_v57, %v1525_v4 }
 0x25a   :  { %1783 = vst [vmem:[%s3218_s3 + $0xb8] sm:$0xff] %v1719_v1 }
 0x25b   :  { %v1622_v60 = vpop.f32.mrf.mxu2 }
 0x25c   :  { %v1623_v63 = vadd.f32 %v1622_v60, %v3131_v0 }
 0x25d   :  { %v1671_v14 = vpop.f32.mrf.mxu3  ;;  %v1526_v6 = vpop.f32.mrf.mxu0 }
 0x25e   :  { %v1672_v15 = vadd.f32 %v1671_v14, %v1623_v63  ;;  %v1527_v23 = vadd.f32 %v1526_v6, %v3127_v62 }
 0x25f   :  { %v1575_v7 = vpop.f32.mrf.mxu1 }
 0x260   :  { %v1723_v16 = vpack.c.bf16 %v1672_v15, %v1574_v61  ;;  %v1576_v9 = vadd.f32 %v1575_v7, %v1527_v23 }
 0x262   :  { %1787 = vst [vmem:[%s3218_s3 + $0xd8] sm:$0xff] %v1723_v16 }
 0x263   :  { %v1624_v29 = vpop.f32.mrf.mxu2 }
 0x264   :  { %v1625_v2 = vadd.f32 %v1624_v29, %v3131_v0 }
 0x265   :  { %v1673_v3 = vpop.f32.mrf.mxu3  ;;  %v1529_v5 = vpop.f32.mrf.mxu0 }
 0x266   :  { %v1674_v10 = vadd.f32 %v1673_v3, %v1625_v2  ;;  %v1530_v11 = vadd.f32 %v1529_v5, %v3127_v62 }
 0x267   :  { %v1578_v8 = vpop.f32.mrf.mxu1 }
 0x268   :  { %v1727_v21 = vpack.c.bf16 %v1674_v10, %v1576_v9  ;;  %v1579_v13 = vadd.f32 %v1578_v8, %v1530_v11 }
 0x26a   :  { %1791 = vst [vmem:[%s3218_s3 + $0xf8] sm:$0xff] %v1727_v21 }
 0x26b   :  { %v1627_v12 = vpop.f32.mrf.mxu2 }
 0x26c   :  { %v1628_v17 = vadd.f32 %v1627_v12, %v3131_v0 }
 0x26d   :  { %v1676_v18 = vpop.f32.mrf.mxu3  ;;  %v1531_v19 = vpop.f32.mrf.mxu0 }
 0x26e   :  { %v1677_v26 = vadd.f32 %v1676_v18, %v1628_v17  ;;  %v1532_v24 = vadd.f32 %v1531_v19, %v3127_v62 }
 0x26f   :  { %v1580_v20 = vpop.f32.mrf.mxu1 }
 0x270   :  { %v1731_v27 = vpack.c.bf16 %v1677_v26, %v1579_v13  ;;  %v1581_v31 = vadd.f32 %v1580_v20, %v1532_v24 }
 0x272   :  { %1795 = vst [vmem:[%s3218_s3 + $0x118] sm:$0xff] %v1731_v27 }
 0x273   :  { %v1629_v32 = vpop.f32.mrf.mxu2 }
 0x274   :  { %v1630_v33 = vadd.f32 %v1629_v32, %v3131_v0 }
 0x275   :  { %v1678_v25 = vpop.f32.mrf.mxu3  ;;  %v1534_v28 = vpop.f32.mrf.mxu0 }
 0x276   :  { %v1679_v40 = vadd.f32 %v1678_v25, %v1630_v33  ;;  %v1535_v35 = vadd.f32 %v1534_v28, %v3127_v62 }
 0x277   :  { %v1583_v30 = vpop.f32.mrf.mxu1 }
 0x278   :  { %v1735_v34 = vpack.c.bf16 %v1679_v40, %v1581_v31  ;;  %v1584_v37 = vadd.f32 %v1583_v30, %v1535_v35 }
 0x27a   :  { %1799 = vst [vmem:[%s3218_s3 + $0x138] sm:$0xff] %v1735_v34 }
 0x27b   :  { %v1632_v36 = vpop.f32.mrf.mxu2 }
 0x27c   :  { %v1633_v38 = vadd.f32 %v1632_v36, %v3131_v0 }
 0x27d   :  { %v1681_v39 = vpop.f32.mrf.mxu3  ;;  %v1536_v41 = vpop.f32.mrf.mxu0 }
 0x27e   :  { %v1682_v47 = vadd.f32 %v1681_v39, %v1633_v38  ;;  %v1537_v44 = vadd.f32 %v1536_v41, %v3127_v62 }
 0x27f   :  { %v1585_v42 = vpop.f32.mrf.mxu1 }
 0x280   :  { %v1739_v48 = vpack.c.bf16 %v1682_v47, %v1584_v37  ;;  %v1586_v45 = vadd.f32 %v1585_v42, %v1537_v44 }
 0x282   :  { %1803 = vst [vmem:[%s3218_s3 + $0x158] sm:$0xff] %v1739_v48 }
 0x283   :  { %v1634_v49 = vpop.f32.mrf.mxu2 }
 0x284   :  { %v1635_v43 = vadd.f32 %v1634_v49, %v3131_v0 }
 0x285   :  { %v1683_v52 = vpop.f32.mrf.mxu3  ;;  %v1539_v53 = vpop.f32.mrf.mxu0 }
 0x286   :  { %v1684_v46 = vadd.f32 %v1683_v52, %v1635_v43  ;;  %v1540_v51 = vadd.f32 %v1539_v53, %v3127_v62 }
 0x287   :  { %v1588_v22 = vpop.f32.mrf.mxu1 }
 0x288   :  { %v1743_v50 = vpack.c.bf16 %v1684_v46, %v1586_v45  ;;  %v1589_v55 = vadd.f32 %v1588_v22, %v1540_v51 }
 0x28a   :  { %1807 = vst [vmem:[%s3218_s3 + $0x178] sm:$0xff] %v1743_v50 }
 0x28b   :  { %v1637_v54 = vpop.f32.mrf.mxu2 }
 0x28c   :  { %v1638_v56 = vadd.f32 %v1637_v54, %v3131_v0 }
 0x28d   :  { %v1686_v57 = vpop.f32.mrf.mxu3  ;;  %v1541_v58 = vpop.f32.mrf.mxu0 }
 0x28e   :  { %v1687_v59 = vadd.f32 %v1686_v57, %v1638_v56  ;;  %v1542_v60 = vadd.f32 %v1541_v58, %v3127_v62 }
 0x28f   :  { %v1590_v4 = vpop.f32.mrf.mxu1 }
 0x290   :  { %v1747_v1 = vpack.c.bf16 %v1687_v59, %v1589_v55  ;;  %v1591_v7 = vadd.f32 %v1590_v4, %v1542_v60 }
 0x292   :  { %1811 = vst [vmem:[%s3218_s3 + $0x198] sm:$0xff] %v1747_v1 }
 0x293   :  { %v1639_v61 = vpop.f32.mrf.mxu2 }
 0x294   :  { %v1640_v63 = vadd.f32 %v1639_v61, %v3131_v0 }
 0x295   :  { %v1688_v14 = vpop.f32.mrf.mxu3  ;;  %v1544_v6 = vpop.f32.mrf.mxu0 }
 0x296   :  { %v1689_v15 = vadd.f32 %v1688_v14, %v1640_v63  ;;  %v1545_v23 = vadd.f32 %v1544_v6, %v3127_v62 }
 0x297   :  { %v1593_v29 = vpop.f32.mrf.mxu1 }
 0x298   :  { %v1751_v16 = vpack.c.bf16 %v1689_v15, %v1591_v7  ;;  %v1594_v3 = vadd.f32 %v1593_v29, %v1545_v23 }
 0x29a   :  { %1815 = vst [vmem:[%s3218_s3 + $0x1b8] sm:$0xff] %v1751_v16 }
 0x29b   :  { %v1642_v2 = vpop.f32.mrf.mxu2 }
 0x29c   :  { %v1643_v5 = vadd.f32 %v1642_v2, %v3131_v0 }
 0x29d   :  { %v1691_v8 = vpop.f32.mrf.mxu3  ;;  %v1546_v10 = vpop.f32.mrf.mxu0 }
 0x29e   :  { %v1692_v9 = vadd.f32 %v1691_v8, %v1643_v5  ;;  %v1547_v11 = vadd.f32 %v1546_v10, %v3127_v62 }
 0x29f   :  { %v1595_v17 = vpop.f32.mrf.mxu1 }
 0x2a0   :  { %v1755_v21 = vpack.c.bf16 %v1692_v9, %v1594_v3  ;;  %v1596_v19 = vadd.f32 %v1595_v17, %v1547_v11 }
 0x2a2   :  { %1819 = vst [vmem:[%s3218_s3 + $0x1d8] sm:$0xff] %v1755_v21 }
 0x2a3   :  { %v1644_v12 = vpop.f32.mrf.mxu2 }
 0x2a4   :  { %v1645_v13 = vadd.f32 %v1644_v12, %v3131_v0 }
 0x2a5   :  { %v1693_v18 = vpop.f32.mrf.mxu3 }
 0x2a6   :  { %v1694_v20 = vadd.f32 %v1693_v18, %v1645_v13 }
 0x2a8   :  { %v1759_v26 = vpack.c.bf16 %v1694_v20, %v1596_v19 }
 0x2aa   :  { %1823 = vst [vmem:[%s3218_s3 + $0x1f8] sm:$0xff] %v1759_v26 }
 0x2ab   :  { %1828 = vsyncpa [#allocation3], 1 }

</bundles_post_ra>
